<compile_context>
chip_gen: v7x
topology: tpu7x:2x2x1
jax: 0.10.0
libtpu: 0.0.40
codegen_flags: <defaults>
</compile_context>

<pallas_src>
import functools

import numpy as np
import jax
import jax.numpy as jnp
from jax.experimental import pallas as pl
from jax.experimental.pallas import tpu as pltpu

# -------------------- static config (consistent with module) -----------------
LINK_NUM = 50
EMBEDDING_DIM = 8
HIDDEN_DIM = 32
DENSE_DIM = 4
SPARSE_CONFIG = [
    {"name": "weekday", "size": 8, "dim": 4, "col": 0},
    {"name": "hour", "size": 24, "dim": 4, "col": 1},
]
FEATURE_DIM = DENSE_DIM + sum(f["dim"] for f in SPARSE_CONFIG)  # = 12
HEAD_DIM = 5
HEAD_PAD = 128      # lane-dense arrival head output (wrapper slices back to 5)
SUBLANE = 8


def _round_up(x, m):
    return ((x + m - 1) // m) * m


# -------------------------- fused two-stream kernel ---------------------------
def _fused_recurrent_kernel(
        xl_ref, ml_ref, xc_ref, mc_ref,
        # link-stream params
        lwlin_ref, lblin_ref, lwih1_ref, lwhh1_ref, lb1_ref,
        lwih2_ref, lwhh2_ref, lb2_ref,
        # cross-stream params
        cwlin_ref, cblin_ref, cwih1_ref, cwhh1_ref, cb1_ref,
        cwih2_ref, cwhh2_ref, cb2_ref,
        # arrival head (lane-padded)
        whead_ref, bhead_ref,
        # outputs
        hTl_ref, hTc_ref, arr_ref,
        # scratch
        hbuf_ref,
        *, t_link, t_cross, bp, hidden):
    H = hidden
    Bp = bp

    # ---- hoisted, time-invariant matmuls (off the serial chain) -------------
    # linear(+ReLU) projection on the whole (T*Bp, Dfeat) slab
    xp_l = jnp.maximum(
        jnp.dot(xl_ref[...], lwlin_ref[...], preferred_element_type=jnp.float32)
        + lblin_ref[...], 0.0)                                     # (Tl*Bp, H)
    # layer-1 input-gate contribution, also time-invariant
    g1x_l = (jnp.dot(xp_l, lwih1_ref[...], preferred_element_type=jnp.float32)
             + lb1_ref[...])                                       # (Tl*Bp, 4H)

    xp_c = jnp.maximum(
        jnp.dot(xc_ref[...], cwlin_ref[...], preferred_element_type=jnp.float32)
        + cblin_ref[...], 0.0)                                     # (Tc*Bp, H)
    g1x_c = (jnp.dot(xp_c, cwih1_ref[...], preferred_element_type=jnp.float32)
             + cb1_ref[...])                                       # (Tc*Bp, 4H)

    def lstm_step(g1x_row, m, h1, c1, h2, c2,
                  whh1_ref, wih2_ref, whh2_ref, b2_ref):
        # layer 1: only the recurrent matmul remains on the chain
        g1 = g1x_row + jnp.dot(h1, whh1_ref[...],
                               preferred_element_type=jnp.float32)  # (Bp, 4H)
        s1 = jax.nn.sigmoid(g1)       # one EUP pass on the full 128-lane vreg
        t1 = jnp.tanh(g1)             # one EUP pass
        c1n = s1[:, H:2 * H] * c1 + s1[:, 0:H] * t1[:, 2 * H:3 * H]
        h1n = s1[:, 3 * H:4 * H] * jnp.tanh(c1n)
        h1 = jnp.where(m, h1n, h1)    # freeze state past the sequence length
        c1 = jnp.where(m, c1n, c1)

        # layer 2 (input is layer-1 output, cannot be hoisted)
        # TODO(synk): inter-layer dropout p=0.1 is train-only; eval == identity.
        g2 = (jnp.dot(h1, wih2_ref[...], preferred_element_type=jnp.float32)
              + jnp.dot(h2, whh2_ref[...], preferred_element_type=jnp.float32)
              + b2_ref[...])
        s2 = jax.nn.sigmoid(g2)
        t2 = jnp.tanh(g2)
        c2n = s2[:, H:2 * H] * c2 + s2[:, 0:H] * t2[:, 2 * H:3 * H]
        h2n = s2[:, 3 * H:4 * H] * jnp.tanh(c2n)
        h2 = jnp.where(m, h2n, h2)
        c2 = jnp.where(m, c2n, c2)
        return h1, c1, h2, c2

    z = jnp.zeros((Bp, H), jnp.float32)
    h1l, c1l, h2l, c2l = z, z, z, z
    h1c, c1c, h2c, c2c = z, z, z, z

    # Statically unrolled time loop; link and cross steps are interleaved so
    # their two independent dependence chains can overlap on one TensorCore.
    for t in range(max(t_link, t_cross)):
        if t < t_link:
            ml = ml_ref[t * Bp:(t + 1) * Bp, :] > 0.0               # (Bp, 1)
            h1l, c1l, h2l, c2l = lstm_step(
                g1x_l[t * Bp:(t + 1) * Bp, :], ml, h1l, c1l, h2l, c2l,
                lwhh1_ref, lwih2_ref, lwhh2_ref, lb2_ref)
            # stash layer-2 output for the hoisted arrival head
            hbuf_ref[t * Bp:(t + 1) * Bp, :] = h2l
        if t < t_cross:
            mc = mc_ref[t * Bp:(t + 1) * Bp, :] > 0.0
            h1c, c1c, h2c, c2c = lstm_step(
                g1x_c[t * Bp:(t + 1) * Bp, :], mc, h1c, c1c, h2c, c2c,
                cwhh1_ref, cwih2_ref, cwhh2_ref, cb2_ref)

    # final hidden state (mask froze the state at t = len[b]-1 for each row)
    hTl_ref[...] = h2l
    hTc_ref[...] = h2c

    # hoisted arrival head: one lane-dense matmul + one unmasked store;
    # padded rows are zeroed (pad_packed_sequence semantics) via the mask.
    arr = (jnp.dot(hbuf_ref[...], whead_ref[...],
                   preferred_element_type=jnp.float32) + bhead_ref[...])
    arr_ref[...] = arr * ml_ref[...]


def _full_spec(shape):
    n = len(shape)
    return pl.BlockSpec(shape, lambda *_: (0,) * n)


def fused_recurrent_pallas(xl, ml, xc, mc, link_p, cross_p, head_w, head_b,
                           t_link, t_cross, bp):
    """Single fused pallas_call covering both streams + arrival head."""
    H = HIDDEN_DIM
    Pp = head_w.shape[1]

    inputs = [
        xl, ml, xc, mc,
        link_p["lin_w"], link_p["lin_b"],
        link_p["w_ih1"], link_p["w_hh1"], link_p["b1"],
        link_p["w_ih2"], link_p["w_hh2"], link_p["b2"],
        cross_p["lin_w"], cross_p["lin_b"],
        cross_p["w_ih1"], cross_p["w_hh1"], cross_p["b1"],
        cross_p["w_ih2"], cross_p["w_hh2"], cross_p["b2"],
        head_w, head_b,
    ]
    in_specs = [_full_spec(tuple(a.shape)) for a in inputs]

    out_shape = (
        jax.ShapeDtypeStruct((bp, H), jnp.float32),            # hT link
        jax.ShapeDtypeStruct((bp, H), jnp.float32),            # hT cross
        jax.ShapeDtypeStruct((t_link * bp, Pp), jnp.float32),  # arrival head
    )
    out_specs = (
        _full_spec((bp, H)),
        _full_spec((bp, H)),
        _full_spec((t_link * bp, Pp)),
    )

    kernel = functools.partial(_fused_recurrent_kernel, t_link=t_link,
                               t_cross=t_cross, bp=bp, hidden=H)

    return pl.pallas_call(
        kernel,
        out_shape=out_shape,
        grid=(1,),
        in_specs=in_specs,
        out_specs=out_specs,
        scratch_shapes=[pltpu.VMEM((t_link * bp, H), jnp.float32)],
        compiler_params=pltpu.CompilerParams(
            dimension_semantics=("arbitrary",)),
    )(*inputs)


# ------------------------------ glue ------------------------------------------
def packed_order(lengths):
    """Reproduce pack_padded_sequence(enforce_sorted=False) data ordering."""
    lengths = np.asarray(lengths)
    sorted_idx = np.argsort(-lengths, kind="stable")
    order = []
    for t in range(int(lengths.max())):
        for b in sorted_idx:
            if lengths[b] > t:
                order.append((int(b), t))
    return np.array(order, dtype=np.int32)  # (sum(len), 2) = (batch, time)


def _prep_stream(lin_w, lin_b, layers, d_pad):
    """Kernel-ready parameter dict for one stream (feature dim zero-padded)."""
    din = lin_w.shape[0]
    l0, l1 = layers
    return {
        "lin_w": jnp.pad(lin_w, ((0, d_pad - din), (0, 0))),
        "lin_b": lin_b.reshape(1, HIDDEN_DIM),
        "w_ih1": l0["w_ih"], "w_hh1": l0["w_hh"], "b1": l0["b"],
        "w_ih2": l1["w_ih"], "w_hh2": l1["w_hh"], "b2": l1["b"],
    }


def recurrent_forward(params, seq_dense, seq_sparse, link_id, link_len,
                      cross_id_start, cross_id_end, cross_dense, cross_len):
    B = seq_dense.shape[0]
    t_link = seq_dense.shape[1]
    t_cross = cross_dense.shape[1]
    bp = _round_up(max(B, SUBLANE), SUBLANE)       # batch padded to sublanes

    # --- embeddings + concatenation (glue) ---
    sparse_feats = []
    for feat in SPARSE_CONFIG:
        table = params["embedding_" + feat["name"]]
        sparse_feats.append(jnp.take(table, seq_sparse[..., feat["col"]], axis=0))
    sparse_feature = jnp.concatenate(sparse_feats, axis=-1)

    embed = jnp.take(params["link_embedding"], link_id, axis=0)
    emb_cs = jnp.take(params["link_embedding"], cross_id_start, axis=0)
    emb_ce = jnp.take(params["link_embedding"], cross_id_end, axis=0)

    seq = jnp.concatenate([seq_dense, embed, sparse_feature], axis=-1)   # (B,Tl,20)
    cross = jnp.concatenate([cross_dense, emb_cs, emb_ce], axis=-1)      # (B,Tc,17)

    dl_pad = _round_up(seq.shape[-1], SUBLANE)
    dc_pad = _round_up(cross.shape[-1], SUBLANE)

    def to_flat(x_btd, d_pad):
        b, t, d = x_btd.shape
        x = jnp.pad(x_btd, ((0, bp - b), (0, 0), (0, d_pad - d)))
        x = jnp.transpose(x, (1, 0, 2))            # time-major (T, Bp, Dpad)
        return x.reshape(t * bp, d_pad)

    xl = to_flat(seq, dl_pad)
    xc = to_flat(cross, dc_pad)

    # validity masks (lengths are concrete host values, as packed_order needs)
    def make_mask(lengths, t, b_real):
        lengths = np.asarray(lengths)
        m = np.zeros((t, bp), np.float32)
        for bi in range(b_real):
            m[:int(lengths[bi]), bi] = 1.0
        return jnp.asarray(m.reshape(t * bp, 1))

    ml = make_mask(link_len, t_link, B)
    mc = make_mask(cross_len, t_cross, B)

    link_p = _prep_stream(params["linear_link_w"], params["linear_link_b"],
                          params["lstm_link"], dl_pad)
    cross_p = _prep_stream(params["linear_cross_w"], params["linear_cross_b"],
                           params["lstm_cross"], dc_pad)

    # lane-pad the arrival head so the kernel's single store is unmasked
    head_w = jnp.zeros((HIDDEN_DIM, HEAD_PAD), jnp.float32).at[:, :HEAD_DIM].set(
        params["head_w"])
    head_b = jnp.zeros((1, HEAD_PAD), jnp.float32).at[:, :HEAD_DIM].set(
        params["head_b"])

    hTl, hTc, arr_flat = fused_recurrent_pallas(
        xl, ml, xc, mc, link_p, cross_p, head_w, head_b, t_link, t_cross, bp)

    # --- packed-sequence row gather (host glue, matches pack_padded_sequence) --
    arr_tm = arr_flat.reshape(t_link, bp, HEAD_PAD)[:, :B, :HEAD_DIM]
    order = packed_order(link_len)
    arrival_pred = arr_tm[order[:, 1], order[:, 0], :]                   # (sum(len), 5)

    hidden = jnp.concatenate([hTl[:B], hTc[:B]], axis=-1)                # (B, 2H)
    return hidden, arrival_pred


# --------------------------- parameter init ------------------------------------
def init_params(key):
    keys = iter(jax.random.split(key, 64))

    def nrm(shape, scale=0.1):
        return scale * jax.random.normal(next(keys), shape, dtype=jnp.float32)

    params = {}
    for feat in SPARSE_CONFIG:
        params["embedding_" + feat["name"]] = nrm((feat["size"], feat["dim"]))
    params["link_embedding"] = nrm((LINK_NUM, EMBEDDING_DIM))
    params["linear_link_w"] = nrm((EMBEDDING_DIM + FEATURE_DIM, HIDDEN_DIM))
    params["linear_link_b"] = nrm((HIDDEN_DIM,))
    params["linear_cross_w"] = nrm((2 * EMBEDDING_DIM + 1, HIDDEN_DIM))
    params["linear_cross_b"] = nrm((HIDDEN_DIM,))

    def lstm_layer(din):
        # fused gate layout: columns are [i | f | g | o], each HIDDEN_DIM wide;
        # b = b_ih + b_hh folded together.  (Din, 4H) = transpose of nn.LSTM.
        return {"w_ih": nrm((din, 4 * HIDDEN_DIM)),
                "w_hh": nrm((HIDDEN_DIM, 4 * HIDDEN_DIM)),
                "b": nrm((1, 4 * HIDDEN_DIM))}

    params["lstm_link"] = [lstm_layer(HIDDEN_DIM), lstm_layer(HIDDEN_DIM)]
    params["lstm_cross"] = [lstm_layer(HIDDEN_DIM), lstm_layer(HIDDEN_DIM)]
    params["head_w"] = nrm((HIDDEN_DIM, HEAD_DIM))
    params["head_b"] = nrm((HEAD_DIM,))
    return params


# -------------------------------- main -----------------------------------------
if __name__ == "__main__":
    B, T_LINK, T_CROSS = 2, 8, 6

    key = jax.random.PRNGKey(0)
    inp_key, param_key = jax.random.split(key)
    ks = iter(jax.random.split(inp_key, 16))

    seq_dense = jax.random.normal(next(ks), (B, T_LINK, DENSE_DIM), dtype=jnp.float32)
    seq_sparse = jnp.stack(
        [jax.random.randint(next(ks), (B, T_LINK), 0, SPARSE_CONFIG[0]["size"]),
         jax.random.randint(next(ks), (B, T_LINK), 0, SPARSE_CONFIG[1]["size"])],
        axis=-1).astype(jnp.int32)
    link_id = jax.random.randint(next(ks), (B, T_LINK), 0, LINK_NUM).astype(jnp.int32)
    cross_id_start = jax.random.randint(next(ks), (B, T_CROSS), 0, LINK_NUM).astype(jnp.int32)
    cross_id_end = jax.random.randint(next(ks), (B, T_CROSS), 0, LINK_NUM).astype(jnp.int32)
    cross_dense = jax.random.normal(next(ks), (B, T_CROSS, 1), dtype=jnp.float32)
    link_len = np.array([8, 5], dtype=np.int32)
    cross_len = np.array([6, 4], dtype=np.int32)

    params = init_params(param_key)

    hidden, arrival_pred = recurrent_forward(
        params, seq_dense, seq_sparse, link_id, link_len,
        cross_id_start, cross_id_end, cross_dense, cross_len)
    jax.block_until_ready((hidden, arrival_pred))

    assert hidden.shape == (B, 2 * HIDDEN_DIM)
    assert arrival_pred.shape == (int(link_len.sum()), HEAD_DIM)
    assert bool(jnp.all(jnp.isfinite(hidden))) and bool(jnp.all(jnp.isfinite(arrival_pred)))
    print("KERNEL_OK")
</pallas_src>

<mosaic_0001>
module attributes {stable_mosaic.version = 11 : i64} {
  func.func @_fused_recurrent_kernel(%arg0: i32, %arg1: memref<64x24xf32, #tpu.memory_space<vmem>>, %arg2: memref<64x1xf32, #tpu.memory_space<vmem>>, %arg3: memref<48x24xf32, #tpu.memory_space<vmem>>, %arg4: memref<48x1xf32, #tpu.memory_space<vmem>>, %arg5: memref<24x32xf32, #tpu.memory_space<vmem>>, %arg6: memref<1x32xf32, #tpu.memory_space<vmem>>, %arg7: memref<32x128xf32, #tpu.memory_space<vmem>>, %arg8: memref<32x128xf32, #tpu.memory_space<vmem>>, %arg9: memref<1x128xf32, #tpu.memory_space<vmem>>, %arg10: memref<32x128xf32, #tpu.memory_space<vmem>>, %arg11: memref<32x128xf32, #tpu.memory_space<vmem>>, %arg12: memref<1x128xf32, #tpu.memory_space<vmem>>, %arg13: memref<24x32xf32, #tpu.memory_space<vmem>>, %arg14: memref<1x32xf32, #tpu.memory_space<vmem>>, %arg15: memref<32x128xf32, #tpu.memory_space<vmem>>, %arg16: memref<32x128xf32, #tpu.memory_space<vmem>>, %arg17: memref<1x128xf32, #tpu.memory_space<vmem>>, %arg18: memref<32x128xf32, #tpu.memory_space<vmem>>, %arg19: memref<32x128xf32, #tpu.memory_space<vmem>>, %arg20: memref<1x128xf32, #tpu.memory_space<vmem>>, %arg21: memref<32x128xf32, #tpu.memory_space<vmem>>, %arg22: memref<1x128xf32, #tpu.memory_space<vmem>>, %arg23: memref<8x32xf32, #tpu.memory_space<vmem>>, %arg24: memref<8x32xf32, #tpu.memory_space<vmem>>, %arg25: memref<64x128xf32, #tpu.memory_space<vmem>>, %arg26: memref<64x32xf32, #tpu.memory_space<vmem>>) attributes {dimension_semantics = [#tpu.dimension_semantics<arbitrary>], iteration_bounds = array<i64: 1>, scalar_prefetch = 0 : i64, scratch_operands = 1 : i64, tpu.core_type = #tpu.core_type<tc>, window_params = [{pipeline_mode = #tpu.pipeline_mode<synchronous>, transform_indices = @transform_0, window_bounds = array<i64: 64, 24>}, {pipeline_mode = #tpu.pipeline_mode<synchronous>, transform_indices = @transform_1, window_bounds = array<i64: 64, 1>}, {pipeline_mode = #tpu.pipeline_mode<synchronous>, transform_indices = @transform_2, window_bounds = array<i64: 48, 24>}, {pipeline_mode = #tpu.pipeline_mode<synchronous>, transform_indices = @transform_3, window_bounds = array<i64: 48, 1>}, {pipeline_mode = #tpu.pipeline_mode<synchronous>, transform_indices = @transform_4, window_bounds = array<i64: 24, 32>}, {pipeline_mode = #tpu.pipeline_mode<synchronous>, transform_indices = @transform_5, window_bounds = array<i64: 1, 32>}, {pipeline_mode = #tpu.pipeline_mode<synchronous>, transform_indices = @transform_6, window_bounds = array<i64: 32, 128>}, {pipeline_mode = #tpu.pipeline_mode<synchronous>, transform_indices = @transform_7, window_bounds = array<i64: 32, 128>}, {pipeline_mode = #tpu.pipeline_mode<synchronous>, transform_indices = @transform_8, window_bounds = array<i64: 1, 128>}, {pipeline_mode = #tpu.pipeline_mode<synchronous>, transform_indices = @transform_9, window_bounds = array<i64: 32, 128>}, {pipeline_mode = #tpu.pipeline_mode<synchronous>, transform_indices = @transform_10, window_bounds = array<i64: 32, 128>}, {pipeline_mode = #tpu.pipeline_mode<synchronous>, transform_indices = @transform_11, window_bounds = array<i64: 1, 128>}, {pipeline_mode = #tpu.pipeline_mode<synchronous>, transform_indices = @transform_12, window_bounds = array<i64: 24, 32>}, {pipeline_mode = #tpu.pipeline_mode<synchronous>, transform_indices = @transform_13, window_bounds = array<i64: 1, 32>}, {pipeline_mode = #tpu.pipeline_mode<synchronous>, transform_indices = @transform_14, window_bounds = array<i64: 32, 128>}, {pipeline_mode = #tpu.pipeline_mode<synchronous>, transform_indices = @transform_15, window_bounds = array<i64: 32, 128>}, {pipeline_mode = #tpu.pipeline_mode<synchronous>, transform_indices = @transform_16, window_bounds = array<i64: 1, 128>}, {pipeline_mode = #tpu.pipeline_mode<synchronous>, transform_indices = @transform_17, window_bounds = array<i64: 32, 128>}, {pipeline_mode = #tpu.pipeline_mode<synchronous>, transform_indices = @transform_18, window_bounds = array<i64: 32, 128>}, {pipeline_mode = #tpu.pipeline_mode<synchronous>, transform_indices = @transform_19, window_bounds = array<i64: 1, 128>}, {pipeline_mode = #tpu.pipeline_mode<synchronous>, transform_indices = @transform_20, window_bounds = array<i64: 32, 128>}, {pipeline_mode = #tpu.pipeline_mode<synchronous>, transform_indices = @transform_21, window_bounds = array<i64: 1, 128>}, {pipeline_mode = #tpu.pipeline_mode<synchronous>, transform_indices = @transform_22, window_bounds = array<i64: 8, 32>}, {pipeline_mode = #tpu.pipeline_mode<synchronous>, transform_indices = @transform_23, window_bounds = array<i64: 8, 32>}, {pipeline_mode = #tpu.pipeline_mode<synchronous>, transform_indices = @transform_24, window_bounds = array<i64: 64, 128>}]} {
    %c0 = arith.constant 0 : index
    %c0_0 = arith.constant 0 : index
    %0 = vector.load %arg1[%c0, %c0_0] : memref<64x24xf32, #tpu.memory_space<vmem>>, vector<64x24xf32>
    %c0_1 = arith.constant 0 : index
    %c0_2 = arith.constant 0 : index
    %1 = vector.load %arg5[%c0_1, %c0_2] : memref<24x32xf32, #tpu.memory_space<vmem>>, vector<24x32xf32>
    %cst = arith.constant dense<0.000000e+00> : vector<64x32xf32>
    %2 = tpu.matmul %0, %1, %cst {dimension_numbers = #tpu.dot_dimension_numbers<[1], [0], [0], [1], [0, 0, 1, 1], [], []>} : vector<64x24xf32>, vector<24x32xf32>, vector<64x32xf32> -> vector<64x32xf32>
    %c0_3 = arith.constant 0 : index
    %c0_4 = arith.constant 0 : index
    %3 = vector.load %arg6[%c0_3, %c0_4] : memref<1x32xf32, #tpu.memory_space<vmem>>, vector<1x32xf32>
    %4 = vector.broadcast %3 : vector<1x32xf32> to vector<64x32xf32>
    %5 = arith.addf %2, %4 : vector<64x32xf32>
    %cst_5 = arith.constant 0.000000e+00 : f32
    %6 = vector.broadcast %cst_5 : f32 to vector<64x32xf32>
    %7 = arith.maximumf %5, %6 : vector<64x32xf32>
    %c0_6 = arith.constant 0 : index
    %c0_7 = arith.constant 0 : index
    %8 = vector.load %arg7[%c0_6, %c0_7] : memref<32x128xf32, #tpu.memory_space<vmem>>, vector<32x128xf32>
    %cst_8 = arith.constant dense<0.000000e+00> : vector<64x128xf32>
    %9 = tpu.matmul %7, %8, %cst_8 {dimension_numbers = #tpu.dot_dimension_numbers<[1], [0], [0], [1], [0, 0, 1, 1], [], []>} : vector<64x32xf32>, vector<32x128xf32>, vector<64x128xf32> -> vector<64x128xf32>
    %c0_9 = arith.constant 0 : index
    %c0_10 = arith.constant 0 : index
    %10 = vector.load %arg9[%c0_9, %c0_10] : memref<1x128xf32, #tpu.memory_space<vmem>>, vector<1x128xf32>
    %11 = vector.broadcast %10 : vector<1x128xf32> to vector<64x128xf32>
    %12 = arith.addf %9, %11 : vector<64x128xf32>
    %c0_11 = arith.constant 0 : index
    %c0_12 = arith.constant 0 : index
    %13 = vector.load %arg3[%c0_11, %c0_12] : memref<48x24xf32, #tpu.memory_space<vmem>>, vector<48x24xf32>
    %c0_13 = arith.constant 0 : index
    %c0_14 = arith.constant 0 : index
    %14 = vector.load %arg13[%c0_13, %c0_14] : memref<24x32xf32, #tpu.memory_space<vmem>>, vector<24x32xf32>
    %cst_15 = arith.constant dense<0.000000e+00> : vector<48x32xf32>
    %15 = tpu.matmul %13, %14, %cst_15 {dimension_numbers = #tpu.dot_dimension_numbers<[1], [0], [0], [1], [0, 0, 1, 1], [], []>} : vector<48x24xf32>, vector<24x32xf32>, vector<48x32xf32> -> vector<48x32xf32>
    %c0_16 = arith.constant 0 : index
    %c0_17 = arith.constant 0 : index
    %16 = vector.load %arg14[%c0_16, %c0_17] : memref<1x32xf32, #tpu.memory_space<vmem>>, vector<1x32xf32>
    %17 = vector.broadcast %16 : vector<1x32xf32> to vector<48x32xf32>
    %18 = arith.addf %15, %17 : vector<48x32xf32>
    %cst_18 = arith.constant 0.000000e+00 : f32
    %19 = vector.broadcast %cst_18 : f32 to vector<48x32xf32>
    %20 = arith.maximumf %18, %19 : vector<48x32xf32>
    %c0_19 = arith.constant 0 : index
    %c0_20 = arith.constant 0 : index
    %21 = vector.load %arg15[%c0_19, %c0_20] : memref<32x128xf32, #tpu.memory_space<vmem>>, vector<32x128xf32>
    %cst_21 = arith.constant dense<0.000000e+00> : vector<48x128xf32>
    %22 = tpu.matmul %20, %21, %cst_21 {dimension_numbers = #tpu.dot_dimension_numbers<[1], [0], [0], [1], [0, 0, 1, 1], [], []>} : vector<48x32xf32>, vector<32x128xf32>, vector<48x128xf32> -> vector<48x128xf32>
    %c0_22 = arith.constant 0 : index
    %c0_23 = arith.constant 0 : index
    %23 = vector.load %arg17[%c0_22, %c0_23] : memref<1x128xf32, #tpu.memory_space<vmem>>, vector<1x128xf32>
    %24 = vector.broadcast %23 : vector<1x128xf32> to vector<48x128xf32>
    %25 = arith.addf %22, %24 : vector<48x128xf32>
    %cst_24 = arith.constant 0.000000e+00 : f32
    %26 = vector.broadcast %cst_24 : f32 to vector<8x32xf32>
    %c0_25 = arith.constant 0 : index
    %c0_26 = arith.constant 0 : index
    %27 = vector.load %arg2[%c0_25, %c0_26] : memref<64x1xf32, #tpu.memory_space<vmem>>, vector<8x1xf32>
    %cst_27 = arith.constant 0.000000e+00 : f32
    %28 = vector.broadcast %cst_27 : f32 to vector<8x1xf32>
    %29 = arith.cmpf ogt, %27, %28 : vector<8x1xf32>
    %30 = vector.extract_strided_slice %12 {offsets = [0, 0], sizes = [8, 128], strides = [1, 1]} : vector<64x128xf32> to vector<8x128xf32>
    %c0_28 = arith.constant 0 : index
    %c0_29 = arith.constant 0 : index
    %31 = vector.load %arg8[%c0_28, %c0_29] : memref<32x128xf32, #tpu.memory_space<vmem>>, vector<32x128xf32>
    %cst_30 = arith.constant dense<0.000000e+00> : vector<8x128xf32>
    %32 = tpu.matmul %26, %31, %cst_30 {dimension_numbers = #tpu.dot_dimension_numbers<[1], [0], [0], [1], [0, 0, 1, 1], [], []>} : vector<8x32xf32>, vector<32x128xf32>, vector<8x128xf32> -> vector<8x128xf32>
    %33 = arith.addf %30, %32 : vector<8x128xf32>
    %34 = arith.negf %33 : vector<8x128xf32>
    %35 = math.exp %34 : vector<8x128xf32>
    %cst_31 = arith.constant 1.000000e+00 : f32
    %36 = vector.broadcast %cst_31 : f32 to vector<8x128xf32>
    %37 = arith.addf %36, %35 : vector<8x128xf32>
    %38 = arith.divf %36, %37 : vector<8x128xf32>
    %39 = math.tanh %33 : vector<8x128xf32>
    %40 = vector.extract_strided_slice %38 {offsets = [0, 32], sizes = [8, 32], strides = [1, 1]} : vector<8x128xf32> to vector<8x32xf32>
    %41 = arith.mulf %40, %26 : vector<8x32xf32>
    %42 = vector.extract_strided_slice %38 {offsets = [0, 0], sizes = [8, 32], strides = [1, 1]} : vector<8x128xf32> to vector<8x32xf32>
    %43 = vector.extract_strided_slice %39 {offsets = [0, 64], sizes = [8, 32], strides = [1, 1]} : vector<8x128xf32> to vector<8x32xf32>
    %44 = arith.mulf %42, %43 : vector<8x32xf32>
    %45 = arith.addf %41, %44 : vector<8x32xf32>
    %46 = vector.extract_strided_slice %38 {offsets = [0, 96], sizes = [8, 32], strides = [1, 1]} : vector<8x128xf32> to vector<8x32xf32>
    %47 = math.tanh %45 : vector<8x32xf32>
    %48 = arith.mulf %46, %47 : vector<8x32xf32>
    %49 = vector.shape_cast %29 : vector<8x1xi1> to vector<8x1xi1>
    %50 = vector.broadcast %49 : vector<8x1xi1> to vector<8x32xi1>
    %51 = arith.select %50, %48, %26 : vector<8x32xi1>, vector<8x32xf32>
    %52 = vector.shape_cast %29 : vector<8x1xi1> to vector<8x1xi1>
    %53 = vector.broadcast %52 : vector<8x1xi1> to vector<8x32xi1>
    %54 = arith.select %53, %45, %26 : vector<8x32xi1>, vector<8x32xf32>
    %c0_32 = arith.constant 0 : index
    %c0_33 = arith.constant 0 : index
    %55 = vector.load %arg10[%c0_32, %c0_33] : memref<32x128xf32, #tpu.memory_space<vmem>>, vector<32x128xf32>
    %cst_34 = arith.constant dense<0.000000e+00> : vector<8x128xf32>
    %56 = tpu.matmul %51, %55, %cst_34 {dimension_numbers = #tpu.dot_dimension_numbers<[1], [0], [0], [1], [0, 0, 1, 1], [], []>} : vector<8x32xf32>, vector<32x128xf32>, vector<8x128xf32> -> vector<8x128xf32>
    %c0_35 = arith.constant 0 : index
    %c0_36 = arith.constant 0 : index
    %57 = vector.load %arg11[%c0_35, %c0_36] : memref<32x128xf32, #tpu.memory_space<vmem>>, vector<32x128xf32>
    %cst_37 = arith.constant dense<0.000000e+00> : vector<8x128xf32>
    %58 = tpu.matmul %26, %57, %cst_37 {dimension_numbers = #tpu.dot_dimension_numbers<[1], [0], [0], [1], [0, 0, 1, 1], [], []>} : vector<8x32xf32>, vector<32x128xf32>, vector<8x128xf32> -> vector<8x128xf32>
    %59 = arith.addf %56, %58 : vector<8x128xf32>
    %c0_38 = arith.constant 0 : index
    %c0_39 = arith.constant 0 : index
    %60 = vector.load %arg12[%c0_38, %c0_39] : memref<1x128xf32, #tpu.memory_space<vmem>>, vector<1x128xf32>
    %61 = vector.broadcast %60 : vector<1x128xf32> to vector<8x128xf32>
    %62 = arith.addf %59, %61 : vector<8x128xf32>
    %63 = arith.negf %62 : vector<8x128xf32>
    %64 = math.exp %63 : vector<8x128xf32>
    %cst_40 = arith.constant 1.000000e+00 : f32
    %65 = vector.broadcast %cst_40 : f32 to vector<8x128xf32>
    %66 = arith.addf %65, %64 : vector<8x128xf32>
    %67 = arith.divf %65, %66 : vector<8x128xf32>
    %68 = math.tanh %62 : vector<8x128xf32>
    %69 = vector.extract_strided_slice %67 {offsets = [0, 32], sizes = [8, 32], strides = [1, 1]} : vector<8x128xf32> to vector<8x32xf32>
    %70 = arith.mulf %69, %26 : vector<8x32xf32>
    %71 = vector.extract_strided_slice %67 {offsets = [0, 0], sizes = [8, 32], strides = [1, 1]} : vector<8x128xf32> to vector<8x32xf32>
    %72 = vector.extract_strided_slice %68 {offsets = [0, 64], sizes = [8, 32], strides = [1, 1]} : vector<8x128xf32> to vector<8x32xf32>
    %73 = arith.mulf %71, %72 : vector<8x32xf32>
    %74 = arith.addf %70, %73 : vector<8x32xf32>
    %75 = vector.extract_strided_slice %67 {offsets = [0, 96], sizes = [8, 32], strides = [1, 1]} : vector<8x128xf32> to vector<8x32xf32>
    %76 = math.tanh %74 : vector<8x32xf32>
    %77 = arith.mulf %75, %76 : vector<8x32xf32>
    %78 = vector.shape_cast %29 : vector<8x1xi1> to vector<8x1xi1>
    %79 = vector.broadcast %78 : vector<8x1xi1> to vector<8x32xi1>
    %80 = arith.select %79, %77, %26 : vector<8x32xi1>, vector<8x32xf32>
    %81 = vector.shape_cast %29 : vector<8x1xi1> to vector<8x1xi1>
    %82 = vector.broadcast %81 : vector<8x1xi1> to vector<8x32xi1>
    %83 = arith.select %82, %74, %26 : vector<8x32xi1>, vector<8x32xf32>
    %c0_41 = arith.constant 0 : index
    %c0_42 = arith.constant 0 : index
    %84 = vector.load %arg26[%c0_41, %c0_42] : memref<64x32xf32, #tpu.memory_space<vmem>>, vector<8x32xf32>
    tpu.vector_store %arg26[%c0_41, %c0_42], %80 {strides = array<i32>} : memref<64x32xf32, #tpu.memory_space<vmem>>, vector<8x32xf32>,
    %c0_43 = arith.constant 0 : index
    %c0_44 = arith.constant 0 : index
    %85 = vector.load %arg4[%c0_43, %c0_44] : memref<48x1xf32, #tpu.memory_space<vmem>>, vector<8x1xf32>
    %cst_45 = arith.constant 0.000000e+00 : f32
    %86 = vector.broadcast %cst_45 : f32 to vector<8x1xf32>
    %87 = arith.cmpf ogt, %85, %86 : vector<8x1xf32>
    %88 = vector.extract_strided_slice %25 {offsets = [0, 0], sizes = [8, 128], strides = [1, 1]} : vector<48x128xf32> to vector<8x128xf32>
    %c0_46 = arith.constant 0 : index
    %c0_47 = arith.constant 0 : index
    %89 = vector.load %arg16[%c0_46, %c0_47] : memref<32x128xf32, #tpu.memory_space<vmem>>, vector<32x128xf32>
    %cst_48 = arith.constant dense<0.000000e+00> : vector<8x128xf32>
    %90 = tpu.matmul %26, %89, %cst_48 {dimension_numbers = #tpu.dot_dimension_numbers<[1], [0], [0], [1], [0, 0, 1, 1], [], []>} : vector<8x32xf32>, vector<32x128xf32>, vector<8x128xf32> -> vector<8x128xf32>
    %91 = arith.addf %88, %90 : vector<8x128xf32>
    %92 = arith.negf %91 : vector<8x128xf32>
    %93 = math.exp %92 : vector<8x128xf32>
    %cst_49 = arith.constant 1.000000e+00 : f32
    %94 = vector.broadcast %cst_49 : f32 to vector<8x128xf32>
    %95 = arith.addf %94, %93 : vector<8x128xf32>
    %96 = arith.divf %94, %95 : vector<8x128xf32>
    %97 = math.tanh %91 : vector<8x128xf32>
    %98 = vector.extract_strided_slice %96 {offsets = [0, 32], sizes = [8, 32], strides = [1, 1]} : vector<8x128xf32> to vector<8x32xf32>
    %99 = arith.mulf %98, %26 : vector<8x32xf32>
    %100 = vector.extract_strided_slice %96 {offsets = [0, 0], sizes = [8, 32], strides = [1, 1]} : vector<8x128xf32> to vector<8x32xf32>
    %101 = vector.extract_strided_slice %97 {offsets = [0, 64], sizes = [8, 32], strides = [1, 1]} : vector<8x128xf32> to vector<8x32xf32>
    %102 = arith.mulf %100, %101 : vector<8x32xf32>
    %103 = arith.addf %99, %102 : vector<8x32xf32>
    %104 = vector.extract_strided_slice %96 {offsets = [0, 96], sizes = [8, 32], strides = [1, 1]} : vector<8x128xf32> to vector<8x32xf32>
    %105 = math.tanh %103 : vector<8x32xf32>
    %106 = arith.mulf %104, %105 : vector<8x32xf32>
    %107 = vector.shape_cast %87 : vector<8x1xi1> to vector<8x1xi1>
    %108 = vector.broadcast %107 : vector<8x1xi1> to vector<8x32xi1>
    %109 = arith.select %108, %106, %26 : vector<8x32xi1>, vector<8x32xf32>
    %110 = vector.shape_cast %87 : vector<8x1xi1> to vector<8x1xi1>
    %111 = vector.broadcast %110 : vector<8x1xi1> to vector<8x32xi1>
    %112 = arith.select %111, %103, %26 : vector<8x32xi1>, vector<8x32xf32>
    %c0_50 = arith.constant 0 : index
    %c0_51 = arith.constant 0 : index
    %113 = vector.load %arg18[%c0_50, %c0_51] : memref<32x128xf32, #tpu.memory_space<vmem>>, vector<32x128xf32>
    %cst_52 = arith.constant dense<0.000000e+00> : vector<8x128xf32>
    %114 = tpu.matmul %109, %113, %cst_52 {dimension_numbers = #tpu.dot_dimension_numbers<[1], [0], [0], [1], [0, 0, 1, 1], [], []>} : vector<8x32xf32>, vector<32x128xf32>, vector<8x128xf32> -> vector<8x128xf32>
    %c0_53 = arith.constant 0 : index
    %c0_54 = arith.constant 0 : index
    %115 = vector.load %arg19[%c0_53, %c0_54] : memref<32x128xf32, #tpu.memory_space<vmem>>, vector<32x128xf32>
    %cst_55 = arith.constant dense<0.000000e+00> : vector<8x128xf32>
    %116 = tpu.matmul %26, %115, %cst_55 {dimension_numbers = #tpu.dot_dimension_numbers<[1], [0], [0], [1], [0, 0, 1, 1], [], []>} : vector<8x32xf32>, vector<32x128xf32>, vector<8x128xf32> -> vector<8x128xf32>
    %117 = arith.addf %114, %116 : vector<8x128xf32>
    %c0_56 = arith.constant 0 : index
    %c0_57 = arith.constant 0 : index
    %118 = vector.load %arg20[%c0_56, %c0_57] : memref<1x128xf32, #tpu.memory_space<vmem>>, vector<1x128xf32>
    %119 = vector.broadcast %118 : vector<1x128xf32> to vector<8x128xf32>
    %120 = arith.addf %117, %119 : vector<8x128xf32>
    %121 = arith.negf %120 : vector<8x128xf32>
    %122 = math.exp %121 : vector<8x128xf32>
    %cst_58 = arith.constant 1.000000e+00 : f32
    %123 = vector.broadcast %cst_58 : f32 to vector<8x128xf32>
    %124 = arith.addf %123, %122 : vector<8x128xf32>
    %125 = arith.divf %123, %124 : vector<8x128xf32>
    %126 = math.tanh %120 : vector<8x128xf32>
    %127 = vector.extract_strided_slice %125 {offsets = [0, 32], sizes = [8, 32], strides = [1, 1]} : vector<8x128xf32> to vector<8x32xf32>
    %128 = arith.mulf %127, %26 : vector<8x32xf32>
    %129 = vector.extract_strided_slice %125 {offsets = [0, 0], sizes = [8, 32], strides = [1, 1]} : vector<8x128xf32> to vector<8x32xf32>
    %130 = vector.extract_strided_slice %126 {offsets = [0, 64], sizes = [8, 32], strides = [1, 1]} : vector<8x128xf32> to vector<8x32xf32>
    %131 = arith.mulf %129, %130 : vector<8x32xf32>
    %132 = arith.addf %128, %131 : vector<8x32xf32>
    %133 = vector.extract_strided_slice %125 {offsets = [0, 96], sizes = [8, 32], strides = [1, 1]} : vector<8x128xf32> to vector<8x32xf32>
    %134 = math.tanh %132 : vector<8x32xf32>
    %135 = arith.mulf %133, %134 : vector<8x32xf32>
    %136 = vector.shape_cast %87 : vector<8x1xi1> to vector<8x1xi1>
    %137 = vector.broadcast %136 : vector<8x1xi1> to vector<8x32xi1>
    %138 = arith.select %137, %135, %26 : vector<8x32xi1>, vector<8x32xf32>
    %139 = vector.shape_cast %87 : vector<8x1xi1> to vector<8x1xi1>
    %140 = vector.broadcast %139 : vector<8x1xi1> to vector<8x32xi1>
    %141 = arith.select %140, %132, %26 : vector<8x32xi1>, vector<8x32xf32>
    %c8 = arith.constant 8 : index
    %c0_59 = arith.constant 0 : index
    %142 = vector.load %arg2[%c8, %c0_59] : memref<64x1xf32, #tpu.memory_space<vmem>>, vector<8x1xf32>
    %cst_60 = arith.constant 0.000000e+00 : f32
    %143 = vector.broadcast %cst_60 : f32 to vector<8x1xf32>
    %144 = arith.cmpf ogt, %142, %143 : vector<8x1xf32>
    %145 = vector.extract_strided_slice %12 {offsets = [8, 0], sizes = [8, 128], strides = [1, 1]} : vector<64x128xf32> to vector<8x128xf32>
    %c0_61 = arith.constant 0 : index
    %c0_62 = arith.constant 0 : index
    %146 = vector.load %arg8[%c0_61, %c0_62] : memref<32x128xf32, #tpu.memory_space<vmem>>, vector<32x128xf32>
    %cst_63 = arith.constant dense<0.000000e+00> : vector<8x128xf32>
    %147 = tpu.matmul %51, %146, %cst_63 {dimension_numbers = #tpu.dot_dimension_numbers<[1], [0], [0], [1], [0, 0, 1, 1], [], []>} : vector<8x32xf32>, vector<32x128xf32>, vector<8x128xf32> -> vector<8x128xf32>
    %148 = arith.addf %145, %147 : vector<8x128xf32>
    %149 = arith.negf %148 : vector<8x128xf32>
    %150 = math.exp %149 : vector<8x128xf32>
    %cst_64 = arith.constant 1.000000e+00 : f32
    %151 = vector.broadcast %cst_64 : f32 to vector<8x128xf32>
    %152 = arith.addf %151, %150 : vector<8x128xf32>
    %153 = arith.divf %151, %152 : vector<8x128xf32>
    %154 = math.tanh %148 : vector<8x128xf32>
    %155 = vector.extract_strided_slice %153 {offsets = [0, 32], sizes = [8, 32], strides = [1, 1]} : vector<8x128xf32> to vector<8x32xf32>
    %156 = arith.mulf %155, %54 : vector<8x32xf32>
    %157 = vector.extract_strided_slice %153 {offsets = [0, 0], sizes = [8, 32], strides = [1, 1]} : vector<8x128xf32> to vector<8x32xf32>
    %158 = vector.extract_strided_slice %154 {offsets = [0, 64], sizes = [8, 32], strides = [1, 1]} : vector<8x128xf32> to vector<8x32xf32>
    %159 = arith.mulf %157, %158 : vector<8x32xf32>
    %160 = arith.addf %156, %159 : vector<8x32xf32>
    %161 = vector.extract_strided_slice %153 {offsets = [0, 96], sizes = [8, 32], strides = [1, 1]} : vector<8x128xf32> to vector<8x32xf32>
    %162 = math.tanh %160 : vector<8x32xf32>
    %163 = arith.mulf %161, %162 : vector<8x32xf32>
    %164 = vector.shape_cast %144 : vector<8x1xi1> to vector<8x1xi1>
    %165 = vector.broadcast %164 : vector<8x1xi1> to vector<8x32xi1>
    %166 = arith.select %165, %163, %51 : vector<8x32xi1>, vector<8x32xf32>
    %167 = vector.shape_cast %144 : vector<8x1xi1> to vector<8x1xi1>
    %168 = vector.broadcast %167 : vector<8x1xi1> to vector<8x32xi1>
    %169 = arith.select %168, %160, %54 : vector<8x32xi1>, vector<8x32xf32>
    %c0_65 = arith.constant 0 : index
    %c0_66 = arith.constant 0 : index
    %170 = vector.load %arg10[%c0_65, %c0_66] : memref<32x128xf32, #tpu.memory_space<vmem>>, vector<32x128xf32>
    %cst_67 = arith.constant dense<0.000000e+00> : vector<8x128xf32>
    %171 = tpu.matmul %166, %170, %cst_67 {dimension_numbers = #tpu.dot_dimension_numbers<[1], [0], [0], [1], [0, 0, 1, 1], [], []>} : vector<8x32xf32>, vector<32x128xf32>, vector<8x128xf32> -> vector<8x128xf32>
    %c0_68 = arith.constant 0 : index
    %c0_69 = arith.constant 0 : index
    %172 = vector.load %arg11[%c0_68, %c0_69] : memref<32x128xf32, #tpu.memory_space<vmem>>, vector<32x128xf32>
    %cst_70 = arith.constant dense<0.000000e+00> : vector<8x128xf32>
    %173 = tpu.matmul %80, %172, %cst_70 {dimension_numbers = #tpu.dot_dimension_numbers<[1], [0], [0], [1], [0, 0, 1, 1], [], []>} : vector<8x32xf32>, vector<32x128xf32>, vector<8x128xf32> -> vector<8x128xf32>
    %174 = arith.addf %171, %173 : vector<8x128xf32>
    %c0_71 = arith.constant 0 : index
    %c0_72 = arith.constant 0 : index
    %175 = vector.load %arg12[%c0_71, %c0_72] : memref<1x128xf32, #tpu.memory_space<vmem>>, vector<1x128xf32>
    %176 = vector.broadcast %175 : vector<1x128xf32> to vector<8x128xf32>
    %177 = arith.addf %174, %176 : vector<8x128xf32>
    %178 = arith.negf %177 : vector<8x128xf32>
    %179 = math.exp %178 : vector<8x128xf32>
    %cst_73 = arith.constant 1.000000e+00 : f32
    %180 = vector.broadcast %cst_73 : f32 to vector<8x128xf32>
    %181 = arith.addf %180, %179 : vector<8x128xf32>
    %182 = arith.divf %180, %181 : vector<8x128xf32>
    %183 = math.tanh %177 : vector<8x128xf32>
    %184 = vector.extract_strided_slice %182 {offsets = [0, 32], sizes = [8, 32], strides = [1, 1]} : vector<8x128xf32> to vector<8x32xf32>
    %185 = arith.mulf %184, %83 : vector<8x32xf32>
    %186 = vector.extract_strided_slice %182 {offsets = [0, 0], sizes = [8, 32], strides = [1, 1]} : vector<8x128xf32> to vector<8x32xf32>
    %187 = vector.extract_strided_slice %183 {offsets = [0, 64], sizes = [8, 32], strides = [1, 1]} : vector<8x128xf32> to vector<8x32xf32>
    %188 = arith.mulf %186, %187 : vector<8x32xf32>
    %189 = arith.addf %185, %188 : vector<8x32xf32>
    %190 = vector.extract_strided_slice %182 {offsets = [0, 96], sizes = [8, 32], strides = [1, 1]} : vector<8x128xf32> to vector<8x32xf32>
    %191 = math.tanh %189 : vector<8x32xf32>
    %192 = arith.mulf %190, %191 : vector<8x32xf32>
    %193 = vector.shape_cast %144 : vector<8x1xi1> to vector<8x1xi1>
    %194 = vector.broadcast %193 : vector<8x1xi1> to vector<8x32xi1>
    %195 = arith.select %194, %192, %80 : vector<8x32xi1>, vector<8x32xf32>
    %196 = vector.shape_cast %144 : vector<8x1xi1> to vector<8x1xi1>
    %197 = vector.broadcast %196 : vector<8x1xi1> to vector<8x32xi1>
    %198 = arith.select %197, %189, %83 : vector<8x32xi1>, vector<8x32xf32>
    %c8_74 = arith.constant 8 : index
    %c0_75 = arith.constant 0 : index
    %199 = vector.load %arg26[%c8_74, %c0_75] : memref<64x32xf32, #tpu.memory_space<vmem>>, vector<8x32xf32>
    tpu.vector_store %arg26[%c8_74, %c0_75], %195 {strides = array<i32>} : memref<64x32xf32, #tpu.memory_space<vmem>>, vector<8x32xf32>,
    %c8_76 = arith.constant 8 : index
    %c0_77 = arith.constant 0 : index
    %200 = vector.load %arg4[%c8_76, %c0_77] : memref<48x1xf32, #tpu.memory_space<vmem>>, vector<8x1xf32>
    %cst_78 = arith.constant 0.000000e+00 : f32
    %201 = vector.broadcast %cst_78 : f32 to vector<8x1xf32>
    %202 = arith.cmpf ogt, %200, %201 : vector<8x1xf32>
    %203 = vector.extract_strided_slice %25 {offsets = [8, 0], sizes = [8, 128], strides = [1, 1]} : vector<48x128xf32> to vector<8x128xf32>
    %c0_79 = arith.constant 0 : index
    %c0_80 = arith.constant 0 : index
    %204 = vector.load %arg16[%c0_79, %c0_80] : memref<32x128xf32, #tpu.memory_space<vmem>>, vector<32x128xf32>
    %cst_81 = arith.constant dense<0.000000e+00> : vector<8x128xf32>
    %205 = tpu.matmul %109, %204, %cst_81 {dimension_numbers = #tpu.dot_dimension_numbers<[1], [0], [0], [1], [0, 0, 1, 1], [], []>} : vector<8x32xf32>, vector<32x128xf32>, vector<8x128xf32> -> vector<8x128xf32>
    %206 = arith.addf %203, %205 : vector<8x128xf32>
    %207 = arith.negf %206 : vector<8x128xf32>
    %208 = math.exp %207 : vector<8x128xf32>
    %cst_82 = arith.constant 1.000000e+00 : f32
    %209 = vector.broadcast %cst_82 : f32 to vector<8x128xf32>
    %210 = arith.addf %209, %208 : vector<8x128xf32>
    %211 = arith.divf %209, %210 : vector<8x128xf32>
    %212 = math.tanh %206 : vector<8x128xf32>
    %213 = vector.extract_strided_slice %211 {offsets = [0, 32], sizes = [8, 32], strides = [1, 1]} : vector<8x128xf32> to vector<8x32xf32>
    %214 = arith.mulf %213, %112 : vector<8x32xf32>
    %215 = vector.extract_strided_slice %211 {offsets = [0, 0], sizes = [8, 32], strides = [1, 1]} : vector<8x128xf32> to vector<8x32xf32>
    %216 = vector.extract_strided_slice %212 {offsets = [0, 64], sizes = [8, 32], strides = [1, 1]} : vector<8x128xf32> to vector<8x32xf32>
    %217 = arith.mulf %215, %216 : vector<8x32xf32>
    %218 = arith.addf %214, %217 : vector<8x32xf32>
    %219 = vector.extract_strided_slice %211 {offsets = [0, 96], sizes = [8, 32], strides = [1, 1]} : vector<8x128xf32> to vector<8x32xf32>
    %220 = math.tanh %218 : vector<8x32xf32>
    %221 = arith.mulf %219, %220 : vector<8x32xf32>
    %222 = vector.shape_cast %202 : vector<8x1xi1> to vector<8x1xi1>
    %223 = vector.broadcast %222 : vector<8x1xi1> to vector<8x32xi1>
    %224 = arith.select %223, %221, %109 : vector<8x32xi1>, vector<8x32xf32>
    %225 = vector.shape_cast %202 : vector<8x1xi1> to vector<8x1xi1>
    %226 = vector.broadcast %225 : vector<8x1xi1> to vector<8x32xi1>
    %227 = arith.select %226, %218, %112 : vector<8x32xi1>, vector<8x32xf32>
    %c0_83 = arith.constant 0 : index
    %c0_84 = arith.constant 0 : index
    %228 = vector.load %arg18[%c0_83, %c0_84] : memref<32x128xf32, #tpu.memory_space<vmem>>, vector<32x128xf32>
    %cst_85 = arith.constant dense<0.000000e+00> : vector<8x128xf32>
    %229 = tpu.matmul %224, %228, %cst_85 {dimension_numbers = #tpu.dot_dimension_numbers<[1], [0], [0], [1], [0, 0, 1, 1], [], []>} : vector<8x32xf32>, vector<32x128xf32>, vector<8x128xf32> -> vector<8x128xf32>
    %c0_86 = arith.constant 0 : index
    %c0_87 = arith.constant 0 : index
    %230 = vector.load %arg19[%c0_86, %c0_87] : memref<32x128xf32, #tpu.memory_space<vmem>>, vector<32x128xf32>
    %cst_88 = arith.constant dense<0.000000e+00> : vector<8x128xf32>
    %231 = tpu.matmul %138, %230, %cst_88 {dimension_numbers = #tpu.dot_dimension_numbers<[1], [0], [0], [1], [0, 0, 1, 1], [], []>} : vector<8x32xf32>, vector<32x128xf32>, vector<8x128xf32> -> vector<8x128xf32>
    %232 = arith.addf %229, %231 : vector<8x128xf32>
    %c0_89 = arith.constant 0 : index
    %c0_90 = arith.constant 0 : index
    %233 = vector.load %arg20[%c0_89, %c0_90] : memref<1x128xf32, #tpu.memory_space<vmem>>, vector<1x128xf32>
    %234 = vector.broadcast %233 : vector<1x128xf32> to vector<8x128xf32>
    %235 = arith.addf %232, %234 : vector<8x128xf32>
    %236 = arith.negf %235 : vector<8x128xf32>
    %237 = math.exp %236 : vector<8x128xf32>
    %cst_91 = arith.constant 1.000000e+00 : f32
    %238 = vector.broadcast %cst_91 : f32 to vector<8x128xf32>
    %239 = arith.addf %238, %237 : vector<8x128xf32>
    %240 = arith.divf %238, %239 : vector<8x128xf32>
    %241 = math.tanh %235 : vector<8x128xf32>
    %242 = vector.extract_strided_slice %240 {offsets = [0, 32], sizes = [8, 32], strides = [1, 1]} : vector<8x128xf32> to vector<8x32xf32>
    %243 = arith.mulf %242, %141 : vector<8x32xf32>
    %244 = vector.extract_strided_slice %240 {offsets = [0, 0], sizes = [8, 32], strides = [1, 1]} : vector<8x128xf32> to vector<8x32xf32>
    %245 = vector.extract_strided_slice %241 {offsets = [0, 64], sizes = [8, 32], strides = [1, 1]} : vector<8x128xf32> to vector<8x32xf32>
    %246 = arith.mulf %244, %245 : vector<8x32xf32>
    %247 = arith.addf %243, %246 : vector<8x32xf32>
    %248 = vector.extract_strided_slice %240 {offsets = [0, 96], sizes = [8, 32], strides = [1, 1]} : vector<8x128xf32> to vector<8x32xf32>
    %249 = math.tanh %247 : vector<8x32xf32>
    %250 = arith.mulf %248, %249 : vector<8x32xf32>
    %251 = vector.shape_cast %202 : vector<8x1xi1> to vector<8x1xi1>
    %252 = vector.broadcast %251 : vector<8x1xi1> to vector<8x32xi1>
    %253 = arith.select %252, %250, %138 : vector<8x32xi1>, vector<8x32xf32>
    %254 = vector.shape_cast %202 : vector<8x1xi1> to vector<8x1xi1>
    %255 = vector.broadcast %254 : vector<8x1xi1> to vector<8x32xi1>
    %256 = arith.select %255, %247, %141 : vector<8x32xi1>, vector<8x32xf32>
    %c16 = arith.constant 16 : index
    %c0_92 = arith.constant 0 : index
    %257 = vector.load %arg2[%c16, %c0_92] : memref<64x1xf32, #tpu.memory_space<vmem>>, vector<8x1xf32>
    %cst_93 = arith.constant 0.000000e+00 : f32
    %258 = vector.broadcast %cst_93 : f32 to vector<8x1xf32>
    %259 = arith.cmpf ogt, %257, %258 : vector<8x1xf32>
    %260 = vector.extract_strided_slice %12 {offsets = [16, 0], sizes = [8, 128], strides = [1, 1]} : vector<64x128xf32> to vector<8x128xf32>
    %c0_94 = arith.constant 0 : index
    %c0_95 = arith.constant 0 : index
    %261 = vector.load %arg8[%c0_94, %c0_95] : memref<32x128xf32, #tpu.memory_space<vmem>>, vector<32x128xf32>
    %cst_96 = arith.constant dense<0.000000e+00> : vector<8x128xf32>
    %262 = tpu.matmul %166, %261, %cst_96 {dimension_numbers = #tpu.dot_dimension_numbers<[1], [0], [0], [1], [0, 0, 1, 1], [], []>} : vector<8x32xf32>, vector<32x128xf32>, vector<8x128xf32> -> vector<8x128xf32>
    %263 = arith.addf %260, %262 : vector<8x128xf32>
    %264 = arith.negf %263 : vector<8x128xf32>
    %265 = math.exp %264 : vector<8x128xf32>
    %cst_97 = arith.constant 1.000000e+00 : f32
    %266 = vector.broadcast %cst_97 : f32 to vector<8x128xf32>
    %267 = arith.addf %266, %265 : vector<8x128xf32>
    %268 = arith.divf %266, %267 : vector<8x128xf32>
    %269 = math.tanh %263 : vector<8x128xf32>
    %270 = vector.extract_strided_slice %268 {offsets = [0, 32], sizes = [8, 32], strides = [1, 1]} : vector<8x128xf32> to vector<8x32xf32>
    %271 = arith.mulf %270, %169 : vector<8x32xf32>
    %272 = vector.extract_strided_slice %268 {offsets = [0, 0], sizes = [8, 32], strides = [1, 1]} : vector<8x128xf32> to vector<8x32xf32>
    %273 = vector.extract_strided_slice %269 {offsets = [0, 64], sizes = [8, 32], strides = [1, 1]} : vector<8x128xf32> to vector<8x32xf32>
    %274 = arith.mulf %272, %273 : vector<8x32xf32>
    %275 = arith.addf %271, %274 : vector<8x32xf32>
    %276 = vector.extract_strided_slice %268 {offsets = [0, 96], sizes = [8, 32], strides = [1, 1]} : vector<8x128xf32> to vector<8x32xf32>
    %277 = math.tanh %275 : vector<8x32xf32>
    %278 = arith.mulf %276, %277 : vector<8x32xf32>
    %279 = vector.shape_cast %259 : vector<8x1xi1> to vector<8x1xi1>
    %280 = vector.broadcast %279 : vector<8x1xi1> to vector<8x32xi1>
    %281 = arith.select %280, %278, %166 : vector<8x32xi1>, vector<8x32xf32>
    %282 = vector.shape_cast %259 : vector<8x1xi1> to vector<8x1xi1>
    %283 = vector.broadcast %282 : vector<8x1xi1> to vector<8x32xi1>
    %284 = arith.select %283, %275, %169 : vector<8x32xi1>, vector<8x32xf32>
    %c0_98 = arith.constant 0 : index
    %c0_99 = arith.constant 0 : index
    %285 = vector.load %arg10[%c0_98, %c0_99] : memref<32x128xf32, #tpu.memory_space<vmem>>, vector<32x128xf32>
    %cst_100 = arith.constant dense<0.000000e+00> : vector<8x128xf32>
    %286 = tpu.matmul %281, %285, %cst_100 {dimension_numbers = #tpu.dot_dimension_numbers<[1], [0], [0], [1], [0, 0, 1, 1], [], []>} : vector<8x32xf32>, vector<32x128xf32>, vector<8x128xf32> -> vector<8x128xf32>
    %c0_101 = arith.constant 0 : index
    %c0_102 = arith.constant 0 : index
    %287 = vector.load %arg11[%c0_101, %c0_102] : memref<32x128xf32, #tpu.memory_space<vmem>>, vector<32x128xf32>
    %cst_103 = arith.constant dense<0.000000e+00> : vector<8x128xf32>
    %288 = tpu.matmul %195, %287, %cst_103 {dimension_numbers = #tpu.dot_dimension_numbers<[1], [0], [0], [1], [0, 0, 1, 1], [], []>} : vector<8x32xf32>, vector<32x128xf32>, vector<8x128xf32> -> vector<8x128xf32>
    %289 = arith.addf %286, %288 : vector<8x128xf32>
    %c0_104 = arith.constant 0 : index
    %c0_105 = arith.constant 0 : index
    %290 = vector.load %arg12[%c0_104, %c0_105] : memref<1x128xf32, #tpu.memory_space<vmem>>, vector<1x128xf32>
    %291 = vector.broadcast %290 : vector<1x128xf32> to vector<8x128xf32>
    %292 = arith.addf %289, %291 : vector<8x128xf32>
    %293 = arith.negf %292 : vector<8x128xf32>
    %294 = math.exp %293 : vector<8x128xf32>
    %cst_106 = arith.constant 1.000000e+00 : f32
    %295 = vector.broadcast %cst_106 : f32 to vector<8x128xf32>
    %296 = arith.addf %295, %294 : vector<8x128xf32>
    %297 = arith.divf %295, %296 : vector<8x128xf32>
    %298 = math.tanh %292 : vector<8x128xf32>
    %299 = vector.extract_strided_slice %297 {offsets = [0, 32], sizes = [8, 32], strides = [1, 1]} : vector<8x128xf32> to vector<8x32xf32>
    %300 = arith.mulf %299, %198 : vector<8x32xf32>
    %301 = vector.extract_strided_slice %297 {offsets = [0, 0], sizes = [8, 32], strides = [1, 1]} : vector<8x128xf32> to vector<8x32xf32>
    %302 = vector.extract_strided_slice %298 {offsets = [0, 64], sizes = [8, 32], strides = [1, 1]} : vector<8x128xf32> to vector<8x32xf32>
    %303 = arith.mulf %301, %302 : vector<8x32xf32>
    %304 = arith.addf %300, %303 : vector<8x32xf32>
    %305 = vector.extract_strided_slice %297 {offsets = [0, 96], sizes = [8, 32], strides = [1, 1]} : vector<8x128xf32> to vector<8x32xf32>
    %306 = math.tanh %304 : vector<8x32xf32>
    %307 = arith.mulf %305, %306 : vector<8x32xf32>
    %308 = vector.shape_cast %259 : vector<8x1xi1> to vector<8x1xi1>
    %309 = vector.broadcast %308 : vector<8x1xi1> to vector<8x32xi1>
    %310 = arith.select %309, %307, %195 : vector<8x32xi1>, vector<8x32xf32>
    %311 = vector.shape_cast %259 : vector<8x1xi1> to vector<8x1xi1>
    %312 = vector.broadcast %311 : vector<8x1xi1> to vector<8x32xi1>
    %313 = arith.select %312, %304, %198 : vector<8x32xi1>, vector<8x32xf32>
    %c16_107 = arith.constant 16 : index
    %c0_108 = arith.constant 0 : index
    %314 = vector.load %arg26[%c16_107, %c0_108] : memref<64x32xf32, #tpu.memory_space<vmem>>, vector<8x32xf32>
    tpu.vector_store %arg26[%c16_107, %c0_108], %310 {strides = array<i32>} : memref<64x32xf32, #tpu.memory_space<vmem>>, vector<8x32xf32>,
    %c16_109 = arith.constant 16 : index
    %c0_110 = arith.constant 0 : index
    %315 = vector.load %arg4[%c16_109, %c0_110] : memref<48x1xf32, #tpu.memory_space<vmem>>, vector<8x1xf32>
    %cst_111 = arith.constant 0.000000e+00 : f32
    %316 = vector.broadcast %cst_111 : f32 to vector<8x1xf32>
    %317 = arith.cmpf ogt, %315, %316 : vector<8x1xf32>
    %318 = vector.extract_strided_slice %25 {offsets = [16, 0], sizes = [8, 128], strides = [1, 1]} : vector<48x128xf32> to vector<8x128xf32>
    %c0_112 = arith.constant 0 : index
    %c0_113 = arith.constant 0 : index
    %319 = vector.load %arg16[%c0_112, %c0_113] : memref<32x128xf32, #tpu.memory_space<vmem>>, vector<32x128xf32>
    %cst_114 = arith.constant dense<0.000000e+00> : vector<8x128xf32>
    %320 = tpu.matmul %224, %319, %cst_114 {dimension_numbers = #tpu.dot_dimension_numbers<[1], [0], [0], [1], [0, 0, 1, 1], [], []>} : vector<8x32xf32>, vector<32x128xf32>, vector<8x128xf32> -> vector<8x128xf32>
    %321 = arith.addf %318, %320 : vector<8x128xf32>
    %322 = arith.negf %321 : vector<8x128xf32>
    %323 = math.exp %322 : vector<8x128xf32>
    %cst_115 = arith.constant 1.000000e+00 : f32
    %324 = vector.broadcast %cst_115 : f32 to vector<8x128xf32>
    %325 = arith.addf %324, %323 : vector<8x128xf32>
    %326 = arith.divf %324, %325 : vector<8x128xf32>
    %327 = math.tanh %321 : vector<8x128xf32>
    %328 = vector.extract_strided_slice %326 {offsets = [0, 32], sizes = [8, 32], strides = [1, 1]} : vector<8x128xf32> to vector<8x32xf32>
    %329 = arith.mulf %328, %227 : vector<8x32xf32>
    %330 = vector.extract_strided_slice %326 {offsets = [0, 0], sizes = [8, 32], strides = [1, 1]} : vector<8x128xf32> to vector<8x32xf32>
    %331 = vector.extract_strided_slice %327 {offsets = [0, 64], sizes = [8, 32], strides = [1, 1]} : vector<8x128xf32> to vector<8x32xf32>
    %332 = arith.mulf %330, %331 : vector<8x32xf32>
    %333 = arith.addf %329, %332 : vector<8x32xf32>
    %334 = vector.extract_strided_slice %326 {offsets = [0, 96], sizes = [8, 32], strides = [1, 1]} : vector<8x128xf32> to vector<8x32xf32>
    %335 = math.tanh %333 : vector<8x32xf32>
    %336 = arith.mulf %334, %335 : vector<8x32xf32>
    %337 = vector.shape_cast %317 : vector<8x1xi1> to vector<8x1xi1>
    %338 = vector.broadcast %337 : vector<8x1xi1> to vector<8x32xi1>
    %339 = arith.select %338, %336, %224 : vector<8x32xi1>, vector<8x32xf32>
    %340 = vector.shape_cast %317 : vector<8x1xi1> to vector<8x1xi1>
    %341 = vector.broadcast %340 : vector<8x1xi1> to vector<8x32xi1>
    %342 = arith.select %341, %333, %227 : vector<8x32xi1>, vector<8x32xf32>
    %c0_116 = arith.constant 0 : index
    %c0_117 = arith.constant 0 : index
    %343 = vector.load %arg18[%c0_116, %c0_117] : memref<32x128xf32, #tpu.memory_space<vmem>>, vector<32x128xf32>
    %cst_118 = arith.constant dense<0.000000e+00> : vector<8x128xf32>
    %344 = tpu.matmul %339, %343, %cst_118 {dimension_numbers = #tpu.dot_dimension_numbers<[1], [0], [0], [1], [0, 0, 1, 1], [], []>} : vector<8x32xf32>, vector<32x128xf32>, vector<8x128xf32> -> vector<8x128xf32>
    %c0_119 = arith.constant 0 : index
    %c0_120 = arith.constant 0 : index
    %345 = vector.load %arg19[%c0_119, %c0_120] : memref<32x128xf32, #tpu.memory_space<vmem>>, vector<32x128xf32>
    %cst_121 = arith.constant dense<0.000000e+00> : vector<8x128xf32>
    %346 = tpu.matmul %253, %345, %cst_121 {dimension_numbers = #tpu.dot_dimension_numbers<[1], [0], [0], [1], [0, 0, 1, 1], [], []>} : vector<8x32xf32>, vector<32x128xf32>, vector<8x128xf32> -> vector<8x128xf32>
    %347 = arith.addf %344, %346 : vector<8x128xf32>
    %c0_122 = arith.constant 0 : index
    %c0_123 = arith.constant 0 : index
    %348 = vector.load %arg20[%c0_122, %c0_123] : memref<1x128xf32, #tpu.memory_space<vmem>>, vector<1x128xf32>
    %349 = vector.broadcast %348 : vector<1x128xf32> to vector<8x128xf32>
    %350 = arith.addf %347, %349 : vector<8x128xf32>
    %351 = arith.negf %350 : vector<8x128xf32>
    %352 = math.exp %351 : vector<8x128xf32>
    %cst_124 = arith.constant 1.000000e+00 : f32
    %353 = vector.broadcast %cst_124 : f32 to vector<8x128xf32>
    %354 = arith.addf %353, %352 : vector<8x128xf32>
    %355 = arith.divf %353, %354 : vector<8x128xf32>
    %356 = math.tanh %350 : vector<8x128xf32>
    %357 = vector.extract_strided_slice %355 {offsets = [0, 32], sizes = [8, 32], strides = [1, 1]} : vector<8x128xf32> to vector<8x32xf32>
    %358 = arith.mulf %357, %256 : vector<8x32xf32>
    %359 = vector.extract_strided_slice %355 {offsets = [0, 0], sizes = [8, 32], strides = [1, 1]} : vector<8x128xf32> to vector<8x32xf32>
    %360 = vector.extract_strided_slice %356 {offsets = [0, 64], sizes = [8, 32], strides = [1, 1]} : vector<8x128xf32> to vector<8x32xf32>
    %361 = arith.mulf %359, %360 : vector<8x32xf32>
    %362 = arith.addf %358, %361 : vector<8x32xf32>
    %363 = vector.extract_strided_slice %355 {offsets = [0, 96], sizes = [8, 32], strides = [1, 1]} : vector<8x128xf32> to vector<8x32xf32>
    %364 = math.tanh %362 : vector<8x32xf32>
    %365 = arith.mulf %363, %364 : vector<8x32xf32>
    %366 = vector.shape_cast %317 : vector<8x1xi1> to vector<8x1xi1>
    %367 = vector.broadcast %366 : vector<8x1xi1> to vector<8x32xi1>
    %368 = arith.select %367, %365, %253 : vector<8x32xi1>, vector<8x32xf32>
    %369 = vector.shape_cast %317 : vector<8x1xi1> to vector<8x1xi1>
    %370 = vector.broadcast %369 : vector<8x1xi1> to vector<8x32xi1>
    %371 = arith.select %370, %362, %256 : vector<8x32xi1>, vector<8x32xf32>
    %c24 = arith.constant 24 : index
    %c0_125 = arith.constant 0 : index
    %372 = vector.load %arg2[%c24, %c0_125] : memref<64x1xf32, #tpu.memory_space<vmem>>, vector<8x1xf32>
    %cst_126 = arith.constant 0.000000e+00 : f32
    %373 = vector.broadcast %cst_126 : f32 to vector<8x1xf32>
    %374 = arith.cmpf ogt, %372, %373 : vector<8x1xf32>
    %375 = vector.extract_strided_slice %12 {offsets = [24, 0], sizes = [8, 128], strides = [1, 1]} : vector<64x128xf32> to vector<8x128xf32>
    %c0_127 = arith.constant 0 : index
    %c0_128 = arith.constant 0 : index
    %376 = vector.load %arg8[%c0_127, %c0_128] : memref<32x128xf32, #tpu.memory_space<vmem>>, vector<32x128xf32>
    %cst_129 = arith.constant dense<0.000000e+00> : vector<8x128xf32>
    %377 = tpu.matmul %281, %376, %cst_129 {dimension_numbers = #tpu.dot_dimension_numbers<[1], [0], [0], [1], [0, 0, 1, 1], [], []>} : vector<8x32xf32>, vector<32x128xf32>, vector<8x128xf32> -> vector<8x128xf32>
    %378 = arith.addf %375, %377 : vector<8x128xf32>
    %379 = arith.negf %378 : vector<8x128xf32>
    %380 = math.exp %379 : vector<8x128xf32>
    %cst_130 = arith.constant 1.000000e+00 : f32
    %381 = vector.broadcast %cst_130 : f32 to vector<8x128xf32>
    %382 = arith.addf %381, %380 : vector<8x128xf32>
    %383 = arith.divf %381, %382 : vector<8x128xf32>
    %384 = math.tanh %378 : vector<8x128xf32>
    %385 = vector.extract_strided_slice %383 {offsets = [0, 32], sizes = [8, 32], strides = [1, 1]} : vector<8x128xf32> to vector<8x32xf32>
    %386 = arith.mulf %385, %284 : vector<8x32xf32>
    %387 = vector.extract_strided_slice %383 {offsets = [0, 0], sizes = [8, 32], strides = [1, 1]} : vector<8x128xf32> to vector<8x32xf32>
    %388 = vector.extract_strided_slice %384 {offsets = [0, 64], sizes = [8, 32], strides = [1, 1]} : vector<8x128xf32> to vector<8x32xf32>
    %389 = arith.mulf %387, %388 : vector<8x32xf32>
    %390 = arith.addf %386, %389 : vector<8x32xf32>
    %391 = vector.extract_strided_slice %383 {offsets = [0, 96], sizes = [8, 32], strides = [1, 1]} : vector<8x128xf32> to vector<8x32xf32>
    %392 = math.tanh %390 : vector<8x32xf32>
    %393 = arith.mulf %391, %392 : vector<8x32xf32>
    %394 = vector.shape_cast %374 : vector<8x1xi1> to vector<8x1xi1>
    %395 = vector.broadcast %394 : vector<8x1xi1> to vector<8x32xi1>
    %396 = arith.select %395, %393, %281 : vector<8x32xi1>, vector<8x32xf32>
    %397 = vector.shape_cast %374 : vector<8x1xi1> to vector<8x1xi1>
    %398 = vector.broadcast %397 : vector<8x1xi1> to vector<8x32xi1>
    %399 = arith.select %398, %390, %284 : vector<8x32xi1>, vector<8x32xf32>
    %c0_131 = arith.constant 0 : index
    %c0_132 = arith.constant 0 : index
    %400 = vector.load %arg10[%c0_131, %c0_132] : memref<32x128xf32, #tpu.memory_space<vmem>>, vector<32x128xf32>
    %cst_133 = arith.constant dense<0.000000e+00> : vector<8x128xf32>
    %401 = tpu.matmul %396, %400, %cst_133 {dimension_numbers = #tpu.dot_dimension_numbers<[1], [0], [0], [1], [0, 0, 1, 1], [], []>} : vector<8x32xf32>, vector<32x128xf32>, vector<8x128xf32> -> vector<8x128xf32>
    %c0_134 = arith.constant 0 : index
    %c0_135 = arith.constant 0 : index
    %402 = vector.load %arg11[%c0_134, %c0_135] : memref<32x128xf32, #tpu.memory_space<vmem>>, vector<32x128xf32>
    %cst_136 = arith.constant dense<0.000000e+00> : vector<8x128xf32>
    %403 = tpu.matmul %310, %402, %cst_136 {dimension_numbers = #tpu.dot_dimension_numbers<[1], [0], [0], [1], [0, 0, 1, 1], [], []>} : vector<8x32xf32>, vector<32x128xf32>, vector<8x128xf32> -> vector<8x128xf32>
    %404 = arith.addf %401, %403 : vector<8x128xf32>
    %c0_137 = arith.constant 0 : index
    %c0_138 = arith.constant 0 : index
    %405 = vector.load %arg12[%c0_137, %c0_138] : memref<1x128xf32, #tpu.memory_space<vmem>>, vector<1x128xf32>
    %406 = vector.broadcast %405 : vector<1x128xf32> to vector<8x128xf32>
    %407 = arith.addf %404, %406 : vector<8x128xf32>
    %408 = arith.negf %407 : vector<8x128xf32>
    %409 = math.exp %408 : vector<8x128xf32>
    %cst_139 = arith.constant 1.000000e+00 : f32
    %410 = vector.broadcast %cst_139 : f32 to vector<8x128xf32>
    %411 = arith.addf %410, %409 : vector<8x128xf32>
    %412 = arith.divf %410, %411 : vector<8x128xf32>
    %413 = math.tanh %407 : vector<8x128xf32>
    %414 = vector.extract_strided_slice %412 {offsets = [0, 32], sizes = [8, 32], strides = [1, 1]} : vector<8x128xf32> to vector<8x32xf32>
    %415 = arith.mulf %414, %313 : vector<8x32xf32>
    %416 = vector.extract_strided_slice %412 {offsets = [0, 0], sizes = [8, 32], strides = [1, 1]} : vector<8x128xf32> to vector<8x32xf32>
    %417 = vector.extract_strided_slice %413 {offsets = [0, 64], sizes = [8, 32], strides = [1, 1]} : vector<8x128xf32> to vector<8x32xf32>
    %418 = arith.mulf %416, %417 : vector<8x32xf32>
    %419 = arith.addf %415, %418 : vector<8x32xf32>
    %420 = vector.extract_strided_slice %412 {offsets = [0, 96], sizes = [8, 32], strides = [1, 1]} : vector<8x128xf32> to vector<8x32xf32>
    %421 = math.tanh %419 : vector<8x32xf32>
    %422 = arith.mulf %420, %421 : vector<8x32xf32>
    %423 = vector.shape_cast %374 : vector<8x1xi1> to vector<8x1xi1>
    %424 = vector.broadcast %423 : vector<8x1xi1> to vector<8x32xi1>
    %425 = arith.select %424, %422, %310 : vector<8x32xi1>, vector<8x32xf32>
    %426 = vector.shape_cast %374 : vector<8x1xi1> to vector<8x1xi1>
    %427 = vector.broadcast %426 : vector<8x1xi1> to vector<8x32xi1>
    %428 = arith.select %427, %419, %313 : vector<8x32xi1>, vector<8x32xf32>
    %c24_140 = arith.constant 24 : index
    %c0_141 = arith.constant 0 : index
    %429 = vector.load %arg26[%c24_140, %c0_141] : memref<64x32xf32, #tpu.memory_space<vmem>>, vector<8x32xf32>
    tpu.vector_store %arg26[%c24_140, %c0_141], %425 {strides = array<i32>} : memref<64x32xf32, #tpu.memory_space<vmem>>, vector<8x32xf32>,
    %c24_142 = arith.constant 24 : index
    %c0_143 = arith.constant 0 : index
    %430 = vector.load %arg4[%c24_142, %c0_143] : memref<48x1xf32, #tpu.memory_space<vmem>>, vector<8x1xf32>
    %cst_144 = arith.constant 0.000000e+00 : f32
    %431 = vector.broadcast %cst_144 : f32 to vector<8x1xf32>
    %432 = arith.cmpf ogt, %430, %431 : vector<8x1xf32>
    %433 = vector.extract_strided_slice %25 {offsets = [24, 0], sizes = [8, 128], strides = [1, 1]} : vector<48x128xf32> to vector<8x128xf32>
    %c0_145 = arith.constant 0 : index
    %c0_146 = arith.constant 0 : index
    %434 = vector.load %arg16[%c0_145, %c0_146] : memref<32x128xf32, #tpu.memory_space<vmem>>, vector<32x128xf32>
    %cst_147 = arith.constant dense<0.000000e+00> : vector<8x128xf32>
    %435 = tpu.matmul %339, %434, %cst_147 {dimension_numbers = #tpu.dot_dimension_numbers<[1], [0], [0], [1], [0, 0, 1, 1], [], []>} : vector<8x32xf32>, vector<32x128xf32>, vector<8x128xf32> -> vector<8x128xf32>
    %436 = arith.addf %433, %435 : vector<8x128xf32>
    %437 = arith.negf %436 : vector<8x128xf32>
    %438 = math.exp %437 : vector<8x128xf32>
    %cst_148 = arith.constant 1.000000e+00 : f32
    %439 = vector.broadcast %cst_148 : f32 to vector<8x128xf32>
    %440 = arith.addf %439, %438 : vector<8x128xf32>
    %441 = arith.divf %439, %440 : vector<8x128xf32>
    %442 = math.tanh %436 : vector<8x128xf32>
    %443 = vector.extract_strided_slice %441 {offsets = [0, 32], sizes = [8, 32], strides = [1, 1]} : vector<8x128xf32> to vector<8x32xf32>
    %444 = arith.mulf %443, %342 : vector<8x32xf32>
    %445 = vector.extract_strided_slice %441 {offsets = [0, 0], sizes = [8, 32], strides = [1, 1]} : vector<8x128xf32> to vector<8x32xf32>
    %446 = vector.extract_strided_slice %442 {offsets = [0, 64], sizes = [8, 32], strides = [1, 1]} : vector<8x128xf32> to vector<8x32xf32>
    %447 = arith.mulf %445, %446 : vector<8x32xf32>
    %448 = arith.addf %444, %447 : vector<8x32xf32>
    %449 = vector.extract_strided_slice %441 {offsets = [0, 96], sizes = [8, 32], strides = [1, 1]} : vector<8x128xf32> to vector<8x32xf32>
    %450 = math.tanh %448 : vector<8x32xf32>
    %451 = arith.mulf %449, %450 : vector<8x32xf32>
    %452 = vector.shape_cast %432 : vector<8x1xi1> to vector<8x1xi1>
    %453 = vector.broadcast %452 : vector<8x1xi1> to vector<8x32xi1>
    %454 = arith.select %453, %451, %339 : vector<8x32xi1>, vector<8x32xf32>
    %455 = vector.shape_cast %432 : vector<8x1xi1> to vector<8x1xi1>
    %456 = vector.broadcast %455 : vector<8x1xi1> to vector<8x32xi1>
    %457 = arith.select %456, %448, %342 : vector<8x32xi1>, vector<8x32xf32>
    %c0_149 = arith.constant 0 : index
    %c0_150 = arith.constant 0 : index
    %458 = vector.load %arg18[%c0_149, %c0_150] : memref<32x128xf32, #tpu.memory_space<vmem>>, vector<32x128xf32>
    %cst_151 = arith.constant dense<0.000000e+00> : vector<8x128xf32>
    %459 = tpu.matmul %454, %458, %cst_151 {dimension_numbers = #tpu.dot_dimension_numbers<[1], [0], [0], [1], [0, 0, 1, 1], [], []>} : vector<8x32xf32>, vector<32x128xf32>, vector<8x128xf32> -> vector<8x128xf32>
    %c0_152 = arith.constant 0 : index
    %c0_153 = arith.constant 0 : index
    %460 = vector.load %arg19[%c0_152, %c0_153] : memref<32x128xf32, #tpu.memory_space<vmem>>, vector<32x128xf32>
    %cst_154 = arith.constant dense<0.000000e+00> : vector<8x128xf32>
    %461 = tpu.matmul %368, %460, %cst_154 {dimension_numbers = #tpu.dot_dimension_numbers<[1], [0], [0], [1], [0, 0, 1, 1], [], []>} : vector<8x32xf32>, vector<32x128xf32>, vector<8x128xf32> -> vector<8x128xf32>
    %462 = arith.addf %459, %461 : vector<8x128xf32>
    %c0_155 = arith.constant 0 : index
    %c0_156 = arith.constant 0 : index
    %463 = vector.load %arg20[%c0_155, %c0_156] : memref<1x128xf32, #tpu.memory_space<vmem>>, vector<1x128xf32>
    %464 = vector.broadcast %463 : vector<1x128xf32> to vector<8x128xf32>
    %465 = arith.addf %462, %464 : vector<8x128xf32>
    %466 = arith.negf %465 : vector<8x128xf32>
    %467 = math.exp %466 : vector<8x128xf32>
    %cst_157 = arith.constant 1.000000e+00 : f32
    %468 = vector.broadcast %cst_157 : f32 to vector<8x128xf32>
    %469 = arith.addf %468, %467 : vector<8x128xf32>
    %470 = arith.divf %468, %469 : vector<8x128xf32>
    %471 = math.tanh %465 : vector<8x128xf32>
    %472 = vector.extract_strided_slice %470 {offsets = [0, 32], sizes = [8, 32], strides = [1, 1]} : vector<8x128xf32> to vector<8x32xf32>
    %473 = arith.mulf %472, %371 : vector<8x32xf32>
    %474 = vector.extract_strided_slice %470 {offsets = [0, 0], sizes = [8, 32], strides = [1, 1]} : vector<8x128xf32> to vector<8x32xf32>
    %475 = vector.extract_strided_slice %471 {offsets = [0, 64], sizes = [8, 32], strides = [1, 1]} : vector<8x128xf32> to vector<8x32xf32>
    %476 = arith.mulf %474, %475 : vector<8x32xf32>
    %477 = arith.addf %473, %476 : vector<8x32xf32>
    %478 = vector.extract_strided_slice %470 {offsets = [0, 96], sizes = [8, 32], strides = [1, 1]} : vector<8x128xf32> to vector<8x32xf32>
    %479 = math.tanh %477 : vector<8x32xf32>
    %480 = arith.mulf %478, %479 : vector<8x32xf32>
    %481 = vector.shape_cast %432 : vector<8x1xi1> to vector<8x1xi1>
    %482 = vector.broadcast %481 : vector<8x1xi1> to vector<8x32xi1>
    %483 = arith.select %482, %480, %368 : vector<8x32xi1>, vector<8x32xf32>
    %484 = vector.shape_cast %432 : vector<8x1xi1> to vector<8x1xi1>
    %485 = vector.broadcast %484 : vector<8x1xi1> to vector<8x32xi1>
    %486 = arith.select %485, %477, %371 : vector<8x32xi1>, vector<8x32xf32>
    %c32 = arith.constant 32 : index
    %c0_158 = arith.constant 0 : index
    %487 = vector.load %arg2[%c32, %c0_158] : memref<64x1xf32, #tpu.memory_space<vmem>>, vector<8x1xf32>
    %cst_159 = arith.constant 0.000000e+00 : f32
    %488 = vector.broadcast %cst_159 : f32 to vector<8x1xf32>
    %489 = arith.cmpf ogt, %487, %488 : vector<8x1xf32>
    %490 = vector.extract_strided_slice %12 {offsets = [32, 0], sizes = [8, 128], strides = [1, 1]} : vector<64x128xf32> to vector<8x128xf32>
    %c0_160 = arith.constant 0 : index
    %c0_161 = arith.constant 0 : index
    %491 = vector.load %arg8[%c0_160, %c0_161] : memref<32x128xf32, #tpu.memory_space<vmem>>, vector<32x128xf32>
    %cst_162 = arith.constant dense<0.000000e+00> : vector<8x128xf32>
    %492 = tpu.matmul %396, %491, %cst_162 {dimension_numbers = #tpu.dot_dimension_numbers<[1], [0], [0], [1], [0, 0, 1, 1], [], []>} : vector<8x32xf32>, vector<32x128xf32>, vector<8x128xf32> -> vector<8x128xf32>
    %493 = arith.addf %490, %492 : vector<8x128xf32>
    %494 = arith.negf %493 : vector<8x128xf32>
    %495 = math.exp %494 : vector<8x128xf32>
    %cst_163 = arith.constant 1.000000e+00 : f32
    %496 = vector.broadcast %cst_163 : f32 to vector<8x128xf32>
    %497 = arith.addf %496, %495 : vector<8x128xf32>
    %498 = arith.divf %496, %497 : vector<8x128xf32>
    %499 = math.tanh %493 : vector<8x128xf32>
    %500 = vector.extract_strided_slice %498 {offsets = [0, 32], sizes = [8, 32], strides = [1, 1]} : vector<8x128xf32> to vector<8x32xf32>
    %501 = arith.mulf %500, %399 : vector<8x32xf32>
    %502 = vector.extract_strided_slice %498 {offsets = [0, 0], sizes = [8, 32], strides = [1, 1]} : vector<8x128xf32> to vector<8x32xf32>
    %503 = vector.extract_strided_slice %499 {offsets = [0, 64], sizes = [8, 32], strides = [1, 1]} : vector<8x128xf32> to vector<8x32xf32>
    %504 = arith.mulf %502, %503 : vector<8x32xf32>
    %505 = arith.addf %501, %504 : vector<8x32xf32>
    %506 = vector.extract_strided_slice %498 {offsets = [0, 96], sizes = [8, 32], strides = [1, 1]} : vector<8x128xf32> to vector<8x32xf32>
    %507 = math.tanh %505 : vector<8x32xf32>
    %508 = arith.mulf %506, %507 : vector<8x32xf32>
    %509 = vector.shape_cast %489 : vector<8x1xi1> to vector<8x1xi1>
    %510 = vector.broadcast %509 : vector<8x1xi1> to vector<8x32xi1>
    %511 = arith.select %510, %508, %396 : vector<8x32xi1>, vector<8x32xf32>
    %512 = vector.shape_cast %489 : vector<8x1xi1> to vector<8x1xi1>
    %513 = vector.broadcast %512 : vector<8x1xi1> to vector<8x32xi1>
    %514 = arith.select %513, %505, %399 : vector<8x32xi1>, vector<8x32xf32>
    %c0_164 = arith.constant 0 : index
    %c0_165 = arith.constant 0 : index
    %515 = vector.load %arg10[%c0_164, %c0_165] : memref<32x128xf32, #tpu.memory_space<vmem>>, vector<32x128xf32>
    %cst_166 = arith.constant dense<0.000000e+00> : vector<8x128xf32>
    %516 = tpu.matmul %511, %515, %cst_166 {dimension_numbers = #tpu.dot_dimension_numbers<[1], [0], [0], [1], [0, 0, 1, 1], [], []>} : vector<8x32xf32>, vector<32x128xf32>, vector<8x128xf32> -> vector<8x128xf32>
    %c0_167 = arith.constant 0 : index
    %c0_168 = arith.constant 0 : index
    %517 = vector.load %arg11[%c0_167, %c0_168] : memref<32x128xf32, #tpu.memory_space<vmem>>, vector<32x128xf32>
    %cst_169 = arith.constant dense<0.000000e+00> : vector<8x128xf32>
    %518 = tpu.matmul %425, %517, %cst_169 {dimension_numbers = #tpu.dot_dimension_numbers<[1], [0], [0], [1], [0, 0, 1, 1], [], []>} : vector<8x32xf32>, vector<32x128xf32>, vector<8x128xf32> -> vector<8x128xf32>
    %519 = arith.addf %516, %518 : vector<8x128xf32>
    %c0_170 = arith.constant 0 : index
    %c0_171 = arith.constant 0 : index
    %520 = vector.load %arg12[%c0_170, %c0_171] : memref<1x128xf32, #tpu.memory_space<vmem>>, vector<1x128xf32>
    %521 = vector.broadcast %520 : vector<1x128xf32> to vector<8x128xf32>
    %522 = arith.addf %519, %521 : vector<8x128xf32>
    %523 = arith.negf %522 : vector<8x128xf32>
    %524 = math.exp %523 : vector<8x128xf32>
    %cst_172 = arith.constant 1.000000e+00 : f32
    %525 = vector.broadcast %cst_172 : f32 to vector<8x128xf32>
    %526 = arith.addf %525, %524 : vector<8x128xf32>
    %527 = arith.divf %525, %526 : vector<8x128xf32>
    %528 = math.tanh %522 : vector<8x128xf32>
    %529 = vector.extract_strided_slice %527 {offsets = [0, 32], sizes = [8, 32], strides = [1, 1]} : vector<8x128xf32> to vector<8x32xf32>
    %530 = arith.mulf %529, %428 : vector<8x32xf32>
    %531 = vector.extract_strided_slice %527 {offsets = [0, 0], sizes = [8, 32], strides = [1, 1]} : vector<8x128xf32> to vector<8x32xf32>
    %532 = vector.extract_strided_slice %528 {offsets = [0, 64], sizes = [8, 32], strides = [1, 1]} : vector<8x128xf32> to vector<8x32xf32>
    %533 = arith.mulf %531, %532 : vector<8x32xf32>
    %534 = arith.addf %530, %533 : vector<8x32xf32>
    %535 = vector.extract_strided_slice %527 {offsets = [0, 96], sizes = [8, 32], strides = [1, 1]} : vector<8x128xf32> to vector<8x32xf32>
    %536 = math.tanh %534 : vector<8x32xf32>
    %537 = arith.mulf %535, %536 : vector<8x32xf32>
    %538 = vector.shape_cast %489 : vector<8x1xi1> to vector<8x1xi1>
    %539 = vector.broadcast %538 : vector<8x1xi1> to vector<8x32xi1>
    %540 = arith.select %539, %537, %425 : vector<8x32xi1>, vector<8x32xf32>
    %541 = vector.shape_cast %489 : vector<8x1xi1> to vector<8x1xi1>
    %542 = vector.broadcast %541 : vector<8x1xi1> to vector<8x32xi1>
    %543 = arith.select %542, %534, %428 : vector<8x32xi1>, vector<8x32xf32>
    %c32_173 = arith.constant 32 : index
    %c0_174 = arith.constant 0 : index
    %544 = vector.load %arg26[%c32_173, %c0_174] : memref<64x32xf32, #tpu.memory_space<vmem>>, vector<8x32xf32>
    tpu.vector_store %arg26[%c32_173, %c0_174], %540 {strides = array<i32>} : memref<64x32xf32, #tpu.memory_space<vmem>>, vector<8x32xf32>,
    %c32_175 = arith.constant 32 : index
    %c0_176 = arith.constant 0 : index
    %545 = vector.load %arg4[%c32_175, %c0_176] : memref<48x1xf32, #tpu.memory_space<vmem>>, vector<8x1xf32>
    %cst_177 = arith.constant 0.000000e+00 : f32
    %546 = vector.broadcast %cst_177 : f32 to vector<8x1xf32>
    %547 = arith.cmpf ogt, %545, %546 : vector<8x1xf32>
    %548 = vector.extract_strided_slice %25 {offsets = [32, 0], sizes = [8, 128], strides = [1, 1]} : vector<48x128xf32> to vector<8x128xf32>
    %c0_178 = arith.constant 0 : index
    %c0_179 = arith.constant 0 : index
    %549 = vector.load %arg16[%c0_178, %c0_179] : memref<32x128xf32, #tpu.memory_space<vmem>>, vector<32x128xf32>
    %cst_180 = arith.constant dense<0.000000e+00> : vector<8x128xf32>
    %550 = tpu.matmul %454, %549, %cst_180 {dimension_numbers = #tpu.dot_dimension_numbers<[1], [0], [0], [1], [0, 0, 1, 1], [], []>} : vector<8x32xf32>, vector<32x128xf32>, vector<8x128xf32> -> vector<8x128xf32>
    %551 = arith.addf %548, %550 : vector<8x128xf32>
    %552 = arith.negf %551 : vector<8x128xf32>
    %553 = math.exp %552 : vector<8x128xf32>
    %cst_181 = arith.constant 1.000000e+00 : f32
    %554 = vector.broadcast %cst_181 : f32 to vector<8x128xf32>
    %555 = arith.addf %554, %553 : vector<8x128xf32>
    %556 = arith.divf %554, %555 : vector<8x128xf32>
    %557 = math.tanh %551 : vector<8x128xf32>
    %558 = vector.extract_strided_slice %556 {offsets = [0, 32], sizes = [8, 32], strides = [1, 1]} : vector<8x128xf32> to vector<8x32xf32>
    %559 = arith.mulf %558, %457 : vector<8x32xf32>
    %560 = vector.extract_strided_slice %556 {offsets = [0, 0], sizes = [8, 32], strides = [1, 1]} : vector<8x128xf32> to vector<8x32xf32>
    %561 = vector.extract_strided_slice %557 {offsets = [0, 64], sizes = [8, 32], strides = [1, 1]} : vector<8x128xf32> to vector<8x32xf32>
    %562 = arith.mulf %560, %561 : vector<8x32xf32>
    %563 = arith.addf %559, %562 : vector<8x32xf32>
    %564 = vector.extract_strided_slice %556 {offsets = [0, 96], sizes = [8, 32], strides = [1, 1]} : vector<8x128xf32> to vector<8x32xf32>
    %565 = math.tanh %563 : vector<8x32xf32>
    %566 = arith.mulf %564, %565 : vector<8x32xf32>
    %567 = vector.shape_cast %547 : vector<8x1xi1> to vector<8x1xi1>
    %568 = vector.broadcast %567 : vector<8x1xi1> to vector<8x32xi1>
    %569 = arith.select %568, %566, %454 : vector<8x32xi1>, vector<8x32xf32>
    %570 = vector.shape_cast %547 : vector<8x1xi1> to vector<8x1xi1>
    %571 = vector.broadcast %570 : vector<8x1xi1> to vector<8x32xi1>
    %572 = arith.select %571, %563, %457 : vector<8x32xi1>, vector<8x32xf32>
    %c0_182 = arith.constant 0 : index
    %c0_183 = arith.constant 0 : index
    %573 = vector.load %arg18[%c0_182, %c0_183] : memref<32x128xf32, #tpu.memory_space<vmem>>, vector<32x128xf32>
    %cst_184 = arith.constant dense<0.000000e+00> : vector<8x128xf32>
    %574 = tpu.matmul %569, %573, %cst_184 {dimension_numbers = #tpu.dot_dimension_numbers<[1], [0], [0], [1], [0, 0, 1, 1], [], []>} : vector<8x32xf32>, vector<32x128xf32>, vector<8x128xf32> -> vector<8x128xf32>
    %c0_185 = arith.constant 0 : index
    %c0_186 = arith.constant 0 : index
    %575 = vector.load %arg19[%c0_185, %c0_186] : memref<32x128xf32, #tpu.memory_space<vmem>>, vector<32x128xf32>
    %cst_187 = arith.constant dense<0.000000e+00> : vector<8x128xf32>
    %576 = tpu.matmul %483, %575, %cst_187 {dimension_numbers = #tpu.dot_dimension_numbers<[1], [0], [0], [1], [0, 0, 1, 1], [], []>} : vector<8x32xf32>, vector<32x128xf32>, vector<8x128xf32> -> vector<8x128xf32>
    %577 = arith.addf %574, %576 : vector<8x128xf32>
    %c0_188 = arith.constant 0 : index
    %c0_189 = arith.constant 0 : index
    %578 = vector.load %arg20[%c0_188, %c0_189] : memref<1x128xf32, #tpu.memory_space<vmem>>, vector<1x128xf32>
    %579 = vector.broadcast %578 : vector<1x128xf32> to vector<8x128xf32>
    %580 = arith.addf %577, %579 : vector<8x128xf32>
    %581 = arith.negf %580 : vector<8x128xf32>
    %582 = math.exp %581 : vector<8x128xf32>
    %cst_190 = arith.constant 1.000000e+00 : f32
    %583 = vector.broadcast %cst_190 : f32 to vector<8x128xf32>
    %584 = arith.addf %583, %582 : vector<8x128xf32>
    %585 = arith.divf %583, %584 : vector<8x128xf32>
    %586 = math.tanh %580 : vector<8x128xf32>
    %587 = vector.extract_strided_slice %585 {offsets = [0, 32], sizes = [8, 32], strides = [1, 1]} : vector<8x128xf32> to vector<8x32xf32>
    %588 = arith.mulf %587, %486 : vector<8x32xf32>
    %589 = vector.extract_strided_slice %585 {offsets = [0, 0], sizes = [8, 32], strides = [1, 1]} : vector<8x128xf32> to vector<8x32xf32>
    %590 = vector.extract_strided_slice %586 {offsets = [0, 64], sizes = [8, 32], strides = [1, 1]} : vector<8x128xf32> to vector<8x32xf32>
    %591 = arith.mulf %589, %590 : vector<8x32xf32>
    %592 = arith.addf %588, %591 : vector<8x32xf32>
    %593 = vector.extract_strided_slice %585 {offsets = [0, 96], sizes = [8, 32], strides = [1, 1]} : vector<8x128xf32> to vector<8x32xf32>
    %594 = math.tanh %592 : vector<8x32xf32>
    %595 = arith.mulf %593, %594 : vector<8x32xf32>
    %596 = vector.shape_cast %547 : vector<8x1xi1> to vector<8x1xi1>
    %597 = vector.broadcast %596 : vector<8x1xi1> to vector<8x32xi1>
    %598 = arith.select %597, %595, %483 : vector<8x32xi1>, vector<8x32xf32>
    %599 = vector.shape_cast %547 : vector<8x1xi1> to vector<8x1xi1>
    %600 = vector.broadcast %599 : vector<8x1xi1> to vector<8x32xi1>
    %601 = arith.select %600, %592, %486 : vector<8x32xi1>, vector<8x32xf32>
    %c40 = arith.constant 40 : index
    %c0_191 = arith.constant 0 : index
    %602 = vector.load %arg2[%c40, %c0_191] : memref<64x1xf32, #tpu.memory_space<vmem>>, vector<8x1xf32>
    %cst_192 = arith.constant 0.000000e+00 : f32
    %603 = vector.broadcast %cst_192 : f32 to vector<8x1xf32>
    %604 = arith.cmpf ogt, %602, %603 : vector<8x1xf32>
    %605 = vector.extract_strided_slice %12 {offsets = [40, 0], sizes = [8, 128], strides = [1, 1]} : vector<64x128xf32> to vector<8x128xf32>
    %c0_193 = arith.constant 0 : index
    %c0_194 = arith.constant 0 : index
    %606 = vector.load %arg8[%c0_193, %c0_194] : memref<32x128xf32, #tpu.memory_space<vmem>>, vector<32x128xf32>
    %cst_195 = arith.constant dense<0.000000e+00> : vector<8x128xf32>
    %607 = tpu.matmul %511, %606, %cst_195 {dimension_numbers = #tpu.dot_dimension_numbers<[1], [0], [0], [1], [0, 0, 1, 1], [], []>} : vector<8x32xf32>, vector<32x128xf32>, vector<8x128xf32> -> vector<8x128xf32>
    %608 = arith.addf %605, %607 : vector<8x128xf32>
    %609 = arith.negf %608 : vector<8x128xf32>
    %610 = math.exp %609 : vector<8x128xf32>
    %cst_196 = arith.constant 1.000000e+00 : f32
    %611 = vector.broadcast %cst_196 : f32 to vector<8x128xf32>
    %612 = arith.addf %611, %610 : vector<8x128xf32>
    %613 = arith.divf %611, %612 : vector<8x128xf32>
    %614 = math.tanh %608 : vector<8x128xf32>
    %615 = vector.extract_strided_slice %613 {offsets = [0, 32], sizes = [8, 32], strides = [1, 1]} : vector<8x128xf32> to vector<8x32xf32>
    %616 = arith.mulf %615, %514 : vector<8x32xf32>
    %617 = vector.extract_strided_slice %613 {offsets = [0, 0], sizes = [8, 32], strides = [1, 1]} : vector<8x128xf32> to vector<8x32xf32>
    %618 = vector.extract_strided_slice %614 {offsets = [0, 64], sizes = [8, 32], strides = [1, 1]} : vector<8x128xf32> to vector<8x32xf32>
    %619 = arith.mulf %617, %618 : vector<8x32xf32>
    %620 = arith.addf %616, %619 : vector<8x32xf32>
    %621 = vector.extract_strided_slice %613 {offsets = [0, 96], sizes = [8, 32], strides = [1, 1]} : vector<8x128xf32> to vector<8x32xf32>
    %622 = math.tanh %620 : vector<8x32xf32>
    %623 = arith.mulf %621, %622 : vector<8x32xf32>
    %624 = vector.shape_cast %604 : vector<8x1xi1> to vector<8x1xi1>
    %625 = vector.broadcast %624 : vector<8x1xi1> to vector<8x32xi1>
    %626 = arith.select %625, %623, %511 : vector<8x32xi1>, vector<8x32xf32>
    %627 = vector.shape_cast %604 : vector<8x1xi1> to vector<8x1xi1>
    %628 = vector.broadcast %627 : vector<8x1xi1> to vector<8x32xi1>
    %629 = arith.select %628, %620, %514 : vector<8x32xi1>, vector<8x32xf32>
    %c0_197 = arith.constant 0 : index
    %c0_198 = arith.constant 0 : index
    %630 = vector.load %arg10[%c0_197, %c0_198] : memref<32x128xf32, #tpu.memory_space<vmem>>, vector<32x128xf32>
    %cst_199 = arith.constant dense<0.000000e+00> : vector<8x128xf32>
    %631 = tpu.matmul %626, %630, %cst_199 {dimension_numbers = #tpu.dot_dimension_numbers<[1], [0], [0], [1], [0, 0, 1, 1], [], []>} : vector<8x32xf32>, vector<32x128xf32>, vector<8x128xf32> -> vector<8x128xf32>
    %c0_200 = arith.constant 0 : index
    %c0_201 = arith.constant 0 : index
    %632 = vector.load %arg11[%c0_200, %c0_201] : memref<32x128xf32, #tpu.memory_space<vmem>>, vector<32x128xf32>
    %cst_202 = arith.constant dense<0.000000e+00> : vector<8x128xf32>
    %633 = tpu.matmul %540, %632, %cst_202 {dimension_numbers = #tpu.dot_dimension_numbers<[1], [0], [0], [1], [0, 0, 1, 1], [], []>} : vector<8x32xf32>, vector<32x128xf32>, vector<8x128xf32> -> vector<8x128xf32>
    %634 = arith.addf %631, %633 : vector<8x128xf32>
    %c0_203 = arith.constant 0 : index
    %c0_204 = arith.constant 0 : index
    %635 = vector.load %arg12[%c0_203, %c0_204] : memref<1x128xf32, #tpu.memory_space<vmem>>, vector<1x128xf32>
    %636 = vector.broadcast %635 : vector<1x128xf32> to vector<8x128xf32>
    %637 = arith.addf %634, %636 : vector<8x128xf32>
    %638 = arith.negf %637 : vector<8x128xf32>
    %639 = math.exp %638 : vector<8x128xf32>
    %cst_205 = arith.constant 1.000000e+00 : f32
    %640 = vector.broadcast %cst_205 : f32 to vector<8x128xf32>
    %641 = arith.addf %640, %639 : vector<8x128xf32>
    %642 = arith.divf %640, %641 : vector<8x128xf32>
    %643 = math.tanh %637 : vector<8x128xf32>
    %644 = vector.extract_strided_slice %642 {offsets = [0, 32], sizes = [8, 32], strides = [1, 1]} : vector<8x128xf32> to vector<8x32xf32>
    %645 = arith.mulf %644, %543 : vector<8x32xf32>
    %646 = vector.extract_strided_slice %642 {offsets = [0, 0], sizes = [8, 32], strides = [1, 1]} : vector<8x128xf32> to vector<8x32xf32>
    %647 = vector.extract_strided_slice %643 {offsets = [0, 64], sizes = [8, 32], strides = [1, 1]} : vector<8x128xf32> to vector<8x32xf32>
    %648 = arith.mulf %646, %647 : vector<8x32xf32>
    %649 = arith.addf %645, %648 : vector<8x32xf32>
    %650 = vector.extract_strided_slice %642 {offsets = [0, 96], sizes = [8, 32], strides = [1, 1]} : vector<8x128xf32> to vector<8x32xf32>
    %651 = math.tanh %649 : vector<8x32xf32>
    %652 = arith.mulf %650, %651 : vector<8x32xf32>
    %653 = vector.shape_cast %604 : vector<8x1xi1> to vector<8x1xi1>
    %654 = vector.broadcast %653 : vector<8x1xi1> to vector<8x32xi1>
    %655 = arith.select %654, %652, %540 : vector<8x32xi1>, vector<8x32xf32>
    %656 = vector.shape_cast %604 : vector<8x1xi1> to vector<8x1xi1>
    %657 = vector.broadcast %656 : vector<8x1xi1> to vector<8x32xi1>
    %658 = arith.select %657, %649, %543 : vector<8x32xi1>, vector<8x32xf32>
    %c40_206 = arith.constant 40 : index
    %c0_207 = arith.constant 0 : index
    %659 = vector.load %arg26[%c40_206, %c0_207] : memref<64x32xf32, #tpu.memory_space<vmem>>, vector<8x32xf32>
    tpu.vector_store %arg26[%c40_206, %c0_207], %655 {strides = array<i32>} : memref<64x32xf32, #tpu.memory_space<vmem>>, vector<8x32xf32>,
    %c40_208 = arith.constant 40 : index
    %c0_209 = arith.constant 0 : index
    %660 = vector.load %arg4[%c40_208, %c0_209] : memref<48x1xf32, #tpu.memory_space<vmem>>, vector<8x1xf32>
    %cst_210 = arith.constant 0.000000e+00 : f32
    %661 = vector.broadcast %cst_210 : f32 to vector<8x1xf32>
    %662 = arith.cmpf ogt, %660, %661 : vector<8x1xf32>
    %663 = vector.extract_strided_slice %25 {offsets = [40, 0], sizes = [8, 128], strides = [1, 1]} : vector<48x128xf32> to vector<8x128xf32>
    %c0_211 = arith.constant 0 : index
    %c0_212 = arith.constant 0 : index
    %664 = vector.load %arg16[%c0_211, %c0_212] : memref<32x128xf32, #tpu.memory_space<vmem>>, vector<32x128xf32>
    %cst_213 = arith.constant dense<0.000000e+00> : vector<8x128xf32>
    %665 = tpu.matmul %569, %664, %cst_213 {dimension_numbers = #tpu.dot_dimension_numbers<[1], [0], [0], [1], [0, 0, 1, 1], [], []>} : vector<8x32xf32>, vector<32x128xf32>, vector<8x128xf32> -> vector<8x128xf32>
    %666 = arith.addf %663, %665 : vector<8x128xf32>
    %667 = arith.negf %666 : vector<8x128xf32>
    %668 = math.exp %667 : vector<8x128xf32>
    %cst_214 = arith.constant 1.000000e+00 : f32
    %669 = vector.broadcast %cst_214 : f32 to vector<8x128xf32>
    %670 = arith.addf %669, %668 : vector<8x128xf32>
    %671 = arith.divf %669, %670 : vector<8x128xf32>
    %672 = math.tanh %666 : vector<8x128xf32>
    %673 = vector.extract_strided_slice %671 {offsets = [0, 32], sizes = [8, 32], strides = [1, 1]} : vector<8x128xf32> to vector<8x32xf32>
    %674 = arith.mulf %673, %572 : vector<8x32xf32>
    %675 = vector.extract_strided_slice %671 {offsets = [0, 0], sizes = [8, 32], strides = [1, 1]} : vector<8x128xf32> to vector<8x32xf32>
    %676 = vector.extract_strided_slice %672 {offsets = [0, 64], sizes = [8, 32], strides = [1, 1]} : vector<8x128xf32> to vector<8x32xf32>
    %677 = arith.mulf %675, %676 : vector<8x32xf32>
    %678 = arith.addf %674, %677 : vector<8x32xf32>
    %679 = vector.extract_strided_slice %671 {offsets = [0, 96], sizes = [8, 32], strides = [1, 1]} : vector<8x128xf32> to vector<8x32xf32>
    %680 = math.tanh %678 : vector<8x32xf32>
    %681 = arith.mulf %679, %680 : vector<8x32xf32>
    %682 = vector.shape_cast %662 : vector<8x1xi1> to vector<8x1xi1>
    %683 = vector.broadcast %682 : vector<8x1xi1> to vector<8x32xi1>
    %684 = arith.select %683, %681, %569 : vector<8x32xi1>, vector<8x32xf32>
    %c0_215 = arith.constant 0 : index
    %c0_216 = arith.constant 0 : index
    %685 = vector.load %arg18[%c0_215, %c0_216] : memref<32x128xf32, #tpu.memory_space<vmem>>, vector<32x128xf32>
    %cst_217 = arith.constant dense<0.000000e+00> : vector<8x128xf32>
    %686 = tpu.matmul %684, %685, %cst_217 {dimension_numbers = #tpu.dot_dimension_numbers<[1], [0], [0], [1], [0, 0, 1, 1], [], []>} : vector<8x32xf32>, vector<32x128xf32>, vector<8x128xf32> -> vector<8x128xf32>
    %c0_218 = arith.constant 0 : index
    %c0_219 = arith.constant 0 : index
    %687 = vector.load %arg19[%c0_218, %c0_219] : memref<32x128xf32, #tpu.memory_space<vmem>>, vector<32x128xf32>
    %cst_220 = arith.constant dense<0.000000e+00> : vector<8x128xf32>
    %688 = tpu.matmul %598, %687, %cst_220 {dimension_numbers = #tpu.dot_dimension_numbers<[1], [0], [0], [1], [0, 0, 1, 1], [], []>} : vector<8x32xf32>, vector<32x128xf32>, vector<8x128xf32> -> vector<8x128xf32>
    %689 = arith.addf %686, %688 : vector<8x128xf32>
    %c0_221 = arith.constant 0 : index
    %c0_222 = arith.constant 0 : index
    %690 = vector.load %arg20[%c0_221, %c0_222] : memref<1x128xf32, #tpu.memory_space<vmem>>, vector<1x128xf32>
    %691 = vector.broadcast %690 : vector<1x128xf32> to vector<8x128xf32>
    %692 = arith.addf %689, %691 : vector<8x128xf32>
    %693 = arith.negf %692 : vector<8x128xf32>
    %694 = math.exp %693 : vector<8x128xf32>
    %cst_223 = arith.constant 1.000000e+00 : f32
    %695 = vector.broadcast %cst_223 : f32 to vector<8x128xf32>
    %696 = arith.addf %695, %694 : vector<8x128xf32>
    %697 = arith.divf %695, %696 : vector<8x128xf32>
    %698 = math.tanh %692 : vector<8x128xf32>
    %699 = vector.extract_strided_slice %697 {offsets = [0, 32], sizes = [8, 32], strides = [1, 1]} : vector<8x128xf32> to vector<8x32xf32>
    %700 = arith.mulf %699, %601 : vector<8x32xf32>
    %701 = vector.extract_strided_slice %697 {offsets = [0, 0], sizes = [8, 32], strides = [1, 1]} : vector<8x128xf32> to vector<8x32xf32>
    %702 = vector.extract_strided_slice %698 {offsets = [0, 64], sizes = [8, 32], strides = [1, 1]} : vector<8x128xf32> to vector<8x32xf32>
    %703 = arith.mulf %701, %702 : vector<8x32xf32>
    %704 = arith.addf %700, %703 : vector<8x32xf32>
    %705 = vector.extract_strided_slice %697 {offsets = [0, 96], sizes = [8, 32], strides = [1, 1]} : vector<8x128xf32> to vector<8x32xf32>
    %706 = math.tanh %704 : vector<8x32xf32>
    %707 = arith.mulf %705, %706 : vector<8x32xf32>
    %708 = vector.shape_cast %662 : vector<8x1xi1> to vector<8x1xi1>
    %709 = vector.broadcast %708 : vector<8x1xi1> to vector<8x32xi1>
    %710 = arith.select %709, %707, %598 : vector<8x32xi1>, vector<8x32xf32>
    %c48 = arith.constant 48 : index
    %c0_224 = arith.constant 0 : index
    %711 = vector.load %arg2[%c48, %c0_224] : memref<64x1xf32, #tpu.memory_space<vmem>>, vector<8x1xf32>
    %cst_225 = arith.constant 0.000000e+00 : f32
    %712 = vector.broadcast %cst_225 : f32 to vector<8x1xf32>
    %713 = arith.cmpf ogt, %711, %712 : vector<8x1xf32>
    %714 = vector.extract_strided_slice %12 {offsets = [48, 0], sizes = [8, 128], strides = [1, 1]} : vector<64x128xf32> to vector<8x128xf32>
    %c0_226 = arith.constant 0 : index
    %c0_227 = arith.constant 0 : index
    %715 = vector.load %arg8[%c0_226, %c0_227] : memref<32x128xf32, #tpu.memory_space<vmem>>, vector<32x128xf32>
    %cst_228 = arith.constant dense<0.000000e+00> : vector<8x128xf32>
    %716 = tpu.matmul %626, %715, %cst_228 {dimension_numbers = #tpu.dot_dimension_numbers<[1], [0], [0], [1], [0, 0, 1, 1], [], []>} : vector<8x32xf32>, vector<32x128xf32>, vector<8x128xf32> -> vector<8x128xf32>
    %717 = arith.addf %714, %716 : vector<8x128xf32>
    %718 = arith.negf %717 : vector<8x128xf32>
    %719 = math.exp %718 : vector<8x128xf32>
    %cst_229 = arith.constant 1.000000e+00 : f32
    %720 = vector.broadcast %cst_229 : f32 to vector<8x128xf32>
    %721 = arith.addf %720, %719 : vector<8x128xf32>
    %722 = arith.divf %720, %721 : vector<8x128xf32>
    %723 = math.tanh %717 : vector<8x128xf32>
    %724 = vector.extract_strided_slice %722 {offsets = [0, 32], sizes = [8, 32], strides = [1, 1]} : vector<8x128xf32> to vector<8x32xf32>
    %725 = arith.mulf %724, %629 : vector<8x32xf32>
    %726 = vector.extract_strided_slice %722 {offsets = [0, 0], sizes = [8, 32], strides = [1, 1]} : vector<8x128xf32> to vector<8x32xf32>
    %727 = vector.extract_strided_slice %723 {offsets = [0, 64], sizes = [8, 32], strides = [1, 1]} : vector<8x128xf32> to vector<8x32xf32>
    %728 = arith.mulf %726, %727 : vector<8x32xf32>
    %729 = arith.addf %725, %728 : vector<8x32xf32>
    %730 = vector.extract_strided_slice %722 {offsets = [0, 96], sizes = [8, 32], strides = [1, 1]} : vector<8x128xf32> to vector<8x32xf32>
    %731 = math.tanh %729 : vector<8x32xf32>
    %732 = arith.mulf %730, %731 : vector<8x32xf32>
    %733 = vector.shape_cast %713 : vector<8x1xi1> to vector<8x1xi1>
    %734 = vector.broadcast %733 : vector<8x1xi1> to vector<8x32xi1>
    %735 = arith.select %734, %732, %626 : vector<8x32xi1>, vector<8x32xf32>
    %736 = vector.shape_cast %713 : vector<8x1xi1> to vector<8x1xi1>
    %737 = vector.broadcast %736 : vector<8x1xi1> to vector<8x32xi1>
    %738 = arith.select %737, %729, %629 : vector<8x32xi1>, vector<8x32xf32>
    %c0_230 = arith.constant 0 : index
    %c0_231 = arith.constant 0 : index
    %739 = vector.load %arg10[%c0_230, %c0_231] : memref<32x128xf32, #tpu.memory_space<vmem>>, vector<32x128xf32>
    %cst_232 = arith.constant dense<0.000000e+00> : vector<8x128xf32>
    %740 = tpu.matmul %735, %739, %cst_232 {dimension_numbers = #tpu.dot_dimension_numbers<[1], [0], [0], [1], [0, 0, 1, 1], [], []>} : vector<8x32xf32>, vector<32x128xf32>, vector<8x128xf32> -> vector<8x128xf32>
    %c0_233 = arith.constant 0 : index
    %c0_234 = arith.constant 0 : index
    %741 = vector.load %arg11[%c0_233, %c0_234] : memref<32x128xf32, #tpu.memory_space<vmem>>, vector<32x128xf32>
    %cst_235 = arith.constant dense<0.000000e+00> : vector<8x128xf32>
    %742 = tpu.matmul %655, %741, %cst_235 {dimension_numbers = #tpu.dot_dimension_numbers<[1], [0], [0], [1], [0, 0, 1, 1], [], []>} : vector<8x32xf32>, vector<32x128xf32>, vector<8x128xf32> -> vector<8x128xf32>
    %743 = arith.addf %740, %742 : vector<8x128xf32>
    %c0_236 = arith.constant 0 : index
    %c0_237 = arith.constant 0 : index
    %744 = vector.load %arg12[%c0_236, %c0_237] : memref<1x128xf32, #tpu.memory_space<vmem>>, vector<1x128xf32>
    %745 = vector.broadcast %744 : vector<1x128xf32> to vector<8x128xf32>
    %746 = arith.addf %743, %745 : vector<8x128xf32>
    %747 = arith.negf %746 : vector<8x128xf32>
    %748 = math.exp %747 : vector<8x128xf32>
    %cst_238 = arith.constant 1.000000e+00 : f32
    %749 = vector.broadcast %cst_238 : f32 to vector<8x128xf32>
    %750 = arith.addf %749, %748 : vector<8x128xf32>
    %751 = arith.divf %749, %750 : vector<8x128xf32>
    %752 = math.tanh %746 : vector<8x128xf32>
    %753 = vector.extract_strided_slice %751 {offsets = [0, 32], sizes = [8, 32], strides = [1, 1]} : vector<8x128xf32> to vector<8x32xf32>
    %754 = arith.mulf %753, %658 : vector<8x32xf32>
    %755 = vector.extract_strided_slice %751 {offsets = [0, 0], sizes = [8, 32], strides = [1, 1]} : vector<8x128xf32> to vector<8x32xf32>
    %756 = vector.extract_strided_slice %752 {offsets = [0, 64], sizes = [8, 32], strides = [1, 1]} : vector<8x128xf32> to vector<8x32xf32>
    %757 = arith.mulf %755, %756 : vector<8x32xf32>
    %758 = arith.addf %754, %757 : vector<8x32xf32>
    %759 = vector.extract_strided_slice %751 {offsets = [0, 96], sizes = [8, 32], strides = [1, 1]} : vector<8x128xf32> to vector<8x32xf32>
    %760 = math.tanh %758 : vector<8x32xf32>
    %761 = arith.mulf %759, %760 : vector<8x32xf32>
    %762 = vector.shape_cast %713 : vector<8x1xi1> to vector<8x1xi1>
    %763 = vector.broadcast %762 : vector<8x1xi1> to vector<8x32xi1>
    %764 = arith.select %763, %761, %655 : vector<8x32xi1>, vector<8x32xf32>
    %765 = vector.shape_cast %713 : vector<8x1xi1> to vector<8x1xi1>
    %766 = vector.broadcast %765 : vector<8x1xi1> to vector<8x32xi1>
    %767 = arith.select %766, %758, %658 : vector<8x32xi1>, vector<8x32xf32>
    %c48_239 = arith.constant 48 : index
    %c0_240 = arith.constant 0 : index
    %768 = vector.load %arg26[%c48_239, %c0_240] : memref<64x32xf32, #tpu.memory_space<vmem>>, vector<8x32xf32>
    tpu.vector_store %arg26[%c48_239, %c0_240], %764 {strides = array<i32>} : memref<64x32xf32, #tpu.memory_space<vmem>>, vector<8x32xf32>,
    %c56 = arith.constant 56 : index
    %c0_241 = arith.constant 0 : index
    %769 = vector.load %arg2[%c56, %c0_241] : memref<64x1xf32, #tpu.memory_space<vmem>>, vector<8x1xf32>
    %cst_242 = arith.constant 0.000000e+00 : f32
    %770 = vector.broadcast %cst_242 : f32 to vector<8x1xf32>
    %771 = arith.cmpf ogt, %769, %770 : vector<8x1xf32>
    %772 = vector.extract_strided_slice %12 {offsets = [56, 0], sizes = [8, 128], strides = [1, 1]} : vector<64x128xf32> to vector<8x128xf32>
    %c0_243 = arith.constant 0 : index
    %c0_244 = arith.constant 0 : index
    %773 = vector.load %arg8[%c0_243, %c0_244] : memref<32x128xf32, #tpu.memory_space<vmem>>, vector<32x128xf32>
    %cst_245 = arith.constant dense<0.000000e+00> : vector<8x128xf32>
    %774 = tpu.matmul %735, %773, %cst_245 {dimension_numbers = #tpu.dot_dimension_numbers<[1], [0], [0], [1], [0, 0, 1, 1], [], []>} : vector<8x32xf32>, vector<32x128xf32>, vector<8x128xf32> -> vector<8x128xf32>
    %775 = arith.addf %772, %774 : vector<8x128xf32>
    %776 = arith.negf %775 : vector<8x128xf32>
    %777 = math.exp %776 : vector<8x128xf32>
    %cst_246 = arith.constant 1.000000e+00 : f32
    %778 = vector.broadcast %cst_246 : f32 to vector<8x128xf32>
    %779 = arith.addf %778, %777 : vector<8x128xf32>
    %780 = arith.divf %778, %779 : vector<8x128xf32>
    %781 = math.tanh %775 : vector<8x128xf32>
    %782 = vector.extract_strided_slice %780 {offsets = [0, 32], sizes = [8, 32], strides = [1, 1]} : vector<8x128xf32> to vector<8x32xf32>
    %783 = arith.mulf %782, %738 : vector<8x32xf32>
    %784 = vector.extract_strided_slice %780 {offsets = [0, 0], sizes = [8, 32], strides = [1, 1]} : vector<8x128xf32> to vector<8x32xf32>
    %785 = vector.extract_strided_slice %781 {offsets = [0, 64], sizes = [8, 32], strides = [1, 1]} : vector<8x128xf32> to vector<8x32xf32>
    %786 = arith.mulf %784, %785 : vector<8x32xf32>
    %787 = arith.addf %783, %786 : vector<8x32xf32>
    %788 = vector.extract_strided_slice %780 {offsets = [0, 96], sizes = [8, 32], strides = [1, 1]} : vector<8x128xf32> to vector<8x32xf32>
    %789 = math.tanh %787 : vector<8x32xf32>
    %790 = arith.mulf %788, %789 : vector<8x32xf32>
    %791 = vector.shape_cast %771 : vector<8x1xi1> to vector<8x1xi1>
    %792 = vector.broadcast %791 : vector<8x1xi1> to vector<8x32xi1>
    %793 = arith.select %792, %790, %735 : vector<8x32xi1>, vector<8x32xf32>
    %c0_247 = arith.constant 0 : index
    %c0_248 = arith.constant 0 : index
    %794 = vector.load %arg10[%c0_247, %c0_248] : memref<32x128xf32, #tpu.memory_space<vmem>>, vector<32x128xf32>
    %cst_249 = arith.constant dense<0.000000e+00> : vector<8x128xf32>
    %795 = tpu.matmul %793, %794, %cst_249 {dimension_numbers = #tpu.dot_dimension_numbers<[1], [0], [0], [1], [0, 0, 1, 1], [], []>} : vector<8x32xf32>, vector<32x128xf32>, vector<8x128xf32> -> vector<8x128xf32>
    %c0_250 = arith.constant 0 : index
    %c0_251 = arith.constant 0 : index
    %796 = vector.load %arg11[%c0_250, %c0_251] : memref<32x128xf32, #tpu.memory_space<vmem>>, vector<32x128xf32>
    %cst_252 = arith.constant dense<0.000000e+00> : vector<8x128xf32>
    %797 = tpu.matmul %764, %796, %cst_252 {dimension_numbers = #tpu.dot_dimension_numbers<[1], [0], [0], [1], [0, 0, 1, 1], [], []>} : vector<8x32xf32>, vector<32x128xf32>, vector<8x128xf32> -> vector<8x128xf32>
    %798 = arith.addf %795, %797 : vector<8x128xf32>
    %c0_253 = arith.constant 0 : index
    %c0_254 = arith.constant 0 : index
    %799 = vector.load %arg12[%c0_253, %c0_254] : memref<1x128xf32, #tpu.memory_space<vmem>>, vector<1x128xf32>
    %800 = vector.broadcast %799 : vector<1x128xf32> to vector<8x128xf32>
    %801 = arith.addf %798, %800 : vector<8x128xf32>
    %802 = arith.negf %801 : vector<8x128xf32>
    %803 = math.exp %802 : vector<8x128xf32>
    %cst_255 = arith.constant 1.000000e+00 : f32
    %804 = vector.broadcast %cst_255 : f32 to vector<8x128xf32>
    %805 = arith.addf %804, %803 : vector<8x128xf32>
    %806 = arith.divf %804, %805 : vector<8x128xf32>
    %807 = math.tanh %801 : vector<8x128xf32>
    %808 = vector.extract_strided_slice %806 {offsets = [0, 32], sizes = [8, 32], strides = [1, 1]} : vector<8x128xf32> to vector<8x32xf32>
    %809 = arith.mulf %808, %767 : vector<8x32xf32>
    %810 = vector.extract_strided_slice %806 {offsets = [0, 0], sizes = [8, 32], strides = [1, 1]} : vector<8x128xf32> to vector<8x32xf32>
    %811 = vector.extract_strided_slice %807 {offsets = [0, 64], sizes = [8, 32], strides = [1, 1]} : vector<8x128xf32> to vector<8x32xf32>
    %812 = arith.mulf %810, %811 : vector<8x32xf32>
    %813 = arith.addf %809, %812 : vector<8x32xf32>
    %814 = vector.extract_strided_slice %806 {offsets = [0, 96], sizes = [8, 32], strides = [1, 1]} : vector<8x128xf32> to vector<8x32xf32>
    %815 = math.tanh %813 : vector<8x32xf32>
    %816 = arith.mulf %814, %815 : vector<8x32xf32>
    %817 = vector.shape_cast %771 : vector<8x1xi1> to vector<8x1xi1>
    %818 = vector.broadcast %817 : vector<8x1xi1> to vector<8x32xi1>
    %819 = arith.select %818, %816, %764 : vector<8x32xi1>, vector<8x32xf32>
    %c56_256 = arith.constant 56 : index
    %c0_257 = arith.constant 0 : index
    %820 = vector.load %arg26[%c56_256, %c0_257] : memref<64x32xf32, #tpu.memory_space<vmem>>, vector<8x32xf32>
    tpu.vector_store %arg26[%c56_256, %c0_257], %819 {strides = array<i32>} : memref<64x32xf32, #tpu.memory_space<vmem>>, vector<8x32xf32>,
    %c0_258 = arith.constant 0 : index
    %c0_259 = arith.constant 0 : index
    %821 = vector.load %arg23[%c0_258, %c0_259] : memref<8x32xf32, #tpu.memory_space<vmem>>, vector<8x32xf32>
    tpu.vector_store %arg23[%c0_258, %c0_259], %819 {strides = array<i32>} : memref<8x32xf32, #tpu.memory_space<vmem>>, vector<8x32xf32>,
    %c0_260 = arith.constant 0 : index
    %c0_261 = arith.constant 0 : index
    %822 = vector.load %arg24[%c0_260, %c0_261] : memref<8x32xf32, #tpu.memory_space<vmem>>, vector<8x32xf32>
    tpu.vector_store %arg24[%c0_260, %c0_261], %710 {strides = array<i32>} : memref<8x32xf32, #tpu.memory_space<vmem>>, vector<8x32xf32>,
    %c0_262 = arith.constant 0 : index
    %c0_263 = arith.constant 0 : index
    %823 = vector.load %arg26[%c0_262, %c0_263] : memref<64x32xf32, #tpu.memory_space<vmem>>, vector<64x32xf32>
    %c0_264 = arith.constant 0 : index
    %c0_265 = arith.constant 0 : index
    %824 = vector.load %arg21[%c0_264, %c0_265] : memref<32x128xf32, #tpu.memory_space<vmem>>, vector<32x128xf32>
    %cst_266 = arith.constant dense<0.000000e+00> : vector<64x128xf32>
    %825 = tpu.matmul %823, %824, %cst_266 {dimension_numbers = #tpu.dot_dimension_numbers<[1], [0], [0], [1], [0, 0, 1, 1], [], []>} : vector<64x32xf32>, vector<32x128xf32>, vector<64x128xf32> -> vector<64x128xf32>
    %c0_267 = arith.constant 0 : index
    %c0_268 = arith.constant 0 : index
    %826 = vector.load %arg22[%c0_267, %c0_268] : memref<1x128xf32, #tpu.memory_space<vmem>>, vector<1x128xf32>
    %827 = vector.broadcast %826 : vector<1x128xf32> to vector<64x128xf32>
    %828 = arith.addf %825, %827 : vector<64x128xf32>
    %c0_269 = arith.constant 0 : index
    %c0_270 = arith.constant 0 : index
    %829 = vector.load %arg2[%c0_269, %c0_270] : memref<64x1xf32, #tpu.memory_space<vmem>>, vector<64x1xf32>
    %830 = vector.broadcast %829 : vector<64x1xf32> to vector<64x128xf32>
    %831 = arith.mulf %828, %830 : vector<64x128xf32>
    %c0_271 = arith.constant 0 : index
    %c0_272 = arith.constant 0 : index
    %832 = vector.load %arg25[%c0_271, %c0_272] : memref<64x128xf32, #tpu.memory_space<vmem>>, vector<64x128xf32>
    tpu.vector_store %arg25[%c0_271, %c0_272], %831 {strides = array<i32>} : memref<64x128xf32, #tpu.memory_space<vmem>>, vector<64x128xf32>,
    return
  }
  func.func @transform_0(%arg0: i32) -> (i32, i32) {
    %c0_i32 = arith.constant 0 : i32
    %c0_i32_0 = arith.constant 0 : i32
    %c0_i32_1 = arith.constant 0 : i32
    return %c0_i32, %c0_i32_0 : i32, i32
  }
  func.func @transform_1(%arg0: i32) -> (i32, i32) {
    %c0_i32 = arith.constant 0 : i32
    %c0_i32_0 = arith.constant 0 : i32
    %c0_i32_1 = arith.constant 0 : i32
    return %c0_i32, %c0_i32_0 : i32, i32
  }
  func.func @transform_2(%arg0: i32) -> (i32, i32) {
    %c0_i32 = arith.constant 0 : i32
    %c0_i32_0 = arith.constant 0 : i32
    %c0_i32_1 = arith.constant 0 : i32
    return %c0_i32, %c0_i32_0 : i32, i32
  }
  func.func @transform_3(%arg0: i32) -> (i32, i32) {
    %c0_i32 = arith.constant 0 : i32
    %c0_i32_0 = arith.constant 0 : i32
    %c0_i32_1 = arith.constant 0 : i32
    return %c0_i32, %c0_i32_0 : i32, i32
  }
  func.func @transform_4(%arg0: i32) -> (i32, i32) {
    %c0_i32 = arith.constant 0 : i32
    %c0_i32_0 = arith.constant 0 : i32
    %c0_i32_1 = arith.constant 0 : i32
    return %c0_i32, %c0_i32_0 : i32, i32
  }
  func.func @transform_5(%arg0: i32) -> (i32, i32) {
    %c0_i32 = arith.constant 0 : i32
    %c0_i32_0 = arith.constant 0 : i32
    %c0_i32_1 = arith.constant 0 : i32
    return %c0_i32, %c0_i32_0 : i32, i32
  }
  func.func @transform_6(%arg0: i32) -> (i32, i32) {
    %c0_i32 = arith.constant 0 : i32
    %c0_i32_0 = arith.constant 0 : i32
    %c0_i32_1 = arith.constant 0 : i32
    return %c0_i32, %c0_i32_0 : i32, i32
  }
  func.func @transform_7(%arg0: i32) -> (i32, i32) {
    %c0_i32 = arith.constant 0 : i32
    %c0_i32_0 = arith.constant 0 : i32
    %c0_i32_1 = arith.constant 0 : i32
    return %c0_i32, %c0_i32_0 : i32, i32
  }
  func.func @transform_8(%arg0: i32) -> (i32, i32) {
    %c0_i32 = arith.constant 0 : i32
    %c0_i32_0 = arith.constant 0 : i32
    %c0_i32_1 = arith.constant 0 : i32
    return %c0_i32, %c0_i32_0 : i32, i32
  }
  func.func @transform_9(%arg0: i32) -> (i32, i32) {
    %c0_i32 = arith.constant 0 : i32
    %c0_i32_0 = arith.constant 0 : i32
    %c0_i32_1 = arith.constant 0 : i32
    return %c0_i32, %c0_i32_0 : i32, i32
  }
  func.func @transform_10(%arg0: i32) -> (i32, i32) {
    %c0_i32 = arith.constant 0 : i32
    %c0_i32_0 = arith.constant 0 : i32
    %c0_i32_1 = arith.constant 0 : i32
    return %c0_i32, %c0_i32_0 : i32, i32
  }
  func.func @transform_11(%arg0: i32) -> (i32, i32) {
    %c0_i32 = arith.constant 0 : i32
    %c0_i32_0 = arith.constant 0 : i32
    %c0_i32_1 = arith.constant 0 : i32
    return %c0_i32, %c0_i32_0 : i32, i32
  }
  func.func @transform_12(%arg0: i32) -> (i32, i32) {
    %c0_i32 = arith.constant 0 : i32
    %c0_i32_0 = arith.constant 0 : i32
    %c0_i32_1 = arith.constant 0 : i32
    return %c0_i32, %c0_i32_0 : i32, i32
  }
  func.func @transform_13(%arg0: i32) -> (i32, i32) {
    %c0_i32 = arith.constant 0 : i32
    %c0_i32_0 = arith.constant 0 : i32
    %c0_i32_1 = arith.constant 0 : i32
    return %c0_i32, %c0_i32_0 : i32, i32
  }
  func.func @transform_14(%arg0: i32) -> (i32, i32) {
    %c0_i32 = arith.constant 0 : i32
    %c0_i32_0 = arith.constant 0 : i32
    %c0_i32_1 = arith.constant 0 : i32
    return %c0_i32, %c0_i32_0 : i32, i32
  }
  func.func @transform_15(%arg0: i32) -> (i32, i32) {
    %c0_i32 = arith.constant 0 : i32
    %c0_i32_0 = arith.constant 0 : i32
    %c0_i32_1 = arith.constant 0 : i32
    return %c0_i32, %c0_i32_0 : i32, i32
  }
  func.func @transform_16(%arg0: i32) -> (i32, i32) {
    %c0_i32 = arith.constant 0 : i32
    %c0_i32_0 = arith.constant 0 : i32
    %c0_i32_1 = arith.constant 0 : i32
    return %c0_i32, %c0_i32_0 : i32, i32
  }
  func.func @transform_17(%arg0: i32) -> (i32, i32) {
    %c0_i32 = arith.constant 0 : i32
    %c0_i32_0 = arith.constant 0 : i32
    %c0_i32_1 = arith.constant 0 : i32
    return %c0_i32, %c0_i32_0 : i32, i32
  }
  func.func @transform_18(%arg0: i32) -> (i32, i32) {
    %c0_i32 = arith.constant 0 : i32
    %c0_i32_0 = arith.constant 0 : i32
    %c0_i32_1 = arith.constant 0 : i32
    return %c0_i32, %c0_i32_0 : i32, i32
  }
  func.func @transform_19(%arg0: i32) -> (i32, i32) {
    %c0_i32 = arith.constant 0 : i32
    %c0_i32_0 = arith.constant 0 : i32
    %c0_i32_1 = arith.constant 0 : i32
    return %c0_i32, %c0_i32_0 : i32, i32
  }
  func.func @transform_20(%arg0: i32) -> (i32, i32) {
    %c0_i32 = arith.constant 0 : i32
    %c0_i32_0 = arith.constant 0 : i32
    %c0_i32_1 = arith.constant 0 : i32
    return %c0_i32, %c0_i32_0 : i32, i32
  }
  func.func @transform_21(%arg0: i32) -> (i32, i32) {
    %c0_i32 = arith.constant 0 : i32
    %c0_i32_0 = arith.constant 0 : i32
    %c0_i32_1 = arith.constant 0 : i32
    return %c0_i32, %c0_i32_0 : i32, i32
  }
  func.func @transform_22(%arg0: i32) -> (i32, i32) {
    %c0_i32 = arith.constant 0 : i32
    %c0_i32_0 = arith.constant 0 : i32
    %c0_i32_1 = arith.constant 0 : i32
    return %c0_i32, %c0_i32_0 : i32, i32
  }
  func.func @transform_23(%arg0: i32) -> (i32, i32) {
    %c0_i32 = arith.constant 0 : i32
    %c0_i32_0 = arith.constant 0 : i32
    %c0_i32_1 = arith.constant 0 : i32
    return %c0_i32, %c0_i32_0 : i32, i32
  }
  func.func @transform_24(%arg0: i32) -> (i32, i32) {
    %c0_i32 = arith.constant 0 : i32
    %c0_i32_0 = arith.constant 0 : i32
    %c0_i32_1 = arith.constant 0 : i32
    return %c0_i32, %c0_i32_0 : i32, i32
  }
}

</mosaic_0001>

<bundles_post_ra>
// kernel: tpu_custom_call.1
= control target key start
LH: loop header
LB: loop body
LE: loop exit
PB: predicated region body
PF: predicated region fallthrough
CT: control target
= control target key end

     0   :  { %s8321_s0 = inlined_call_operand.vmem [shape: f32[64,24], index: 0, kind: input, shape index: {}]   ;;  %s8322_s1 = inlined_call_operand.vmem [shape: f32[64,1], index: 1, kind: input, shape index: {}]   ;;  %s8323_s2 = inlined_call_operand.vmem [shape: f32[48,24], index: 2, kind: input, shape index: {}]   ;;  %s8324_s3 = inlined_call_operand.vmem [shape: f32[48,1], index: 3, kind: input, shape index: {}]   ;;  %s8325_s4 = inlined_call_operand.hbm [shape: f32[24,32], index: 4, kind: input, shape index: {}]   ;;  %s8326_s5 = inlined_call_operand.vmem [shape: f32[1,32], index: 5, kind: input, shape index: {}]   ;;  %s8327_s6 = inlined_call_operand.vmem [shape: f32[32,128], index: 6, kind: input, shape index: {}]   ;;  %s8328_s7 = inlined_call_operand.vmem [shape: f32[32,128], index: 7, kind: input, shape index: {}]   ;;  %s8329_s8 = inlined_call_operand.vmem [shape: f32[1,128], index: 8, kind: input, shape index: {}]   ;;  %s8330_s9 = inlined_call_operand.vmem [shape: f32[32,128], index: 9, kind: input, shape index: {}]   ;;  %s8331_s10 = inlined_call_operand.vmem [shape: f32[32,128], index: 10, kind: input, shape index: {}]   ;;  %s8332_s11 = inlined_call_operand.hbm [shape: f32[1,128], index: 11, kind: input, shape index: {}]   ;;  %s8333_s12 = inlined_call_operand.vmem [shape: f32[24,32], index: 12, kind: input, shape index: {}]   ;;  %s8334_s13 = inlined_call_operand.vmem [shape: f32[1,32], index: 13, kind: input, shape index: {}]   ;;  %s8335_s14 = inlined_call_operand.vmem [shape: f32[32,128], index: 14, kind: input, shape index: {}]   ;;  %s8336_s15 = inlined_call_operand.vmem [shape: f32[32,128], index: 15, kind: input, shape index: {}]   ;;  %s8337_s16 = inlined_call_operand.vmem [shape: f32[1,128], index: 16, kind: input, shape index: {}]   ;;  %s8338_s17 = inlined_call_operand.vmem [shape: f32[32,128], index: 17, kind: input, shape index: {}]   ;;  %s8339_s18 = inlined_call_operand.vmem [shape: f32[32,128], index: 18, kind: input, shape index: {}]   ;;  %s8340_s19 = inlined_call_operand.vmem [shape: f32[1,128], index: 19, kind: input, shape index: {}]   ;;  %s8341_s20 = inlined_call_operand.vmem [shape: f32[32,128], index: 20, kind: input, shape index: {}]   ;;  %s8342_s21 = inlined_call_operand.vmem [shape: f32[1,128], index: 21, kind: input, shape index: {}]   ;;  %s8343_s22 = inlined_call_operand.hbm [shape: f32[8,32], index: 22, kind: output, shape index: {0}]   ;;  %s8344_s23 = inlined_call_operand.hbm [shape: f32[8,32], index: 23, kind: output, shape index: {1}]   ;;  %s8345_s24 = inlined_call_operand.hbm [shape: f32[64,128], index: 24, kind: output, shape index: {2}]  }
   0x1   :  { %8354 = sst [smem:[#allocation16_spill]] %s8321_s0 }
   0x2   :  { %8355 = sst [smem:[#allocation17_spill]] %s8322_s1 }
   0x3   :  { %8356 = sst [smem:[#allocation18_spill]] %s8323_s2 }
   0x4   :  { %8357 = sst [smem:[#allocation19_spill]] %s8324_s3 }
   0x5   :  { %8358 = sst [smem:[#allocation20_spill]] %s8325_s4 }
   0x6   :  { %8359 = sst [smem:[#allocation21_spill]] %s8326_s5 }
   0x7   :  { %8360 = sst [smem:[#allocation22_spill]] %s8327_s6 }
   0x8   :  { %8361 = sst [smem:[#allocation23_spill]] %s8328_s7 }
   0x9   :  { %8362 = sst [smem:[#allocation24_spill]] %s8329_s8 }
   0xa   :  { %8363 = sst [smem:[#allocation25_spill]] %s8345_s24 }
   0xb   :  { %30 = vsyncpa [#allocation4], 0 }
   0xc   :  { %31 = vsyncpa [#allocation7], 0 }
   0xd   :  { %32 = vsyncpa [#allocation5], 0 }
   0xe   :  { %33 = vsyncpa [#allocation10], 0  ;;  %s6711_s5 = smov [#allocation3]   ;;  %s8364_s6 = sld [smem:[#allocation20_spill]] }
   0xf   :  { %s47_s26 = sshll.u32 %s6711_s5, 4  ;;  %s48_s26 = int_to_ptr.vmem [resolvable:$true] %s47_s26 }
  0x14   :  { %s6593_s2 = scalar_lea.hbm %s8364_s6, 384 }
  0x15   :  { %p6594_p0 = scmp.ne.s32.totalorder %s8364_s6, %s6593_s2  ;;  %p6597_p1 = scmp.lt.u32.totalorder %s6593_s2, %s8364_s6 }
  0x17   :  { %p6599_p2 = pnand %p6597_p1, %p6594_p0 }
  0x19   :  { %6602 = shalt.err (!%p6599_p2)
}
  0x1a   :  { %s6603_s3 = scalar_lea.vmem %s48_s26, 384  ;;  %p6608_p4 = scmp.lt.s32.totalorder %s48_s26, %s48_s26 }
  0x1b   :  { %p6604_p3 = scmp.ne.s32.totalorder %s48_s26, %s6603_s3  ;;  %p6609_p5 = scmp.lt.s32.totalorder %s6603_s3, %s6603_s3 }
  0x1d   :  { %p6610_p6 = por %p6609_p5, %p6608_p4 }
  0x1f   :  { %p6611_p7 = pnand %p6610_p6, %p6604_p3 }
  0x21   :  { %6614 = shalt.err (!%p6611_p7)
}
  0x22   :  { %s6712_s25 = smov 128   ;;  %s6713_s8 = smov 8  }
  0x23   :  { %53 = dma.hbm_to_vmem [thread:$0]  %s8364_s6, 384, %s48_s26, [#allocation4], %s6712_s25, %s6712_s25, %s6713_s8  }
  0x24   :  { %s6714_s5 = smov [#allocation6]   ;;  %s6615_s29 = scalar_lea.hbm %s8332_s11, 16 }
  0x25   :  { %s72_s27 = sshll.u32 %s6714_s5, 4  ;;  %p6616_p8 = scmp.ne.s32.totalorder %s8332_s11, %s6615_s29  ;;  %s73_s27 = int_to_ptr.vmem [resolvable:$true] %s72_s27 }
  0x26   :  { %p6619_p9 = scmp.lt.u32.totalorder %s6615_s29, %s8332_s11 }
  0x28   :  { %p6621_p10 = pnand %p6619_p9, %p6616_p8 }
  0x2a   :  { %6624 = shalt.err (!%p6621_p10)
}
  0x2b   :  { %s6625_s24 = scalar_lea.vmem %s73_s27, 16  ;;  %s6629_s26 = scalar_lea.vmem %s73_s27, 32 }
  0x2c   :  { %p6626_p11 = scmp.ne.s32.totalorder %s73_s27, %s6625_s24  ;;  %p6630_p12 = scmp.lt.s32.totalorder %s73_s27, %s73_s27 }
  0x2d   :  { %p6631_p13 = scmp.lt.s32.totalorder %s6629_s26, %s6625_s24 }
  0x2f   :  { %p6632_p0 = por %p6631_p13, %p6630_p12 }
  0x31   :  { %p6633_p1 = pnand %p6632_p0, %p6626_p11 }
  0x33   :  { %6636 = shalt.err (!%p6633_p1)
}
  0x34   :  { %75 = dma.hbm_to_vmem [thread:$0]  %s8332_s11, 16, %s73_s27, [#allocation7]  }
  0x35   :  { %6703 = dma.done.wait [#allocation4], 384  }
  0x36   :  { %6704 = vsyncadd [#allocation4], 4294966912 }
  0x37   :  { %6705 = dma.done.wait [#allocation7], 16  }
  0x38   :  { %6706 = vsyncadd [#allocation7], 4294967280  ;;  %vm120_vm0 = vcmask 195584   ;;  %v110_v0 = vld [vmem:[#allocation3] sm:$0xff]  ;;  %v111_v1 = vld [vmem:[#allocation3 + $0x8] sm:$0xff]  ;;  %s8365_s28 = sld [smem:[#allocation16_spill]] }
  0x39   :  { %v6066_v2 = vpack.c.bf16 %v111_v1, %v110_v0  ;;  %v112_v4 = vld [vmem:[#allocation3 + $0x10] sm:$0xff]  ;;  %v405_v6 = vld [vmem:[%s8333_s12] sm:$0xff]  ;;  %v406_v7 = vld [vmem:[%s8333_s12 + $0x8] sm:$0xff]  ;;  %s8366_s1 = sld [smem:[#allocation22_spill]]  ;;  %s8367_s24 = sld [smem:[#allocation18_spill]]  ;;  %v6715_v25 = vmov 0.0|0.0  }
  0x3a   :  { %v6078_v10 = vpack.c.bf16 %v406_v7, %v405_v6  ;;  %v407_v16 = vld [vmem:[%s8333_s12 + $0x10] sm:$0xff]  ;;  %s8368_s11 = sld [smem:[#allocation23_spill]]  ;;  %vm6716_vm1 = vmmov 0   ;;  %v6717_v35 = vmov 0.0   ;;  %v534_v36 = vld [vmem:[%s8335_s14] sm:$0xff]  ;;  %v535_v37 = vld [vmem:[%s8335_s14 + $0x8] sm:$0xff] }
  0x3b   :  { %6067 = vmatprep.subr.bf16.mxu0 %v6066_v2  ;;  %6350 = vmatprep.subr.bf16.mxu1 %v6066_v2  ;;  %v6082_v38 = vpack.c.bf16 %v535_v37, %v534_v36  ;;  %s8369_s2 = sld [smem:[#allocation21_spill]]  ;;  %v536_v46 = vld [vmem:[%s8335_s14 + $0x10] sm:$0xff]  ;;  %v537_v47 = vld [vmem:[%s8335_s14 + $0x18] sm:$0xff]  ;;  %vm269_vm2 = vcmask 261120   ;;  %v5147_v0 = vld [vmem:[%s8334_s13] ss:$0 sm:$0xff] }
  0x3c   :  { %6069 = vmatpush3.bf16.msra.mxu0 %v6066_v2  ;;  %6352 = vmatpush3.bf16.msra.mxu1 %v6066_v2  ;;  %v6086_v56 = vpack.c.bf16 %v537_v47, %v536_v46  ;;  %v966_v36 = vld [vmem:[%s8336_s15 + $0x18] sm:$0xff]  ;;  %s8370_s7 = sld [smem:[#allocation17_spill]]  ;;  %s6719_s6 = smov 64  }
  0x3d   :  { %5518 = vmatprep.subr.mxu0 %v112_v4  ;;  %6351 = vmatprep.subr.mxu1 %v112_v4  ;;  %s8372_s30 = sld [smem:[#allocation19_spill]] }
  0x3e   :  { %v102_v3 = vld [vmem:[%s8365_s28] sm:$0xff]  ;;  %v103_v8 = vld [vmem:[%s8365_s28 + $0x8] sm:$0xff]  ;;  %v104_v12 = vld [vmem:[%s8365_s28 + $0x10] sm:$0xff] }
  0x3f   :  { %5520 = vmatprep.mubr.msk.f32.mxu0 %vm120_vm0, %v102_v3  ;;  %v106_v5 = vld [vmem:[%s8365_s28 + $0x20] sm:$0xff]  ;;  %v107_v9 = vld [vmem:[%s8365_s28 + $0x28] sm:$0xff]  ;;  %v108_v14 = vld [vmem:[%s8365_s28 + $0x30] sm:$0xff] }
  0x40   :  { %5526 = vmatprep.mubr.msk.f32.mxu1 %vm120_vm0, %v106_v5  ;;  %v258_v11 = vld [vmem:[%s8366_s1] sm:$0xff]  ;;  %v259_v13 = vld [vmem:[%s8366_s1 + $0x8] sm:$0xff]  ;;  %5519 = vmatpush3.msra.mxu0 %v112_v4  ;;  %v105_v17 = vld [vmem:[%s8365_s28 + $0x18] sm:$0xff] }
  0x41   :  { %6353 = vmatpush3.msra.mxu1 %v112_v4  ;;  %v6070_v15 = vpack.c.bf16 %v259_v13, %v258_v11  ;;  %5521 = vmatmul.mubr.msk.f32.vlgmr.msra.gmra.mrb[0].mxu0 %vm120_vm0, %v103_v8  ;;  %v109_v18 = vld [vmem:[%s8365_s28 + $0x38] sm:$0xff]  ;;  %v399_v19 = vld [vmem:[%s8367_s24] sm:$0xff]  ;;  %v661_v21 = vld [vmem:[%s8368_s11 + $0x8] sm:$0xff] }
  0x42   :  { %5527 = vmatmul.mubr.msk.f32.vlgmr.msra.gmra.mrb[0].mxu1 %vm120_vm0, %v107_v9  ;;  %5523 = vmatprep.mubr.msk.f32.mxu0 %vm120_vm0, %v104_v12  ;;  %v660_v20 = vld [vmem:[%s8368_s11] sm:$0xff]  ;;  %v400_v22 = vld [vmem:[%s8367_s24 + $0x8] sm:$0xff]  ;;  %v401_v24 = vld [vmem:[%s8367_s24 + $0x10] sm:$0xff] }
  0x43   :  { %6079 = vmatprep.subr.bf16.mxu0 %v6078_v10  ;;  %5529 = vmatprep.mubr.msk.f32.mxu1 %vm120_vm0, %v108_v14  ;;  %v6936_v23 = vpack.c.bf16 %v661_v21, %v660_v20  ;;  %v402_v26 = vld [vmem:[%s8367_s24 + $0x18] sm:$0xff]  ;;  %v403_v27 = vld [vmem:[%s8367_s24 + $0x20] sm:$0xff]  ;;  %v404_v28 = vld [vmem:[%s8367_s24 + $0x28] sm:$0xff] }
  0x44   :  { %6081 = vmatpush3.bf16.msra.mxu0 %v6078_v10  ;;  %6071 = vmatprep.subr.bf16.mxu1 %v6070_v15  ;;  %v260_v29 = vld [vmem:[%s8366_s1 + $0x10] sm:$0xff]  ;;  %v261_v30 = vld [vmem:[%s8366_s1 + $0x18] sm:$0xff]  ;;  %v5129_v39 = vld [vmem:[%s8369_s2] ss:$0 sm:$0xff]  ;;  %s8371_s1 = sld [smem:[#allocation24_spill]] }
  0x45   :  { %5556 = vmatprep.subr.mxu0 %v407_v16  ;;  %5524 = vmatmul.mubr.msk.f32.gmra.mrb[2].mxu0 %vm120_vm0, %v105_v17  ;;  %v6074_v31 = vpack.c.bf16 %v261_v30, %v260_v29  ;;  %v662_v32 = vld [vmem:[%s8368_s11 + $0x10] sm:$0xff]  ;;  %v663_v33 = vld [vmem:[%s8368_s11 + $0x18] sm:$0xff]  ;;  %v773_v14 = vld [vmem:[%s8331_s10] sm:$0xff] }
  0x46   :  { %5530 = vmatmul.mubr.msk.f32.gmra.mrb[2].mxu1 %vm120_vm0, %v109_v18  ;;  %5558 = vmatprep.mubr.msk.f32.mxu0 %vm120_vm0, %v399_v19  ;;  %v6970_v34 = vpack.c.bf16 %v663_v33, %v662_v32  ;;  %v775_v21 = vld [vmem:[%s8331_s10 + $0x10] sm:$0xff]  ;;  %v963_v30 = vld [vmem:[%s8336_s15] sm:$0xff] }
  0x47   :  { %6073 = vmatpush3.bf16.msra.mxu1 %v6070_v15  ;;  %v774_v15 = vld [vmem:[%s8331_s10 + $0x8] sm:$0xff]  ;;  %v965_v33 = vld [vmem:[%s8336_s15 + $0x10] sm:$0xff] }
  0x48   :  { %5557 = vmatpush3.msra.mxu0 %v407_v16  ;;  %6075 = vmatprep.subr.bf16.mxu1 %v6074_v31  ;;  %v7013_v20 = vpack.c.bf16 %v774_v15, %v773_v14  ;;  %v7050_v37 = vpack.c.bf16 %v966_v36, %v965_v33  ;;  %v772_v36 = vld [vmem:[%s8330_s9 + $0x18] sm:$0xff] }
  0x49   :  { %6090 = vmatprep.subr.bf16.mxu0 %v6715_v25  ;;  %5559 = vmatmul.mubr.msk.f32.vlgmr.msra.gmra.mrb[4].mxu0 %vm120_vm0, %v400_v22  ;;  %v776_v22 = vld [vmem:[%s8331_s10 + $0x18] sm:$0xff] }
  0x4a   :  { %5561 = vmatprep.mubr.msk.f32.mxu0 %vm120_vm0, %v401_v24  ;;  %6092 = vmatpush3.bf16.msra.mxu0 %v6936_v23 }
  0x4b   :  { %6093 = vmatprep.subr.bf16.mxu0 %v6715_v25  ;;  %6077 = vmatpush3.bf16.msra.mxu1 %v6074_v31  ;;  %v964_v31 = vld [vmem:[%s8336_s15 + $0x8] sm:$0xff] }
  0x4c   :  { %6083 = vmatprep.subr.bf16.mxu1 %v6082_v38  ;;  %v7040_v32 = vpack.c.bf16 %v964_v31, %v963_v30  ;;  %v770_v30 = vld [vmem:[%s8330_s9 + $0x8] sm:$0xff]  ;;  %v771_v31 = vld [vmem:[%s8330_s9 + $0x10] sm:$0xff] }
  0x4d   :  { %5562 = vmatmul.mubr.msk.f32.gmra.mrb[6].mxu0 %vm120_vm0, %v402_v26 }
  0x4e   :  { %5564 = vmatprep.mubr.msk.f32.mxu0 %vm120_vm0, %v403_v27  ;;  %6095 = vmatpush3.bf16.msra.mxu0 %v6970_v34 }
  0x4f   :  { %6102 = vmatprep.subr.bf16.mxu0 %v6715_v25 }
  0x51   :  { %5565 = vmatmul.mubr.msk.f32.gmra.mrb[8].mxu0 %vm120_vm0, %v404_v28  ;;  %v7024_v28 = vpack.c.bf16 %v776_v22, %v775_v21 }
  0x52   :  { %5592 = vmatprep.mubr.msk.f32.mxu0 %vm6716_vm1, %v6717_v35 }
  0x55   :  { %5593 = vmatmul.mubr.f32.vlgmr.msra.gmra.mrb[10].mxu0 %v6717_v35 }
  0x56   :  { %5614 = vmatprep.mubr.msk.f32.mxu0 %vm6716_vm1, %v6717_v35 }
 0x114   :  { %v5522_v40 = vpop.f32.mrb[0].mxu0 }
 0x115   :  { %v5528_v41 = vpop.f32.mrb[0].mxu1  ;;  %v217_v42 = vadd.f32 %v5522_v40, %v5129_v39  ;;  %v211_v43 = vpop.f32.mrb[1].mxu0  ;;  %v658_v40 = vld [vmem:[%s8370_s7] sm:$0xff] }
 0x116   :  { %v231_v44 = vpop.f32.mrb[1].mxu1  ;;  %v212_v45 = vadd.f32 %v5129_v39, %v211_v43  ;;  %v237_v59 = vadd.f32 %v5528_v41, %v5129_v39  ;;  %v6718_v41 = vmov 0   ;;  %vm659_vm3 = vcmp.gt.f32.partialorder %v658_v40, 0.0  ;;  %v5138_v43 = vld [vmem:[%s8371_s1] ss:$0 sm:$0xff] }
 0x117   :  { %v232_v50 = vadd.f32 %v5129_v39, %v231_v44  ;;  %v251_v52 = vmax.f32 %v217_v42, 0.0  ;;  %6367 = vset.pattern.permute.xlu1 %v6718_v41  ;;  %6368 = vset.pattern.permute.xlu0 %v6718_v41  ;;  %v762_v42 = vsel %vm659_vm3, 1, %v6718_v41 }
 0x118   :  { %v250_v48 = vmax.f32 %v212_v45, 0.0  ;;  %v5525_v49 = vpop.f32.mrb[2].mxu0  ;;  %v255_v2 = vmax.f32 %v237_v59, 0.0  ;;  %764 = vperm.xlu1 %6367, %v762_v42  }
 0x119   :  { %v5531_v51 = vpop.f32.mrb[2].mxu1  ;;  %v227_v53 = vadd.f32 %v5525_v49, %v5129_v39  ;;  %v221_v54 = vpop.f32.mrb[3].mxu0  ;;  %v254_v61 = vmax.f32 %v232_v50, 0.0 }
 0x11a   :  { %v241_v55 = vpop.f32.mrb[3].mxu1  ;;  %5540 = vmatprep.mubr.msk.f32.mxu1 %vm269_vm2, %v250_v48  ;;  %v222_v57 = vadd.f32 %v5129_v39, %v221_v54  ;;  %v247_v3 = vadd.f32 %v5531_v51, %v5129_v39 }
 0x11b   :  { %5541 = vmatmul.mubr.msk.f32.vlgmr.msra.gmra.mrb[4].mxu1 %vm269_vm2, %v251_v52  ;;  %v253_v58 = vmax.f32 %v227_v53, 0.0  ;;  %v242_v62 = vadd.f32 %v5129_v39, %v241_v55 }
 0x11c   :  { %v252_v60 = vmax.f32 %v222_v57, 0.0  ;;  %v5560_v63 = vpop.f32.mrb[4].mxu0  ;;  %6085 = vmatpush3.bf16.msra.mxu1 %v6082_v38  ;;  %v257_v8 = vmax.f32 %v247_v3, 0.0 }
 0x11d   :  { %v499_v1 = vpop.f32.mrb[5].mxu0  ;;  %6087 = vmatprep.subr.bf16.mxu1 %v6086_v56  ;;  %v256_v4 = vmax.f32 %v242_v62, 0.0  ;;  %v505_v9 = vadd.f32 %v5560_v63, %v5147_v0 }
 0x11e   :  { %5543 = vmatprep.mubr.msk.f32.mxu1 %vm269_vm2, %v252_v60  ;;  %v500_v5 = vadd.f32 %v5147_v0, %v499_v1 }
 0x11f   :  { %5544 = vmatmul.mubr.msk.f32.gmra.mrb[6].mxu1 %vm269_vm2, %v253_v58  ;;  %v529_v16 = vmax.f32 %v505_v9, 0.0 }
 0x120   :  { %5546 = vmatprep.mubr.msk.f32.mxu1 %vm269_vm2, %v254_v61  ;;  %v5563_v6 = vpop.f32.mrb[6].mxu0  ;;  %6089 = vmatpush3.bf16.msra.mxu1 %v6086_v56  ;;  %v528_v10 = vmax.f32 %v500_v5, 0.0  ;;  %v5154_v61 = vld [vmem:[%s8337_s16] ss:$0 sm:$0xff]  ;;  %s6720_s16 = smov 32  }
 0x121   :  { %v509_v7 = vpop.f32.mrb[7].mxu0  ;;  %6096 = vmatprep.subr.bf16.mxu1 %v6715_v25  ;;  %v515_v17 = vadd.f32 %v5563_v6, %v5147_v0 }
 0x122   :  { %v510_v11 = vadd.f32 %v5147_v0, %v509_v7 }
 0x123   :  { %5547 = vmatmul.mubr.msk.f32.gmra.mrb[8].mxu1 %vm269_vm2, %v255_v2  ;;  %v531_v24 = vmax.f32 %v515_v17, 0.0 }
 0x124   :  { %5549 = vmatprep.mubr.msk.f32.mxu1 %vm269_vm2, %v256_v4  ;;  %v5566_v12 = vpop.f32.mrb[8].mxu0  ;;  %v530_v18 = vmax.f32 %v510_v11, 0.0 }
 0x125   :  { %v519_v13 = vpop.f32.mrb[9].mxu0  ;;  %v525_v26 = vadd.f32 %v5566_v12, %v5147_v0 }
 0x126   :  { %v520_v19 = vadd.f32 %v5147_v0, %v519_v13 }
 0x127   :  { %5550 = vmatmul.mubr.msk.f32.gmra.mrb[10].mxu1 %vm269_vm2, %v257_v8  ;;  %v533_v29 = vmax.f32 %v525_v26, 0.0 }
 0x128   :  { %5575 = vmatprep.mubr.msk.f32.mxu1 %vm269_vm2, %v528_v10  ;;  %v532_v27 = vmax.f32 %v520_v19, 0.0  ;;  %v733_v38 = vpop.f32.mrb[10].mxu0 }
 0x129   :  { %v5594_v39 = vpop.f32.mrb[11].mxu0 }
 0x12a   :  { %v7119_v39 = vpack.c.bf16 %v772_v36, %v771_v31 }
 0x12b   :  { %5576 = vmatmul.mubr.msk.f32.vlgmr.msra.gmra.mrb[12].mxu1 %vm269_vm2, %v529_v16 }
 0x12c   :  { %5578 = vmatprep.mubr.msk.f32.mxu1 %vm269_vm2, %v530_v18  ;;  %6098 = vmatpush3.bf16.msra.mxu1 %v7013_v20 }
 0x12d   :  { %6099 = vmatprep.subr.bf16.mxu1 %v6715_v25 }
 0x12f   :  { %5579 = vmatmul.mubr.msk.f32.gmra.mrb[14].mxu1 %vm269_vm2, %v531_v24 }
 0x130   :  { %5581 = vmatprep.mubr.msk.f32.mxu1 %vm269_vm2, %v532_v27  ;;  %6101 = vmatpush3.bf16.msra.mxu1 %v7024_v28 }
 0x131   :  { %6108 = vmatprep.subr.bf16.mxu1 %v6715_v25 }
 0x133   :  { %5582 = vmatmul.mubr.msk.f32.gmra.mrb[16].mxu1 %vm269_vm2, %v533_v29  ;;  %v769_v29 = vld [vmem:[%s8330_s9] sm:$0xff] }
 0x134   :  { %5603 = vmatprep.mubr.msk.f32.mxu1 %vm6716_vm1, %v6717_v35  ;;  %v7112_v33 = vpack.c.bf16 %v770_v30, %v769_v29 }
 0x136   :  { %6104 = vmatpush3.bf16.msra.mxu0 %v7112_v33 }
 0x137   :  { %5604 = vmatmul.mubr.f32.vlgmr.msra.gmra.mrb[18].mxu1 %v6717_v35  ;;  %6105 = vmatprep.subr.bf16.mxu0 %v6715_v25 }
 0x138   :  { %6110 = vmatpush3.bf16.msra.mxu1 %v7040_v32  ;;  %5625 = vmatprep.mubr.msk.f32.mxu1 %vm6716_vm1, %v6717_v35 }
 0x139   :  { %6111 = vmatprep.subr.bf16.mxu1 %v6715_v25 }
 0x13a   :  { %6107 = vmatpush3.bf16.msra.mxu0 %v7119_v39 }
 0x13b   :  { %6114 = vmatprep.subr.bf16.mxu0 %v6715_v25 }
 0x13c   :  { %6113 = vmatpush3.bf16.msra.mxu1 %v7050_v37 }
 0x13d   :  { %6120 = vmatprep.subr.bf16.mxu1 %v6715_v25 }
 0x13f   :  { %5626 = vmatmul.mubr.f32.vlgmr.msra.gmra.mrb[20].mxu1 %v6717_v35 }
 0x140   :  { %5647 = vmatprep.mubr.msk.f32.mxu1 %vm6716_vm1, %v6717_v35 }
 0x1ee   :  { %v5542_v44 = vpop.f32.mrb[4].mxu1 }
 0x1ef   :  { %v7069_v45 = vadd.f32 %v5542_v44, %v5138_v43  ;;  %v360_v46 = vpop.f32.mrb[5].mxu1 }
 0x1f0   :  { %v361_v47 = vadd.f32 %v5138_v43, %v360_v46  ;;  %v7125_v46 = vpop.permute.xlu1 %764 }
 0x1f1   :  { %vm766_vm4 = vcmp.eq.s32.totalorder %v7125_v46, 1 }
 0x1f2   :  { %v737_v48 = vadd.f32 %v733_v38, %v361_v47  ;;  %v5545_v49 = vpop.f32.mrb[6].mxu1 }
 0x1f3   :  { %v7071_v50 = vadd.f32 %v5545_v49, %v5138_v43  ;;  %v370_v51 = vpop.f32.mrb[7].mxu1  ;;  %v961_v49 = vld [vmem:[%s8372_s30] sm:$0xff] }
 0x1f4   :  { %6369 = vtanh.f32 %v737_v48  ;;  %v7073_v52 = vadd.f32 %v5138_v43, %v370_v51  ;;  %v5161_v16 = vmul.f32 -1.442695, %v737_v48  ;;  %vm962_vm5 = vcmp.gt.f32.partialorder %v961_v49, 0.0 }
 0x1f6   :  { %v5548_v53 = vpop.f32.mrb[8].mxu1  ;;  %6371 = vpow2.f32 %v5161_v16 }
 0x1f7   :  { %v7075_v54 = vadd.f32 %v5548_v53, %v5138_v43  ;;  %v380_v55 = vpop.f32.mrb[9].mxu1 }
 0x1f8   :  { %v7077_v56 = vadd.f32 %v5138_v43, %v380_v55 }
 0x1fa   :  { %v5551_v57 = vpop.f32.mrb[10].mxu1 }
 0x1fb   :  { %v7079_v58 = vadd.f32 %v5551_v57, %v5138_v43  ;;  %v390_v59 = vpop.f32.mrb[11].mxu1 }
 0x1fc   :  { %v7081_v60 = vadd.f32 %v5138_v43, %v390_v59  ;;  %v1062_v59 = vsel %vm962_vm5, 1, %v6718_v41 }
 0x1fe   :  { %v6370_v62 = vpop.eup %6369  ;;  %v5577_v63 = vpop.f32.mrb[12].mxu1 }
 0x1ff   :  { %747 = vrot.lane.b32.xlu0 %v6370_v62, %s6719_s6  ;;  %v7087_v0 = vadd.f32 %v5577_v63, %v5154_v61  ;;  %v629_v1 = vpop.f32.mrb[13].mxu1  ;;  %v1074_v62 = vld [vmem:[%s8339_s18 + $0x8] sm:$0xff] }
 0x200   :  { %v630_v12 = vadd.f32 %v5154_v61, %v629_v1  ;;  %v6372_v17 = vpop.eup %6371  ;;  %v1075_v1 = vld [vmem:[%s8339_s18 + $0x10] sm:$0xff] }
 0x201   :  { %v741_v18 = vadd.f32 1.0, %v6372_v17 }
 0x202   :  { %v5580_v2 = vpop.f32.mrb[14].mxu1 }
 0x203   :  { %v7089_v3 = vadd.f32 %v5580_v2, %v5154_v61  ;;  %v639_v4 = vpop.f32.mrb[15].mxu1  ;;  %6373 = vrcp.f32 %v741_v18  ;;  %v1076_v2 = vld [vmem:[%s8339_s18 + $0x18] sm:$0xff] }
 0x204   :  { %v7091_v5 = vadd.f32 %v5154_v61, %v639_v4 }
 0x206   :  { %v5583_v6 = vpop.f32.mrb[16].mxu1 }
 0x207   :  { %v7093_v7 = vadd.f32 %v5583_v6, %v5154_v61  ;;  %v649_v8 = vpop.f32.mrb[17].mxu1  ;;  %v7158_v6 = vpack.c.bf16 %v1076_v2, %v1075_v1 }
 0x208   :  { %v7095_v9 = vadd.f32 %v5154_v61, %v649_v8  ;;  %v1073_v61 = vld [vmem:[%s8339_s18] sm:$0xff] }
 0x209   :  { %v7148_v63 = vpack.c.bf16 %v1074_v62, %v1073_v61 }
 0x20a   :  { %v7097_v10 = vpop.f32.mrb[18].mxu1 }
 0x20b   :  { %v5605_v11 = vpop.f32.mrb[19].mxu1 }
 0x20c   :  { %v7179_v11 = vld [vmem:[#allocation6] ss:$0 sm:$0xff] }
 0x20d   :  { %v6374_v19 = vpop.eup %6373 }
 0x20e   :  { %v745_v24 = vmul.f32 0.0, %v6374_v19 }
 0x212   :  { %v1033_v13 = vpop.f32.mrb[20].mxu1 }
 0x213   :  { %v1037_v14 = vadd.f32 %v1033_v13, %v630_v12  ;;  %v5627_v15 = vpop.f32.mrb[21].mxu1 }
 0x215   :  { %v5165_v42 = vmul.f32 -1.442695, %v1037_v14 }
 0x271   :  { %v748_v21 = vpop.permute.xlu0 %747 }
 0x272   :  { %v750_v22 = vmul.f32 %v6374_v19, %v748_v21 }
 0x274   :  { %752 = vrot.lane.b32.xlu0 %v750_v22, %s6720_s16 }
 0x2e6   :  { %v753_v26 = vpop.permute.xlu0 %752 }
 0x2e7   :  { %v7100_v27 = vadd.f32 %v753_v26, %v745_v24 }
 0x2e9   :  { %6375 = vtanh.f32 %v7100_v27 }
 0x2ea   :  { %6377 = vtanh.f32 %v1037_v14 }
 0x2eb   :  { %6379 = vpow2.f32 %v5165_v42  ;;  %v1071_v42 = vld [vmem:[%s8338_s17 + $0x10] sm:$0xff] }
 0x2f3   :  { %v6376_v38 = vpop.eup %6375 }
 0x2f4   :  { %758 = vrot.lane.b32.xlu1 %v6376_v38, %s6719_s6  ;;  %v6378_v40 = vpop.eup %6377 }
 0x2f5   :  { %v6380_v43 = vpop.eup %6379 }
 0x2f6   :  { %v1041_v44 = vadd.f32 1.0, %v6380_v43 }
 0x2f8   :  { %1047 = vrot.lane.b32.xlu1 %v6378_v40, %s6719_s6  ;;  %6381 = vrcp.f32 %v1041_v44  ;;  %v1070_v40 = vld [vmem:[%s8338_s17 + $0x8] sm:$0xff]  ;;  %v1072_v44 = vld [vmem:[%s8338_s17 + $0x18] sm:$0xff] }
 0x302   :  { %v7135_v53 = vpop.eup %6381 }
 0x303   :  { %v1045_v29 = vmul.f32 0.0, %v7135_v53 }
 0x366   :  { %v759_v47 = vpop.permute.xlu1 %758 }
 0x367   :  { %v761_v48 = vmul.f32 %v6374_v19, %v759_v47 }
 0x369   :  { %v7133_v51 = vsel %vm766_vm4, %v761_v48, 0.0  ;;  %v7209_v48 = vpack.c.bf16 %v1072_v44, %v1071_v42 }
 0x36a   :  { %848 = vrot.lane.b32.xlu0 %v7133_v51, %s6720_s16  ;;  %v1048_v55 = vpop.permute.xlu1 %1047 }
 0x36b   :  { %v1050_v57 = vmul.f32 %v7135_v53, %v1048_v55 }
 0x36d   :  { %1052 = vrot.lane.b32.xlu1 %v1050_v57, %s6720_s16 }
 0x371   :  { %1064 = vperm.xlu1 %6367, %v1062_v59  }
 0x3dc   :  { %v849_v4 = vpop.permute.xlu0 %848 }
 0x3dd   :  { %5615 = vmatmul.mubr.msk.f32.vlgmr.msra.gmra.mrb[12].mxu0 %vm269_vm2, %v849_v4 }
 0x3de   :  { %6116 = vmatpush3.bf16.msra.mxu0 %v7148_v63  ;;  %5636 = vmatprep.mubr.msk.f32.mxu0 %vm6716_vm1, %v6717_v35 }
 0x3df   :  { %6117 = vmatprep.subr.bf16.mxu0 %v6715_v25 }
 0x3e2   :  { %6119 = vmatpush3.bf16.msra.mxu0 %v7158_v6 }
 0x3e3   :  { %6126 = vmatprep.subr.bf16.mxu0 %v6715_v25 }
 0x3e5   :  { %5637 = vmatmul.mubr.f32.vlgmr.msra.gmra.mrb[14].mxu0 %v6717_v35 }
 0x3e6   :  { %6128 = vmatpush3.bf16.msra.mxu0 %v6936_v23  ;;  %5658 = vmatprep.mubr.msk.f32.mxu0 %vm6716_vm1, %v6717_v35 }
 0x3e7   :  { %6129 = vmatprep.subr.bf16.mxu0 %v6715_v25 }
 0x3ea   :  { %6131 = vmatpush3.bf16.msra.mxu0 %v6970_v34 }
 0x3eb   :  { %6138 = vmatprep.subr.bf16.mxu0 %v6715_v25 }
 0x3ed   :  { %5659 = vmatmul.mubr.msk.f32.vlgmr.msra.gmra.mrb[16].mxu0 %vm269_vm2, %v849_v4 }
 0x3ee   :  { %6140 = vmatpush3.bf16.msra.mxu0 %v7112_v33  ;;  %5680 = vmatprep.mubr.msk.f32.mxu0 %vm6716_vm1, %v6717_v35 }
 0x3ef   :  { %6141 = vmatprep.subr.bf16.mxu0 %v6715_v25 }
 0x3f2   :  { %6143 = vmatpush3.bf16.msra.mxu0 %v7119_v39 }
 0x3f3   :  { %6150 = vmatprep.subr.bf16.mxu0 %v6715_v25 }
 0x4b0   :  { %v918_v8 = vpop.f32.mrb[12].mxu0 }
 0x4b1   :  { %v919_v12 = vadd.f32 %v918_v8, %v7097_v10  ;;  %v5616_v13 = vpop.f32.mrb[13].mxu0  ;;  %v1053_v10 = vpop.permute.xlu1 %1052 }
 0x4b2   :  { %v7190_v30 = vadd.f32 %v1053_v10, %v1045_v29 }
 0x4b3   :  { %v929_v14 = vadd.f32 %v7179_v11, %v919_v12 }
 0x4b5   :  { %6383 = vtanh.f32 %v929_v14  ;;  %v5164_v22 = vmul.f32 -1.442695, %v929_v14  ;;  %v7218_v59 = vpop.permute.xlu1 %1064 }
 0x4b6   :  { %vm1066_vm6 = vcmp.eq.s32.totalorder %v7218_v59, 1 }
 0x4b7   :  { %6385 = vpow2.f32 %v5164_v22 }
 0x4b8   :  { %v7183_v15 = vpop.f32.mrb[14].mxu0 }
 0x4b9   :  { %v5638_v16 = vpop.f32.mrb[15].mxu0 }
 0x4bf   :  { %v6384_v17 = vpop.eup %6383 }
 0x4c0   :  { %v1328_v18 = vpop.f32.mrb[16].mxu0  ;;  %939 = vrot.lane.b32.xlu0 %v6384_v17, %s6719_s6 }
 0x4c1   :  { %v7187_v19 = vadd.f32 %v1328_v18, %v7069_v45  ;;  %v5660_v21 = vpop.f32.mrb[17].mxu0  ;;  %v6386_v24 = vpop.eup %6385  ;;  %v1069_v45 = vld [vmem:[%s8338_s17] sm:$0xff] }
 0x4c2   :  { %v933_v26 = vadd.f32 1.0, %v6386_v24  ;;  %v7203_v43 = vpack.c.bf16 %v1070_v40, %v1069_v45  ;;  %v7263_v21 = vld [vmem:[%s8340_s19] ss:$0 sm:$0xff] }
 0x4c3   :  { %v5170_v16 = vmul.f32 -1.442695, %v7187_v19 }
 0x4c4   :  { %6387 = vrcp.f32 %v933_v26  ;;  %6122 = vmatpush3.bf16.msra.mxu1 %v7203_v43 }
 0x4c5   :  { %6389 = vtanh.f32 %v7190_v30  ;;  %6123 = vmatprep.subr.bf16.mxu1 %v6715_v25 }
 0x4c6   :  { %6391 = vtanh.f32 %v7187_v19 }
 0x4c8   :  { %6125 = vmatpush3.bf16.msra.mxu1 %v7209_v48 }
 0x4c9   :  { %6132 = vmatprep.subr.bf16.mxu1 %v6715_v25 }
 0x4ce   :  { %v6388_v31 = vpop.eup %6387 }
 0x4cf   :  { %v6390_v47 = vpop.eup %6389  ;;  %v937_v49 = vmul.f32 0.0, %v6388_v31 }
 0x4d0   :  { %v6392_v2 = vpop.eup %6391 }
 0x532   :  { %v940_v36 = vpop.permute.xlu0 %939 }
 0x533   :  { %v942_v38 = vmul.f32 %v6388_v31, %v940_v36 }
 0x535   :  { %944 = vrot.lane.b32.xlu0 %v942_v38, %s6720_s16 }
 0x539   :  { %1058 = vrot.lane.b32.xlu0 %v6390_v47, %s6719_s6 }
 0x5a7   :  { %v945_v55 = vpop.permute.xlu0 %944 }
 0x5a8   :  { %v7216_v57 = vadd.f32 %v945_v55, %v937_v49 }
 0x5aa   :  { %6393 = vtanh.f32 %v7216_v57 }
 0x5ab   :  { %v1059_v61 = vpop.permute.xlu0 %1058  ;;  %6395 = vpow2.f32 %v5170_v16 }
 0x5ac   :  { %v1061_v62 = vmul.f32 %v7135_v53, %v1059_v61 }
 0x5ae   :  { %v7225_v1 = vsel %vm1066_vm6, %v1061_v62, 0.0  ;;  %v1256_v62 = vld [vmem:[%s8370_s7 + $0x8] sm:$0xff] }
 0x5af   :  { %1148 = vrot.lane.b32.xlu0 %v7225_v1, %s6720_s16  ;;  %vm1257_vm7 = vcmp.gt.f32.partialorder %v1256_v62, 0.0 }
 0x5b3   :  { %1342 = vrot.lane.b32.xlu0 %v6392_v2, %s6719_s6 }
 0x5b4   :  { %v6394_v4 = vpop.eup %6393 }
 0x5b5   :  { %950 = vrot.lane.b32.xlu1 %v6394_v4, %s6719_s6  ;;  %v6396_v17 = vpop.eup %6395 }
 0x5b6   :  { %v1336_v26 = vadd.f32 1.0, %v6396_v17  ;;  %v7285_v17 = vsel %vm766_vm4, %v7100_v27, 0.0 }
 0x621   :  { %v1149_v8 = vpop.permute.xlu0 %1148 }
 0x622   :  { %5648 = vmatmul.mubr.msk.f32.vlgmr.msra.gmra.mrb[22].mxu1 %vm269_vm2, %v1149_v8 }
 0x623   :  { %6134 = vmatpush3.bf16.msra.mxu1 %v7013_v20  ;;  %5669 = vmatprep.mubr.msk.f32.mxu1 %vm6716_vm1, %v6717_v35 }
 0x624   :  { %6135 = vmatprep.subr.bf16.mxu1 %v6715_v25 }
 0x627   :  { %v951_v53 = vpop.permute.xlu1 %950  ;;  %6137 = vmatpush3.bf16.msra.mxu1 %v7024_v28 }
 0x628   :  { %v953_v12 = vmul.f32 %v6388_v31, %v951_v53  ;;  %6144 = vmatprep.subr.bf16.mxu1 %v6715_v25  ;;  %v1343_v31 = vpop.permute.xlu0 %1342 }
 0x62a   :  { %v7240_v13 = vsel %vm766_vm4, %v953_v12, 0.0 }
 0x62b   :  { %957 = vrot.lane.b32.xlu1 %v7240_v13, %s6720_s16 }
 0x69d   :  { %v958_v14 = vpop.permute.xlu1 %957 }
 0x69e   :  { %960 = vst.msk [vmem:[#allocation2] sm:$0xff] %vm269_vm2, %v958_v14  ;;  %5670 = vmatmul.mubr.msk.f32.vlgmr.msra.gmra.mrb[24].mxu1 %vm269_vm2, %v958_v14 }
 0x69f   :  { %6146 = vmatpush3.bf16.msra.mxu1 %v7040_v32  ;;  %5691 = vmatprep.mubr.msk.f32.mxu1 %vm6716_vm1, %v6717_v35 }
 0x6a0   :  { %6147 = vmatprep.subr.bf16.mxu1 %v6715_v25 }
 0x6a3   :  { %6149 = vmatpush3.bf16.msra.mxu1 %v7050_v37 }
 0x6a4   :  { %6156 = vmatprep.subr.bf16.mxu1 %v6715_v25 }
 0x6a6   :  { %5692 = vmatmul.mubr.msk.f32.vlgmr.msra.gmra.mrb[26].mxu1 %vm269_vm2, %v1149_v8  ;;  %v1558_v8 = vld [vmem:[%s8372_s30 + $0x8] sm:$0xff] }
 0x6a7   :  { %6158 = vmatpush3.bf16.msra.mxu1 %v7203_v43  ;;  %5713 = vmatprep.mubr.msk.f32.mxu1 %vm6716_vm1, %v6717_v35  ;;  %vm1559_vm8 = vcmp.gt.f32.partialorder %v1558_v8, 0.0 }
 0x6a8   :  { %6159 = vmatprep.subr.bf16.mxu1 %v6715_v25  ;;  %v1659_v53 = vsel %vm1559_vm8, 1, %v6718_v41 }
 0x6ab   :  { %6161 = vmatpush3.bf16.msra.mxu1 %v7209_v48 }
 0x6ac   :  { %6168 = vmatprep.subr.bf16.mxu1 %v6715_v25 }
 0x6f5   :  { %v1218_v18 = vpop.f32.mrb[22].mxu1 }
 0x6f6   :  { %v1219_v22 = vadd.f32 %v1218_v18, %v7183_v15  ;;  %v5649_v24 = vpop.f32.mrb[23].mxu1 }
 0x6f8   :  { %v1229_v10 = vadd.f32 %v7263_v21, %v1219_v22 }
 0x6fa   :  { %6397 = vtanh.f32 %v1229_v10  ;;  %v5168_v38 = vmul.f32 -1.442695, %v1229_v10 }
 0x6fb   :  { %6399 = vrcp.f32 %v1336_v26 }
 0x6fc   :  { %6401 = vpow2.f32 %v5168_v38 }
 0x704   :  { %v6398_v29 = vpop.eup %6397 }
 0x705   :  { %1239 = vrot.lane.b32.xlu1 %v6398_v29, %s6719_s6  ;;  %v6400_v19 = vpop.eup %6399 }
 0x706   :  { %v1345_v36 = vmul.f32 %v6400_v19, %v1343_v31  ;;  %v6402_v15 = vpop.eup %6401  ;;  %v1340_v22 = vmul.f32 %v6400_v19, %v7285_v17 }
 0x707   :  { %v1233_v44 = vadd.f32 1.0, %v6402_v15  ;;  %v7300_v15 = vsel %vm1066_vm6, %v7190_v30, 0.0 }
 0x709   :  { %1347 = vrot.lane.b32.xlu1 %v1345_v36, %s6720_s16 }
 0x771   :  { %v7269_v45 = vpop.f32.mrb[24].mxu1 }
 0x772   :  { %v5671_v40 = vpop.f32.mrb[25].mxu1 }
 0x777   :  { %v1240_v61 = vpop.permute.xlu1 %1239 }
 0x779   :  { %v1630_v42 = vpop.f32.mrb[26].mxu1 }
 0x77a   :  { %v1634_v47 = vadd.f32 %v1630_v42, %v7087_v0  ;;  %v5693_v49 = vpop.f32.mrb[27].mxu1  ;;  %v1357_v0 = vsel %vm1257_vm7, 1, %v6718_v41 }
 0x77b   :  { %v1348_v18 = vpop.permute.xlu1 %1347 }
 0x77c   :  { %6403 = vtanh.f32 %v1634_v47  ;;  %v5176_v12 = vmul.f32 -1.442695, %v1634_v47  ;;  %v7288_v24 = vadd.f32 %v1348_v18, %v1340_v22 }
 0x77d   :  { %6405 = vrcp.f32 %v1233_v44 }
 0x77e   :  { %6407 = vpow2.f32 %v5176_v12 }
 0x786   :  { %v6404_v55 = vpop.eup %6403 }
 0x787   :  { %1644 = vrot.lane.b32.xlu0 %v6404_v55, %s6719_s6  ;;  %v6406_v2 = vpop.eup %6405 }
 0x788   :  { %v1242_v4 = vmul.f32 %v6406_v2, %v1240_v61  ;;  %v6408_v14 = vpop.eup %6407  ;;  %v1237_v31 = vmul.f32 0.0, %v6406_v2 }
 0x789   :  { %v1638_v16 = vadd.f32 1.0, %v6408_v14 }
 0x78b   :  { %1244 = vrot.lane.b32.xlu0 %v1242_v4, %s6720_s16  ;;  %6409 = vrcp.f32 %v1638_v16 }
 0x78c   :  { %6411 = vtanh.f32 %v7288_v24 }
 0x78f   :  { %1359 = vperm.xlu0 %6368, %v1357_v0  }
 0x793   :  { %1661 = vperm.xlu0 %6368, %v1659_v53  }
 0x795   :  { %v6410_v26 = vpop.eup %6409 }
 0x796   :  { %v6412_v40 = vpop.eup %6411  ;;  %v1642_v42 = vmul.f32 %v6410_v26, %v7300_v15 }
 0x7f9   :  { %v1645_v10 = vpop.permute.xlu0 %1644 }
 0x7fa   :  { %v1647_v29 = vmul.f32 %v6410_v26, %v1645_v10 }
 0x7fc   :  { %1649 = vrot.lane.b32.xlu1 %v1647_v29, %s6720_s16 }
 0x7fd   :  { %v1245_v36 = vpop.permute.xlu0 %1244 }
 0x7fe   :  { %v7292_v38 = vadd.f32 %v1245_v36, %v1237_v31 }
 0x800   :  { %6413 = vtanh.f32 %v7292_v38  ;;  %1353 = vrot.lane.b32.xlu1 %v6412_v40, %s6719_s6 }
 0x80a   :  { %v6414_v27 = vpop.eup %6413 }
 0x80b   :  { %1250 = vrot.lane.b32.xlu1 %v6414_v27, %s6719_s6 }
 0x80e   :  { %v7305_v49 = vpop.permute.xlu0 %1359 }
 0x80f   :  { %vm1361_vm9 = vcmp.eq.s32.totalorder %v7305_v49, 1 }
 0x86e   :  { %v1650_v44 = vpop.permute.xlu1 %1649 }
 0x86f   :  { %v7303_v47 = vadd.f32 %v1650_v44, %v1642_v42 }
 0x871   :  { %6415 = vtanh.f32 %v7303_v47 }
 0x872   :  { %v1354_v55 = vpop.permute.xlu1 %1353 }
 0x873   :  { %v1356_v61 = vmul.f32 %v6400_v19, %v1354_v55  ;;  %v7323_v19 = vpop.permute.xlu0 %1661 }
 0x874   :  { %vm1663_vm10 = vcmp.eq.s32.totalorder %v7323_v19, 1 }
 0x875   :  { %v7312_v62 = vsel %vm1361_vm9, %v1356_v61, %v7133_v51 }
 0x876   :  { %1445 = vrot.lane.b32.xlu0 %v7312_v62, %s6720_s16 }
 0x87b   :  { %v6416_v30 = vpop.eup %6415 }
 0x87c   :  { %1655 = vrot.lane.b32.xlu1 %v6416_v30, %s6719_s6 }
 0x87d   :  { %v1251_v4 = vpop.permute.xlu1 %1250 }
 0x87e   :  { %v1253_v8 = vmul.f32 %v6406_v2, %v1251_v4 }
 0x880   :  { %v7319_v0 = vsel %vm1066_vm6, %v1253_v8, 0.0 }
 0x881   :  { %1675 = vrot.lane.b32.xlu1 %v7319_v0, %s6720_s16 }
 0x8e8   :  { %v1446_v53 = vpop.permute.xlu0 %1445 }
 0x8e9   :  { %5681 = vmatmul.mubr.msk.f32.vlgmr.msra.gmra.mrb[18].mxu0 %vm269_vm2, %v1446_v53 }
 0x8ea   :  { %6152 = vmatpush3.bf16.msra.mxu0 %v7148_v63  ;;  %5702 = vmatprep.mubr.msk.f32.mxu0 %vm6716_vm1, %v6717_v35 }
 0x8eb   :  { %6153 = vmatprep.subr.bf16.mxu0 %v6715_v25 }
 0x8ee   :  { %v1656_v51 = vpop.permute.xlu1 %1655  ;;  %6155 = vmatpush3.bf16.msra.mxu0 %v7158_v6 }
 0x8ef   :  { %v1658_v2 = vmul.f32 %v6410_v26, %v1656_v51  ;;  %6162 = vmatprep.subr.bf16.mxu0 %v6715_v25 }
 0x8f1   :  { %v7336_v12 = vsel %vm1663_vm10, %v1658_v2, %v7225_v1 }
 0x8f2   :  { %1750 = vrot.lane.b32.xlu0 %v7336_v12, %s6720_s16 }
 0x8f3   :  { %v1676_v14 = vpop.permute.xlu1 %1675 }
 0x8f4   :  { %5703 = vmatmul.mubr.msk.f32.vlgmr.msra.gmra.mrb[20].mxu0 %vm269_vm2, %v1676_v14 }
 0x8f5   :  { %6164 = vmatpush3.bf16.msra.mxu0 %v6936_v23  ;;  %5724 = vmatprep.mubr.msk.f32.mxu0 %vm6716_vm1, %v6717_v35 }
 0x8f6   :  { %6165 = vmatprep.subr.bf16.mxu0 %v6715_v25 }
 0x8f9   :  { %6167 = vmatpush3.bf16.msra.mxu0 %v6970_v34 }
 0x8fa   :  { %6174 = vmatprep.subr.bf16.mxu0 %v6715_v25 }
 0x8fc   :  { %5725 = vmatmul.mubr.msk.f32.vlgmr.msra.gmra.mrb[22].mxu0 %vm269_vm2, %v1446_v53 }
 0x8fd   :  { %6176 = vmatpush3.bf16.msra.mxu0 %v7112_v33  ;;  %5746 = vmatprep.mubr.msk.f32.mxu0 %vm6716_vm1, %v6717_v35 }
 0x8fe   :  { %6177 = vmatprep.subr.bf16.mxu0 %v6715_v25 }
 0x901   :  { %6179 = vmatpush3.bf16.msra.mxu0 %v7119_v39 }
 0x902   :  { %6186 = vmatprep.subr.bf16.mxu0 %v6715_v25 }
 0x964   :  { %v7354_v23 = vpop.permute.xlu0 %1750 }
 0x965   :  { %5714 = vmatmul.mubr.msk.f32.vlgmr.msra.gmra.mrb[28].mxu1 %vm269_vm2, %v7354_v23 }
 0x966   :  { %6170 = vmatpush3.bf16.msra.mxu1 %v7013_v20  ;;  %5735 = vmatprep.mubr.msk.f32.mxu1 %vm6716_vm1, %v6717_v35 }
 0x967   :  { %6171 = vmatprep.subr.bf16.mxu1 %v6715_v25 }
 0x96a   :  { %6173 = vmatpush3.bf16.msra.mxu1 %v7024_v28 }
 0x96b   :  { %6180 = vmatprep.subr.bf16.mxu1 %v6715_v25 }
 0x9bc   :  { %v1515_v34 = vpop.f32.mrb[18].mxu0 }
 0x9bd   :  { %v1516_v1 = vadd.f32 %v1515_v34, %v7269_v45  ;;  %v5682_v16 = vpop.f32.mrb[19].mxu0 }
 0x9bf   :  { %v1526_v18 = vadd.f32 %v7179_v11, %v1516_v1 }
 0x9c1   :  { %6417 = vtanh.f32 %v1526_v18  ;;  %v5174_v36 = vmul.f32 -1.442695, %v1526_v18 }
 0x9c7   :  { %v1745_v22 = vpop.f32.mrb[20].mxu0 }
 0x9c8   :  { %v5704_v26 = vpop.f32.mrb[21].mxu0 }
 0x9cb   :  { %v6418_v10 = vpop.eup %6417 }
 0x9cc   :  { %1536 = vrot.lane.b32.xlu1 %v6418_v10, %s6719_s6 }
 0x9cf   :  { %v1930_v20 = vpop.f32.mrb[22].mxu0 }
 0x9d0   :  { %v1934_v29 = vadd.f32 %v1930_v20, %v7073_v52  ;;  %v5726_v31 = vpop.f32.mrb[23].mxu0 }
 0x9d2   :  { %6419 = vtanh.f32 %v1934_v29  ;;  %v5182_v27 = vmul.f32 -1.442695, %v1934_v29  ;;  %v1858_v29 = vld [vmem:[%s8370_s7 + $0x10] sm:$0xff] }
 0x9d3   :  { %6421 = vpow2.f32 %v5174_v36  ;;  %vm1859_vm11 = vcmp.gt.f32.partialorder %v1858_v29, 0.0 }
 0x9d4   :  { %v1959_v46 = vsel %vm1859_vm11, 1, %v6718_v41 }
 0x9dc   :  { %v6420_v28 = vpop.eup %6419 }
 0x9dd   :  { %1944 = vrot.lane.b32.xlu0 %v6420_v28, %s6719_s6  ;;  %v6422_v45 = vpop.eup %6421 }
 0x9de   :  { %v1530_v40 = vadd.f32 1.0, %v6422_v45  ;;  %v7392_v45 = vsel %vm1361_vm9, %v7288_v24, %v7285_v17 }
 0x9e0   :  { %6423 = vrcp.f32 %v1530_v40 }
 0x9e1   :  { %6425 = vpow2.f32 %v5182_v27 }
 0x9ea   :  { %v6424_v30 = vpop.eup %6423 }
 0x9eb   :  { %v6426_v52 = vpop.eup %6425 }
 0x9ec   :  { %v1938_v53 = vadd.f32 1.0, %v6426_v52 }
 0xa38   :  { %v1820_v42 = vpop.f32.mrb[28].mxu1 }
 0xa39   :  { %v1821_v44 = vadd.f32 %v1820_v42, %v1745_v22  ;;  %v5715_v55 = vpop.f32.mrb[29].mxu1  ;;  %v7376_v22 = vsel %vm766_vm4, %v7216_v57, 0.0 }
 0xa3a   :  { %v1534_v26 = vmul.f32 %v6424_v30, %v7376_v22  ;;  %v7402_v55 = vsel %vm1066_vm6, %v7292_v38, 0.0 }
 0xa3b   :  { %v1831_v61 = vadd.f32 %v7263_v21, %v1821_v44 }
 0xa3d   :  { %6427 = vtanh.f32 %v1831_v61  ;;  %v5180_v1 = vmul.f32 -1.442695, %v1831_v61 }
 0xa3e   :  { %v1537_v4 = vpop.permute.xlu1 %1536  ;;  %6429 = vrcp.f32 %v1938_v53 }
 0xa3f   :  { %v1539_v8 = vmul.f32 %v6424_v30, %v1537_v4  ;;  %6431 = vpow2.f32 %v5180_v1 }
 0xa41   :  { %1541 = vrot.lane.b32.xlu0 %v1539_v8, %s6720_s16 }
 0xa47   :  { %v6428_v51 = vpop.eup %6427 }
 0xa48   :  { %1841 = vrot.lane.b32.xlu1 %v6428_v51, %s6719_s6  ;;  %v6430_v2 = vpop.eup %6429 }
 0xa49   :  { %v6432_v16 = vpop.eup %6431  ;;  %v1942_v40 = vmul.f32 %v6430_v2, %v7392_v45 }
 0xa4a   :  { %v1835_v18 = vadd.f32 1.0, %v6432_v16 }
 0xa4c   :  { %6433 = vrcp.f32 %v1835_v18 }
 0xa4f   :  { %v1945_v14 = vpop.permute.xlu0 %1944 }
 0xa50   :  { %v1947_v34 = vmul.f32 %v6430_v2, %v1945_v14 }
 0xa52   :  { %1949 = vrot.lane.b32.xlu1 %v1947_v34, %s6720_s16 }
 0xa56   :  { %v6434_v31 = vpop.eup %6433 }
 0xa57   :  { %v1839_v61 = vmul.f32 %v6434_v31, %v7402_v55 }
 0xab3   :  { %v1542_v10 = vpop.permute.xlu0 %1541 }
 0xab4   :  { %v7379_v20 = vadd.f32 %v1542_v10, %v1534_v26 }
 0xab6   :  { %6435 = vtanh.f32 %v7379_v20 }
 0xaba   :  { %v1842_v28 = vpop.permute.xlu1 %1841 }
 0xabb   :  { %v1844_v36 = vmul.f32 %v6434_v31, %v1842_v28 }
 0xabd   :  { %1846 = vrot.lane.b32.xlu0 %v1844_v36, %s6720_s16 }
 0xac0   :  { %v6436_v57 = vpop.eup %6435 }
 0xac1   :  { %1547 = vrot.lane.b32.xlu1 %v6436_v57, %s6719_s6  ;;  %1961 = vperm.xlu0 %6368, %v1959_v46  }
 0xac4   :  { %v1950_v27 = vpop.permute.xlu1 %1949 }
 0xac5   :  { %v7395_v42 = vadd.f32 %v1950_v27, %v1942_v40 }
 0xac7   :  { %6437 = vtanh.f32 %v7395_v42 }
 0xad1   :  { %v6438_v44 = vpop.eup %6437 }
 0xad2   :  { %1955 = vrot.lane.b32.xlu1 %v6438_v44, %s6719_s6 }
 0xb2f   :  { %v1847_v52 = vpop.permute.xlu0 %1846 }
 0xb30   :  { %v7405_v17 = vadd.f32 %v1847_v52, %v1839_v61 }
 0xb32   :  { %6439 = vtanh.f32 %v7405_v17 }
 0xb33   :  { %v1548_v24 = vpop.permute.xlu1 %1547 }
 0xb34   :  { %v1550_v4 = vmul.f32 %v6424_v30, %v1548_v24 }
 0xb36   :  { %v7411_v8 = vsel %vm1361_vm9, %v1550_v4, %v7240_v13 }
 0xb37   :  { %1554 = vrot.lane.b32.xlu1 %v7411_v8, %s6720_s16 }
 0xb3c   :  { %v6440_v59 = vpop.eup %6439 }
 0xb3d   :  { %1852 = vrot.lane.b32.xlu0 %v6440_v59, %s6719_s6 }
 0xb40   :  { %v7416_v38 = vpop.permute.xlu0 %1961 }
 0xb41   :  { %vm1963_vm12 = vcmp.eq.s32.totalorder %v7416_v38, 1 }
 0xb44   :  { %v1956_v53 = vpop.permute.xlu1 %1955 }
 0xb45   :  { %v1958_v51 = vmul.f32 %v6430_v2, %v1956_v53 }
 0xb47   :  { %v7422_v30 = vsel %vm1963_vm12, %v1958_v51, %v7312_v62 }
 0xb48   :  { %2047 = vrot.lane.b32.xlu0 %v7422_v30, %s6720_s16 }
 0xba9   :  { %v1555_v13 = vpop.permute.xlu1 %1554 }
 0xbaa   :  { %1557 = vst.msk [vmem:[#allocation2 + $0x8] sm:$0xff] %vm269_vm2, %v1555_v13  ;;  %5736 = vmatmul.mubr.msk.f32.vlgmr.msra.gmra.mrb[30].mxu1 %vm269_vm2, %v1555_v13 }
 0xbab   :  { %6182 = vmatpush3.bf16.msra.mxu1 %v7040_v32  ;;  %5757 = vmatprep.mubr.msk.f32.mxu1 %vm6716_vm1, %v6717_v35 }
 0xbac   :  { %6183 = vmatprep.subr.bf16.mxu1 %v6715_v25 }
 0xbaf   :  { %6185 = vmatpush3.bf16.msra.mxu1 %v7050_v37  ;;  %v1853_v2 = vpop.permute.xlu0 %1852  ;;  %v2462_v37 = vld [vmem:[%s8368_s11] sm:$0xff] }
 0xbb0   :  { %v1855_v62 = vmul.f32 %v6434_v31, %v1853_v2  ;;  %6192 = vmatprep.subr.bf16.mxu1 %v6715_v25  ;;  %v2160_v2 = vld [vmem:[%s8372_s30 + $0x10] sm:$0xff] }
 0xbb1   :  { %vm2161_vm13 = vcmp.gt.f32.partialorder %v2160_v2, 0.0 }
 0xbb2   :  { %5758 = vmatmul.mubr.msk.f32.vlgmr.msra.gmra.mrb[32].mxu1 %vm269_vm2, %v7354_v23  ;;  %v7439_v14 = vsel %vm1663_vm10, %v1855_v62, %v7319_v0 }
 0xbb3   :  { %2277 = vrot.lane.b32.xlu1 %v7439_v14, %s6720_s16  ;;  %6194 = vmatpush3.bf16.msra.mxu1 %v7203_v43  ;;  %v2463_v43 = vld [vmem:[%s8368_s11 + $0x8] sm:$0xff] }
 0xbb4   :  { %6195 = vmatprep.subr.bf16.mxu1 %v6715_v25  ;;  %5779 = vmatprep.mubr.msk.f32.mxu1 %vm6716_vm1, %v6717_v35 }
 0xbb7   :  { %6197 = vmatpush3.bf16.msra.mxu1 %v7209_v48  ;;  %v7462_v48 = vpack.c.bf16 %v2463_v43, %v2462_v37 }
 0xbb8   :  { %6204 = vmatprep.subr.bf16.mxu1 %v6715_v25 }
 0xbba   :  { %v2048_v32 = vpop.permute.xlu0 %2047 }
 0xbbb   :  { %5747 = vmatmul.mubr.msk.f32.vlgmr.msra.gmra.mrb[24].mxu0 %vm269_vm2, %v2048_v32 }
 0xbbc   :  { %6188 = vmatpush3.bf16.msra.mxu0 %v7148_v63  ;;  %5768 = vmatprep.mubr.msk.f32.mxu0 %vm6716_vm1, %v6717_v35  ;;  %v2464_v63 = vld [vmem:[%s8368_s11 + $0x10] sm:$0xff] }
 0xbbd   :  { %6189 = vmatprep.subr.bf16.mxu0 %v6715_v25 }
 0xbc0   :  { %6191 = vmatpush3.bf16.msra.mxu0 %v7158_v6  ;;  %v2465_v6 = vld [vmem:[%s8368_s11 + $0x18] sm:$0xff] }
 0xbc1   :  { %6198 = vmatprep.subr.bf16.mxu0 %v6715_v25  ;;  %v7472_v23 = vpack.c.bf16 %v2465_v6, %v2464_v63 }
 0xc25   :  { %v2278_v0 = vpop.permute.xlu1 %2277 }
 0xc26   :  { %5769 = vmatmul.mubr.msk.f32.vlgmr.msra.gmra.mrb[26].mxu0 %vm269_vm2, %v2278_v0  ;;  %v7504_v0 = vsel %vm1663_vm10, %v7303_v47, %v7300_v15  ;;  %v2460_v15 = vld [vmem:[%s8370_s7 + $0x18] sm:$0xff] }
 0xc27   :  { %6200 = vmatpush3.bf16.msra.mxu0 %v7462_v48  ;;  %5790 = vmatprep.mubr.msk.f32.mxu0 %vm6716_vm1, %v6717_v35  ;;  %vm2461_vm14 = vcmp.gt.f32.partialorder %v2460_v15, 0.0 }
 0xc28   :  { %6201 = vmatprep.subr.bf16.mxu0 %v6715_v25  ;;  %v2561_v49 = vsel %vm2461_vm14, 1, %v6718_v41 }
 0xc2b   :  { %6203 = vmatpush3.bf16.msra.mxu0 %v7472_v23 }
 0xc2c   :  { %6210 = vmatprep.subr.bf16.mxu0 %v6715_v25 }
 0xc2e   :  { %5791 = vmatmul.mubr.msk.f32.vlgmr.msra.gmra.mrb[28].mxu0 %vm269_vm2, %v2048_v32 }
 0xc2f   :  { %6212 = vmatpush3.bf16.msra.mxu0 %v7112_v33  ;;  %5812 = vmatprep.mubr.msk.f32.mxu0 %vm6716_vm1, %v6717_v35 }
 0xc30   :  { %6213 = vmatprep.subr.bf16.mxu0 %v6715_v25 }
 0xc33   :  { %6215 = vmatpush3.bf16.msra.mxu0 %v7119_v39 }
 0xc34   :  { %6222 = vmatprep.subr.bf16.mxu0 %v6715_v25 }
 0xc7d   :  { %v2042_v34 = vpop.f32.mrb[30].mxu1 }
 0xc7e   :  { %v5737_v1 = vpop.f32.mrb[31].mxu1 }
 0xc85   :  { %v2232_v16 = vpop.f32.mrb[32].mxu1 }
 0xc86   :  { %v2236_v18 = vadd.f32 %v2232_v16, %v7091_v5  ;;  %v5759_v26 = vpop.f32.mrb[33].mxu1 }
 0xc88   :  { %6441 = vtanh.f32 %v2236_v18  ;;  %v5188_v39 = vmul.f32 -1.442695, %v2236_v18 }
 0xc8e   :  { %v2117_v10 = vpop.f32.mrb[24].mxu0 }
 0xc8f   :  { %v2118_v29 = vadd.f32 %v2117_v10, %v2042_v34  ;;  %v5748_v31 = vpop.f32.mrb[25].mxu0 }
 0xc91   :  { %v2128_v33 = vadd.f32 %v7179_v11, %v2118_v29  ;;  %v7514_v29 = vsel %vm1361_vm9, %v7379_v20, %v7376_v22  ;;  %v7531_v20 = vsel %vm1963_vm12, %v7395_v42, %v7392_v45 }
 0xc92   :  { %v6442_v28 = vpop.eup %6441 }
 0xc93   :  { %6443 = vtanh.f32 %v2128_v33  ;;  %2246 = vrot.lane.b32.xlu0 %v6442_v28, %s6719_s6  ;;  %v5186_v46 = vmul.f32 -1.442695, %v2128_v33 }
 0xc94   :  { %6445 = vpow2.f32 %v5188_v39 }
 0xc95   :  { %6447 = vpow2.f32 %v5186_v46 }
 0xc9d   :  { %v6444_v36 = vpop.eup %6443 }
 0xc9e   :  { %2138 = vrot.lane.b32.xlu1 %v6444_v36, %s6719_s6  ;;  %v6446_v57 = vpop.eup %6445 }
 0xc9f   :  { %v2240_v5 = vadd.f32 1.0, %v6446_v57  ;;  %v6448_v44 = vpop.eup %6447 }
 0xca0   :  { %v2132_v52 = vadd.f32 1.0, %v6448_v44 }
 0xca1   :  { %6449 = vrcp.f32 %v2240_v5 }
 0xcab   :  { %v6450_v59 = vpop.eup %6449 }
 0xcac   :  { %v2244_v34 = vmul.f32 %v6450_v59, %v7504_v0 }
 0xcf9   :  { %v7490_v40 = vpop.f32.mrb[26].mxu0 }
 0xcfa   :  { %v5770_v27 = vpop.f32.mrb[27].mxu0 }
 0xd01   :  { %v2532_v61 = vpop.f32.mrb[28].mxu0 }
 0xd02   :  { %v2536_v24 = vadd.f32 %v2532_v61, %v7071_v50  ;;  %v5792_v4 = vpop.f32.mrb[29].mxu0  ;;  %v2261_v50 = vsel %vm2161_vm13, 1, %v6718_v41 }
 0xd04   :  { %6451 = vtanh.f32 %v2536_v24  ;;  %v5194_v43 = vmul.f32 -1.442695, %v2536_v24  ;;  %v2573_v24 = vld [vmem:[%s8331_s10 + $0x8] sm:$0xff] }
 0xd05   :  { %v2247_v53 = vpop.permute.xlu0 %2246  ;;  %6453 = vrcp.f32 %v2132_v52 }
 0xd06   :  { %v2249_v51 = vmul.f32 %v6450_v59, %v2247_v53  ;;  %6455 = vpow2.f32 %v5194_v43  ;;  %v2575_v53 = vld [vmem:[%s8331_s10 + $0x18] sm:$0xff] }
 0xd08   :  { %2251 = vrot.lane.b32.xlu1 %v2249_v51, %s6720_s16 }
 0xd0e   :  { %v6452_v13 = vpop.eup %6451 }
 0xd0f   :  { %2546 = vrot.lane.b32.xlu0 %v6452_v13, %s6719_s6  ;;  %v6454_v62 = vpop.eup %6453 }
 0xd10   :  { %v2139_v32 = vpop.permute.xlu1 %2138  ;;  %v6456_v63 = vpop.eup %6455  ;;  %v2136_v47 = vmul.f32 %v6454_v62, %v7514_v29 }
 0xd11   :  { %v2141_v37 = vmul.f32 %v6454_v62, %v2139_v32  ;;  %v2540_v6 = vadd.f32 1.0, %v6456_v63  ;;  %v2765_v32 = vld [vmem:[%s8336_s15 + $0x8] sm:$0xff]  ;;  %v2766_v63 = vld [vmem:[%s8336_s15 + $0x10] sm:$0xff] }
 0xd13   :  { %2143 = vrot.lane.b32.xlu0 %v2141_v37, %s6720_s16  ;;  %6457 = vrcp.f32 %v2540_v6  ;;  %v2767_v6 = vld [vmem:[%s8336_s15 + $0x18] sm:$0xff] }
 0xd17   :  { %2263 = vperm.xlu0 %6368, %v2261_v50  }
 0xd1d   :  { %v6458_v18 = vpop.eup %6457 }
 0xd1e   :  { %v2544_v36 = vmul.f32 %v6458_v18, %v7531_v20 }
 0xd7a   :  { %v2252_v1 = vpop.permute.xlu1 %2251 }
 0xd7b   :  { %v7507_v16 = vadd.f32 %v2252_v1, %v2244_v34 }
 0xd7d   :  { %6459 = vtanh.f32 %v7507_v16 }
 0xd81   :  { %v2547_v26 = vpop.permute.xlu0 %2546 }
 0xd82   :  { %v2549_v10 = vmul.f32 %v6458_v18, %v2547_v26 }
 0xd84   :  { %2551 = vrot.lane.b32.xlu1 %v2549_v10, %s6720_s16 }
 0xd85   :  { %v2144_v31 = vpop.permute.xlu0 %2143 }
 0xd86   :  { %v7521_v33 = vadd.f32 %v2144_v31, %v2136_v47 }
 0xd87   :  { %v6460_v28 = vpop.eup %6459 }
 0xd88   :  { %6461 = vtanh.f32 %v7521_v33  ;;  %2257 = vrot.lane.b32.xlu1 %v6460_v28, %s6719_s6 }
 0xd8c   :  { %2563 = vperm.xlu1 %6367, %v2561_v49  }
 0xd92   :  { %v6462_v22 = vpop.eup %6461 }
 0xd93   :  { %2149 = vrot.lane.b32.xlu0 %v6462_v22, %s6719_s6 }
 0xd96   :  { %v7536_v57 = vpop.permute.xlu0 %2263 }
 0xd97   :  { %vm2265_vm15 = vcmp.eq.s32.totalorder %v7536_v57, 1 }
 0xdf6   :  { %v2552_v39 = vpop.permute.xlu1 %2551 }
 0xdf7   :  { %v7534_v46 = vadd.f32 %v2552_v39, %v2544_v36 }
 0xdf9   :  { %6463 = vtanh.f32 %v7534_v46 }
 0xdfa   :  { %v2258_v5 = vpop.permute.xlu1 %2257 }
 0xdfb   :  { %v2260_v27 = vmul.f32 %v6450_v59, %v2258_v5 }
 0xdfd   :  { %v7543_v44 = vsel %vm2265_vm15, %v2260_v27, %v7336_v12  ;;  %v2572_v12 = vld [vmem:[%s8331_s10] sm:$0xff] }
 0xdfe   :  { %2352 = vrot.lane.b32.xlu1 %v7543_v44, %s6720_s16  ;;  %v7563_v59 = vpack.c.bf16 %v2573_v24, %v2572_v12 }
 0xe03   :  { %v6464_v45 = vpop.eup %6463 }
 0xe04   :  { %2557 = vrot.lane.b32.xlu0 %v6464_v45, %s6719_s6 }
 0xe05   :  { %v2150_v42 = vpop.permute.xlu0 %2149 }
 0xe06   :  { %v2152_v61 = vmul.f32 %v6454_v62, %v2150_v42  ;;  %v2764_v62 = vld [vmem:[%s8336_s15] sm:$0xff] }
 0xe07   :  { %v7592_v43 = vpack.c.bf16 %v2765_v32, %v2764_v62 }
 0xe08   :  { %v7551_v52 = vsel %vm1963_vm12, %v2152_v61, %v7411_v8  ;;  %v2574_v8 = vld [vmem:[%s8331_s10 + $0x10] sm:$0xff] }
 0xe09   :  { %2156 = vrot.lane.b32.xlu0 %v7551_v52, %s6720_s16  ;;  %v7573_v13 = vpack.c.bf16 %v2575_v53, %v2574_v8 }
 0xe0b   :  { %v7561_v4 = vpop.permute.xlu1 %2563 }
 0xe0c   :  { %vm2565_vm0 = vcmp.eq.s32.totalorder %v7561_v4, 1 }
 0xe70   :  { %v2353_v51 = vpop.permute.xlu1 %2352 }
 0xe71   :  { %5780 = vmatmul.mubr.msk.f32.vlgmr.msra.gmra.mrb[34].mxu1 %vm269_vm2, %v2353_v51 }
 0xe72   :  { %6206 = vmatpush3.bf16.msra.mxu1 %v7563_v59  ;;  %5801 = vmatprep.mubr.msk.f32.mxu1 %vm6716_vm1, %v6717_v35 }
 0xe73   :  { %6207 = vmatprep.subr.bf16.mxu1 %v6715_v25 }
 0xe76   :  { %v2558_v2 = vpop.permute.xlu0 %2557  ;;  %6209 = vmatpush3.bf16.msra.mxu1 %v7573_v13 }
 0xe77   :  { %v2560_v37 = vmul.f32 %v6458_v18, %v2558_v2  ;;  %6216 = vmatprep.subr.bf16.mxu1 %v6715_v25 }
 0xe79   :  { %v7590_v50 = vsel %vm2565_vm0, %v2560_v37, %v7422_v30  ;;  %v7605_v30 = vpack.c.bf16 %v2767_v6, %v2766_v63 }
 0xe7a   :  { %2649 = vrot.lane.b32.xlu1 %v7590_v50, %s6720_s16 }
 0xe7b   :  { %v2157_v34 = vpop.permute.xlu0 %2156 }
 0xe7c   :  { %2159 = vst.msk [vmem:[#allocation2 + $0x10] sm:$0xff] %vm269_vm2, %v2157_v34  ;;  %5802 = vmatmul.mubr.msk.f32.vlgmr.msra.gmra.mrb[36].mxu1 %vm269_vm2, %v2157_v34  ;;  %v7637_v34 = vsel %vm1663_vm10, %v7405_v17, %v7402_v55  ;;  %v7653_v17 = vsel %vm2265_vm15, %v7507_v16, %v7504_v0  ;;  %v2876_v0 = vld [vmem:[%s8339_s18 + $0x10] sm:$0xff] }
 0xe7d   :  { %6218 = vmatpush3.bf16.msra.mxu1 %v7592_v43  ;;  %5823 = vmatprep.mubr.msk.f32.mxu1 %vm6716_vm1, %v6717_v35 }
 0xe7e   :  { %6219 = vmatprep.subr.bf16.mxu1 %v6715_v25 }
 0xe81   :  { %6221 = vmatpush3.bf16.msra.mxu1 %v7605_v30 }
 0xe82   :  { %6228 = vmatprep.subr.bf16.mxu1 %v6715_v25 }
 0xe84   :  { %5824 = vmatmul.mubr.msk.f32.vlgmr.msra.gmra.mrb[38].mxu1 %vm269_vm2, %v2353_v51 }
 0xe85   :  { %5845 = vmatprep.mubr.msk.f32.mxu1 %vm6716_vm1, %v6717_v35 }
 0xeec   :  { %v7615_v1 = vpop.permute.xlu1 %2649 }
 0xeed   :  { %5813 = vmatmul.mubr.msk.f32.vlgmr.msra.gmra.mrb[30].mxu0 %vm269_vm2, %v7615_v1 }
 0xeee   :  { %5834 = vmatprep.mubr.msk.f32.mxu0 %vm6716_vm1, %v6717_v35 }
 0xf44   :  { %v2422_v18 = vpop.f32.mrb[34].mxu1 }
 0xf45   :  { %v2423_v26 = vadd.f32 %v2422_v18, %v7490_v40  ;;  %v5781_v10 = vpop.f32.mrb[35].mxu1 }
 0xf47   :  { %v2433_v15 = vadd.f32 %v7263_v21, %v2423_v26 }
 0xf49   :  { %6465 = vtanh.f32 %v2433_v15  ;;  %v5192_v5 = vmul.f32 -1.442695, %v2433_v15  ;;  %v2762_v15 = vld [vmem:[%s8372_s30 + $0x18] sm:$0xff] }
 0xf4a   :  { %vm2763_vm3 = vcmp.gt.f32.partialorder %v2762_v15, 0.0 }
 0xf4b   :  { %v2863_v19 = vsel %vm2763_vm3, 1, %v6718_v41 }
 0xf4f   :  { %v2644_v47 = vpop.f32.mrb[36].mxu1 }
 0xf50   :  { %v5803_v31 = vpop.f32.mrb[37].mxu1 }
 0xf53   :  { %v6466_v28 = vpop.eup %6465 }
 0xf54   :  { %2443 = vrot.lane.b32.xlu0 %v6466_v28, %s6719_s6 }
 0xf57   :  { %v2834_v49 = vpop.f32.mrb[38].mxu1 }
 0xf58   :  { %v2838_v22 = vadd.f32 %v2834_v49, %v7089_v3  ;;  %v5825_v36 = vpop.f32.mrb[39].mxu1 }
 0xf5a   :  { %6467 = vtanh.f32 %v2838_v22  ;;  %v5200_v45 = vmul.f32 -1.442695, %v2838_v22 }
 0xf5b   :  { %6469 = vpow2.f32 %v5192_v5  ;;  %v2875_v5 = vld [vmem:[%s8339_s18 + $0x8] sm:$0xff] }
 0xf64   :  { %v6468_v39 = vpop.eup %6467 }
 0xf65   :  { %2848 = vrot.lane.b32.xlu1 %v6468_v39, %s6719_s6  ;;  %v6470_v40 = vpop.eup %6469  ;;  %v2874_v39 = vld [vmem:[%s8339_s18] sm:$0xff] }
 0xf66   :  { %v2437_v27 = vadd.f32 1.0, %v6470_v40  ;;  %v7669_v16 = vpack.c.bf16 %v2875_v5, %v2874_v39  ;;  %v2877_v40 = vld [vmem:[%s8339_s18 + $0x18] sm:$0xff] }
 0xf68   :  { %6471 = vrcp.f32 %v2437_v27  ;;  %6224 = vmatpush3.bf16.msra.mxu0 %v7669_v16  ;;  %v7675_v27 = vpack.c.bf16 %v2877_v40, %v2876_v0 }
 0xf69   :  { %6473 = vpow2.f32 %v5200_v45  ;;  %6225 = vmatprep.subr.bf16.mxu0 %v6715_v25 }
 0xf6c   :  { %6227 = vmatpush3.bf16.msra.mxu0 %v7675_v27 }
 0xf6d   :  { %6234 = vmatprep.subr.bf16.mxu0 %v6715_v25 }
 0xf72   :  { %v6472_v24 = vpop.eup %6471 }
 0xf73   :  { %v6474_v3 = vpop.eup %6473  ;;  %v2441_v18 = vmul.f32 %v6472_v24, %v7637_v34 }
 0xf74   :  { %v2842_v51 = vadd.f32 1.0, %v6474_v3  ;;  %v2870_v3 = vld [vmem:[%s8338_s17] sm:$0xff] }
 0xfc0   :  { %v2719_v21 = vpop.f32.mrb[30].mxu0 }
 0xfc1   :  { %v2720_v42 = vadd.f32 %v2719_v21, %v2644_v47  ;;  %v5814_v61 = vpop.f32.mrb[31].mxu0  ;;  %v7685_v21 = vsel %vm1963_vm12, %v7521_v33, %v7514_v29  ;;  %v2872_v29 = vld [vmem:[%s8338_s17 + $0x10] sm:$0xff]  ;;  %v2873_v33 = vld [vmem:[%s8338_s17 + $0x18] sm:$0xff] }
 0xfc3   :  { %v2730_v12 = vadd.f32 %v7179_v11, %v2720_v42 }
 0xfc5   :  { %6475 = vtanh.f32 %v2730_v12  ;;  %v5198_v11 = vmul.f32 -1.442695, %v2730_v12 }
 0xfc6   :  { %v2444_v8 = vpop.permute.xlu0 %2443  ;;  %6477 = vrcp.f32 %v2842_v51 }
 0xfc7   :  { %v2446_v53 = vmul.f32 %v6472_v24, %v2444_v8  ;;  %6479 = vpow2.f32 %v5198_v11  ;;  %v2871_v8 = vld [vmem:[%s8338_s17 + $0x8] sm:$0xff] }
 0xfc9   :  { %2448 = vrot.lane.b32.xlu1 %v2446_v53, %s6720_s16  ;;  %v7697_v53 = vpack.c.bf16 %v2871_v8, %v2870_v3 }
 0xfcb   :  { %6230 = vmatpush3.bf16.msra.mxu1 %v7697_v53 }
 0xfcc   :  { %6231 = vmatprep.subr.bf16.mxu1 %v6715_v25 }
 0xfcf   :  { %v6476_v2 = vpop.eup %6475 }
 0xfd0   :  { %2740 = vrot.lane.b32.xlu0 %v6476_v2, %s6719_s6  ;;  %v7629_v62 = vpop.eup %6477  ;;  %v7706_v2 = vpack.c.bf16 %v2873_v33, %v2872_v29 }
 0xfd1   :  { %v6480_v63 = vpop.eup %6479  ;;  %v2846_v49 = vmul.f32 %v7629_v62, %v7653_v17 }
 0xfd2   :  { %v2734_v6 = vadd.f32 1.0, %v6480_v63  ;;  %6233 = vmatpush3.bf16.msra.mxu1 %v7706_v2 }
 0xfd3   :  { %6240 = vmatprep.subr.bf16.mxu1 %v6715_v25 }
 0xfd4   :  { %6481 = vrcp.f32 %v2734_v6 }
 0xfd7   :  { %v2849_v32 = vpop.permute.xlu1 %2848 }
 0xfd8   :  { %v2851_v37 = vmul.f32 %v7629_v62, %v2849_v32 }
 0xfda   :  { %2853 = vrot.lane.b32.xlu0 %v2851_v37, %s6720_s16 }
 0xfde   :  { %v6482_v47 = vpop.eup %6481 }
 0xfdf   :  { %v2738_v42 = vmul.f32 %v6482_v47, %v7685_v21 }
0x103b   :  { %v2449_v26 = vpop.permute.xlu1 %2448 }
0x103c   :  { %v7640_v10 = vadd.f32 %v2449_v26, %v2441_v18 }
0x103e   :  { %6483 = vtanh.f32 %v7640_v10 }
0x1042   :  { %v2741_v31 = vpop.permute.xlu0 %2740 }
0x1043   :  { %v2743_v28 = vmul.f32 %v6482_v47, %v2741_v31 }
0x1045   :  { %2745 = vrot.lane.b32.xlu1 %v2743_v28, %s6720_s16 }
0x1048   :  { %v6484_v55 = vpop.eup %6483 }
0x1049   :  { %2865 = vperm.xlu1 %6367, %v2863_v19   ;;  %2454 = vrot.lane.b32.xlu0 %v6484_v55, %s6719_s6  ;;  %v7774_v55 = vld [vmem:[%s8340_s19] ss:$0 sm:$0xff] }
0x104c   :  { %v2854_v22 = vpop.permute.xlu0 %2853 }
0x104d   :  { %v7657_v36 = vadd.f32 %v2854_v22, %v2846_v49 }
0x104f   :  { %6485 = vtanh.f32 %v7657_v36 }
0x1059   :  { %v6486_v45 = vpop.eup %6485 }
0x105a   :  { %2859 = vrot.lane.b32.xlu0 %v6486_v45, %s6719_s6 }
0x10b7   :  { %v2746_v61 = vpop.permute.xlu1 %2745 }
0x10b8   :  { %v7688_v12 = vadd.f32 %v2746_v61, %v2738_v42 }
0x10ba   :  { %6487 = vtanh.f32 %v7688_v12 }
0x10bb   :  { %v2455_v38 = vpop.permute.xlu0 %2454 }
0x10bc   :  { %v2457_v51 = vmul.f32 %v6472_v24, %v2455_v38 }
0x10be   :  { %v7712_v32 = vsel %vm2265_vm15, %v2457_v51, %v7439_v14 }
0x10bf   :  { %2879 = vrot.lane.b32.xlu0 %v7712_v32, %s6720_s16 }
0x10c4   :  { %v6488_v37 = vpop.eup %6487 }
0x10c5   :  { %2751 = vrot.lane.b32.xlu1 %v6488_v37, %s6719_s6 }
0x10c8   :  { %v7719_v24 = vpop.permute.xlu1 %2865 }
0x10c9   :  { %vm2867_vm4 = vcmp.eq.s32.totalorder %v7719_v24, 1 }
0x10cc   :  { %v2860_v11 = vpop.permute.xlu0 %2859 }
0x10cd   :  { %v2862_v63 = vmul.f32 %v7629_v62, %v2860_v11 }
0x10cf   :  { %v7726_v14 = vsel %vm2867_vm4, %v2862_v63, %v7543_v44 }
0x10d0   :  { %2954 = vrot.lane.b32.xlu1 %v7726_v14, %s6720_s16 }
0x1131   :  { %v2880_v6 = vpop.permute.xlu0 %2879 }
0x1132   :  { %5835 = vmatmul.mubr.msk.f32.vlgmr.msra.gmra.mrb[32].mxu0 %vm269_vm2, %v2880_v6 }
0x1133   :  { %6236 = vmatpush3.bf16.msra.mxu0 %v7462_v48  ;;  %5856 = vmatprep.mubr.msk.f32.mxu0 %vm6716_vm1, %v6717_v35 }
0x1134   :  { %6237 = vmatprep.subr.bf16.mxu0 %v6715_v25 }
0x1137   :  { %6239 = vmatpush3.bf16.msra.mxu0 %v7472_v23  ;;  %v2752_v62 = vpop.permute.xlu1 %2751 }
0x1138   :  { %v2754_v18 = vmul.f32 %v6482_v47, %v2752_v62  ;;  %6246 = vmatprep.subr.bf16.mxu0 %v6715_v25  ;;  %v3062_v62 = vld [vmem:[%s8370_s7 + $0x20] sm:$0xff] }
0x1139   :  { %vm3063_vm5 = vcmp.gt.f32.partialorder %v3062_v62, 0.0 }
0x113a   :  { %5857 = vmatmul.mubr.msk.f32.vlgmr.msra.gmra.mrb[34].mxu0 %vm269_vm2, %v7615_v1  ;;  %v7742_v44 = vsel %vm2565_vm0, %v2754_v18, %v7551_v52 }
0x113b   :  { %2758 = vrot.lane.b32.xlu0 %v7742_v44, %s6720_s16  ;;  %5878 = vmatprep.mubr.msk.f32.mxu0 %vm6716_vm1, %v6717_v35 }
0x1142   :  { %v2955_v26 = vpop.permute.xlu1 %2954 }
0x1143   :  { %5846 = vmatmul.mubr.msk.f32.vlgmr.msra.gmra.mrb[40].mxu1 %vm269_vm2, %v2955_v26 }
0x1144   :  { %6242 = vmatpush3.bf16.msra.mxu1 %v7563_v59  ;;  %5867 = vmatprep.mubr.msk.f32.mxu1 %vm6716_vm1, %v6717_v35 }
0x1145   :  { %6243 = vmatprep.subr.bf16.mxu1 %v6715_v25 }
0x1148   :  { %6245 = vmatpush3.bf16.msra.mxu1 %v7573_v13 }
0x1149   :  { %6252 = vmatprep.subr.bf16.mxu1 %v6715_v25 }
0x11ad   :  { %v2759_v52 = vpop.permute.xlu0 %2758 }
0x11ae   :  { %2761 = vst.msk [vmem:[#allocation2 + $0x18] sm:$0xff] %vm269_vm2, %v2759_v52  ;;  %5868 = vmatmul.mubr.msk.f32.vlgmr.msra.gmra.mrb[42].mxu1 %vm269_vm2, %v2759_v52 }
0x11af   :  { %6254 = vmatpush3.bf16.msra.mxu1 %v7592_v43  ;;  %5889 = vmatprep.mubr.msk.f32.mxu1 %vm6716_vm1, %v6717_v35 }
0x11b0   :  { %6255 = vmatprep.subr.bf16.mxu1 %v6715_v25 }
0x11b3   :  { %6257 = vmatpush3.bf16.msra.mxu1 %v7605_v30 }
0x11b4   :  { %6264 = vmatprep.subr.bf16.mxu1 %v6715_v25 }
0x11b6   :  { %5890 = vmatmul.mubr.msk.f32.vlgmr.msra.gmra.mrb[44].mxu1 %vm269_vm2, %v2955_v26 }
0x11b7   :  { %6266 = vmatpush3.bf16.msra.mxu1 %v7697_v53  ;;  %5911 = vmatprep.mubr.msk.f32.mxu1 %vm6716_vm1, %v6717_v35 }
0x11b8   :  { %6267 = vmatprep.subr.bf16.mxu1 %v6715_v25 }
0x11bb   :  { %6269 = vmatpush3.bf16.msra.mxu1 %v7706_v2 }
0x11bc   :  { %6276 = vmatprep.subr.bf16.mxu1 %v6715_v25 }
0x1205   :  { %v2949_v1 = vpop.f32.mrb[32].mxu0 }
0x1206   :  { %v5836_v15 = vpop.f32.mrb[33].mxu0 }
0x120d   :  { %v3134_v47 = vpop.f32.mrb[34].mxu0 }
0x120e   :  { %v3138_v31 = vadd.f32 %v3134_v47, %v7077_v56  ;;  %v5858_v28 = vpop.f32.mrb[35].mxu0 }
0x1210   :  { %6489 = vtanh.f32 %v3138_v31  ;;  %v5206_v56 = vmul.f32 -1.442695, %v3138_v31  ;;  %v7793_v31 = vsel %vm2565_vm0, %v7534_v46, %v7531_v20  ;;  %v3364_v20 = vld [vmem:[%s8372_s30 + $0x20] sm:$0xff] }
0x1211   :  { %vm3365_vm6 = vcmp.gt.f32.partialorder %v3364_v20, 0.0 }
0x1212   :  { %v3465_v57 = vsel %vm3365_vm6, 1, %v6718_v41 }
0x1216   :  { %v3024_v19 = vpop.f32.mrb[40].mxu1 }
0x1217   :  { %v3025_v49 = vadd.f32 %v3024_v19, %v2949_v1  ;;  %v5847_v22 = vpop.f32.mrb[41].mxu1 }
0x1219   :  { %v3035_v39 = vadd.f32 %v7774_v55, %v3025_v49 }
0x121a   :  { %v6490_v5 = vpop.eup %6489 }
0x121b   :  { %6491 = vtanh.f32 %v3035_v39  ;;  %3148 = vrot.lane.b32.xlu1 %v6490_v5, %s6719_s6  ;;  %v5204_v40 = vmul.f32 -1.442695, %v3035_v39 }
0x121c   :  { %6493 = vpow2.f32 %v5206_v56 }
0x121d   :  { %6495 = vpow2.f32 %v5204_v40 }
0x1225   :  { %v6492_v0 = vpop.eup %6491 }
0x1226   :  { %3045 = vrot.lane.b32.xlu0 %v6492_v0, %s6719_s6  ;;  %v6494_v45 = vpop.eup %6493  ;;  %v7803_v0 = vsel %vm2265_vm15, %v7640_v10, %v7637_v34  ;;  %v3170_v34 = vld [vmem:[%s8330_s9] sm:$0xff]  ;;  %v3171_v10 = vld [vmem:[%s8330_s9 + $0x8] sm:$0xff] }
0x1227   :  { %v3142_v42 = vadd.f32 1.0, %v6494_v45  ;;  %v6496_v8 = vpop.eup %6495 }
0x1228   :  { %v3039_v29 = vadd.f32 1.0, %v6496_v8  ;;  %v3173_v8 = vld [vmem:[%s8330_s9 + $0x18] sm:$0xff] }
0x1229   :  { %6497 = vrcp.f32 %v3142_v42  ;;  %v3172_v42 = vld [vmem:[%s8330_s9 + $0x10] sm:$0xff] }
0x1233   :  { %v6498_v37 = vpop.eup %6497 }
0x1234   :  { %v3146_v28 = vmul.f32 %v6498_v37, %v7793_v31 }
0x1281   :  { %v7779_v61 = vpop.f32.mrb[42].mxu1 }
0x1282   :  { %v5869_v3 = vpop.f32.mrb[43].mxu1 }
0x1283   :  { %v7824_v3 = vpack.c.bf16 %v3171_v10, %v3170_v34 }
0x1285   :  { %6248 = vmatpush3.bf16.msra.mxu0 %v7824_v3 }
0x1286   :  { %6249 = vmatprep.subr.bf16.mxu0 %v6715_v25 }
0x1289   :  { %v3436_v38 = vpop.f32.mrb[44].mxu1 }
0x128a   :  { %v3440_v33 = vadd.f32 %v3436_v38, %v7095_v9  ;;  %v5891_v51 = vpop.f32.mrb[45].mxu1  ;;  %v3163_v9 = vsel %vm3063_vm5, 1, %v6718_v41  ;;  %v7830_v38 = vpack.c.bf16 %v3173_v8, %v3172_v42 }
0x128c   :  { %6499 = vtanh.f32 %v3440_v33  ;;  %v5212_v1 = vmul.f32 -1.442695, %v3440_v33  ;;  %6251 = vmatpush3.bf16.msra.mxu0 %v7830_v38  ;;  %v7840_v33 = vsel %vm2867_vm4, %v7657_v36, %v7653_v17 }
0x128d   :  { %v3149_v11 = vpop.permute.xlu1 %3148  ;;  %6501 = vrcp.f32 %v3039_v29  ;;  %6258 = vmatprep.subr.bf16.mxu0 %v6715_v25 }
0x128e   :  { %v3151_v63 = vmul.f32 %v6498_v37, %v3149_v11  ;;  %6503 = vpow2.f32 %v5212_v1 }
0x1290   :  { %3153 = vrot.lane.b32.xlu0 %v3151_v63, %s6720_s16 }
0x1296   :  { %v6500_v6 = vpop.eup %6499 }
0x1297   :  { %3450 = vrot.lane.b32.xlu1 %v6500_v6, %s6719_s6  ;;  %v6502_v18 = vpop.eup %6501 }
0x1298   :  { %v3046_v26 = vpop.permute.xlu0 %3045  ;;  %v6504_v15 = vpop.eup %6503  ;;  %v3043_v46 = vmul.f32 %v6502_v18, %v7803_v0 }
0x1299   :  { %v3048_v52 = vmul.f32 %v6502_v18, %v3046_v26  ;;  %v3444_v47 = vadd.f32 1.0, %v6504_v15 }
0x129b   :  { %3050 = vrot.lane.b32.xlu1 %v3048_v52, %s6720_s16  ;;  %6505 = vrcp.f32 %v3444_v47 }
0x129f   :  { %3165 = vperm.xlu1 %6367, %v3163_v9  }
0x12a5   :  { %v6506_v22 = vpop.eup %6505 }
0x12a6   :  { %v3448_v51 = vmul.f32 %v6506_v22, %v7840_v33 }
0x1302   :  { %v3154_v19 = vpop.permute.xlu0 %3153 }
0x1303   :  { %v7796_v49 = vadd.f32 %v3154_v19, %v3146_v28 }
0x1305   :  { %6507 = vtanh.f32 %v7796_v49 }
0x1309   :  { %v3451_v39 = vpop.permute.xlu1 %3450 }
0x130a   :  { %v3453_v5 = vmul.f32 %v6506_v22, %v3451_v39 }
0x130c   :  { %3455 = vrot.lane.b32.xlu0 %v3453_v5, %s6720_s16 }
0x130d   :  { %v3051_v56 = vpop.permute.xlu1 %3050 }
0x130e   :  { %v7810_v40 = vadd.f32 %v3051_v56, %v3043_v46 }
0x130f   :  { %v6508_v45 = vpop.eup %6507 }
0x1310   :  { %6509 = vtanh.f32 %v7810_v40  ;;  %3159 = vrot.lane.b32.xlu0 %v6508_v45, %s6719_s6 }
0x1314   :  { %3467 = vperm.xlu0 %6368, %v3465_v57  }
0x131a   :  { %v6510_v29 = vpop.eup %6509 }
0x131b   :  { %3056 = vrot.lane.b32.xlu1 %v6510_v29, %s6719_s6 }
0x131e   :  { %v7845_v6 = vpop.permute.xlu1 %3165 }
0x131f   :  { %vm3167_vm7 = vcmp.eq.s32.totalorder %v7845_v6, 1 }
0x1320   :  { %v7939_v4 = vsel %vm3167_vm7, %v7796_v49, %v7793_v31 }
0x137e   :  { %v3456_v11 = vpop.permute.xlu0 %3455 }
0x137f   :  { %v7843_v63 = vadd.f32 %v3456_v11, %v3448_v51 }
0x1381   :  { %6511 = vtanh.f32 %v7843_v63 }
0x1382   :  { %v3160_v62 = vpop.permute.xlu0 %3159 }
0x1383   :  { %v3162_v26 = vmul.f32 %v6498_v37, %v3160_v62 }
0x1385   :  { %v7852_v52 = vsel %vm3167_vm7, %v3162_v26, %v7590_v50 }
0x1386   :  { %3251 = vrot.lane.b32.xlu0 %v7852_v52, %s6720_s16 }
0x138b   :  { %v6512_v17 = vpop.eup %6511 }
0x138c   :  { %3461 = vrot.lane.b32.xlu1 %v6512_v17, %s6719_s6 }
0x138d   :  { %v3057_v36 = vpop.permute.xlu1 %3056 }
0x138e   :  { %v3059_v9 = vmul.f32 %v6502_v18, %v3057_v36  ;;  %v7918_v36 = vld [vmem:[%s8370_s7 + $0x28] sm:$0xff] }
0x138f   :  { %vm3665_vm9 = vcmp.gt.f32.partialorder %v7918_v36, 0.0 }
0x1390   :  { %v7860_v1 = vsel %vm2867_vm4, %v3059_v9, %v7712_v32 }
0x1391   :  { %3481 = vrot.lane.b32.xlu1 %v7860_v1, %s6720_s16 }
0x1393   :  { %v7864_v37 = vpop.permute.xlu0 %3467 }
0x1394   :  { %vm3469_vm8 = vcmp.eq.s32.totalorder %v7864_v37, 1 }
0x13f8   :  { %v3252_v50 = vpop.permute.xlu0 %3251 }
0x13f9   :  { %5879 = vmatmul.mubr.msk.f32.vlgmr.msra.gmra.mrb[36].mxu0 %vm269_vm2, %v3252_v50 }
0x13fa   :  { %6260 = vmatpush3.bf16.msra.mxu0 %v7669_v16  ;;  %5900 = vmatprep.mubr.msk.f32.mxu0 %vm6716_vm1, %v6717_v35 }
0x13fb   :  { %6261 = vmatprep.subr.bf16.mxu0 %v6715_v25 }
0x13fe   :  { %v3462_v18 = vpop.permute.xlu1 %3461  ;;  %6263 = vmatpush3.bf16.msra.mxu0 %v7675_v27 }
0x13ff   :  { %v3464_v32 = vmul.f32 %v6506_v22, %v3462_v18  ;;  %6270 = vmatprep.subr.bf16.mxu0 %v6715_v25 }
0x1401   :  { %v7877_v15 = vsel %vm3469_vm8, %v3464_v32, %v7726_v14  ;;  %v7905_v14 = vld [vmem:[#allocation6] ss:$0 sm:$0xff]  ;;  %v3765_v32 = vsel %vm3665_vm9, 1, %v6718_v41 }
0x1402   :  { %3556 = vrot.lane.b32.xlu0 %v7877_v15, %s6720_s16 }
0x1403   :  { %v3482_v47 = vpop.permute.xlu1 %3481 }
0x1404   :  { %5901 = vmatmul.mubr.msk.f32.vlgmr.msra.gmra.mrb[38].mxu0 %vm269_vm2, %v3482_v47 }
0x1405   :  { %6272 = vmatpush3.bf16.msra.mxu0 %v7462_v48  ;;  %5922 = vmatprep.mubr.msk.f32.mxu0 %vm6716_vm1, %v6717_v35 }
0x1406   :  { %6273 = vmatprep.subr.bf16.mxu0 %v6715_v25 }
0x1409   :  { %6275 = vmatpush3.bf16.msra.mxu0 %v7472_v23 }
0x140a   :  { %6282 = vmatprep.subr.bf16.mxu0 %v6715_v25 }
0x140c   :  { %5923 = vmatmul.mubr.msk.f32.vlgmr.msra.gmra.mrb[40].mxu0 %vm269_vm2, %v3252_v50 }
0x140d   :  { %6284 = vmatpush3.bf16.msra.mxu0 %v7824_v3  ;;  %5944 = vmatprep.mubr.msk.f32.mxu0 %vm6716_vm1, %v6717_v35 }
0x140e   :  { %6285 = vmatprep.subr.bf16.mxu0 %v6715_v25 }
0x1411   :  { %6287 = vmatpush3.bf16.msra.mxu0 %v7830_v38 }
0x1412   :  { %6294 = vmatprep.subr.bf16.mxu0 %v6715_v25 }
0x1474   :  { %v7895_v48 = vpop.permute.xlu0 %3556 }
0x1475   :  { %5912 = vmatmul.mubr.msk.f32.vlgmr.msra.gmra.mrb[46].mxu1 %vm269_vm2, %v7895_v48 }
0x1476   :  { %6278 = vmatpush3.bf16.msra.mxu1 %v7563_v59  ;;  %5933 = vmatprep.mubr.msk.f32.mxu1 %vm6716_vm1, %v6717_v35 }
0x1477   :  { %6279 = vmatprep.subr.bf16.mxu1 %v6715_v25 }
0x147a   :  { %6281 = vmatpush3.bf16.msra.mxu1 %v7573_v13 }
0x147b   :  { %6288 = vmatprep.subr.bf16.mxu1 %v6715_v25 }
0x14cc   :  { %v3321_v23 = vpop.f32.mrb[36].mxu0 }
0x14cd   :  { %v3322_v28 = vadd.f32 %v3321_v23, %v7779_v61  ;;  %v5880_v19 = vpop.f32.mrb[37].mxu0 }
0x14ce   :  { %v7927_v19 = vsel %vm2565_vm0, %v7688_v12, %v7685_v21 }
0x14cf   :  { %v3332_v22 = vadd.f32 %v7905_v14, %v3322_v28 }
0x14d1   :  { %6513 = vtanh.f32 %v3332_v22  ;;  %v5210_v45 = vmul.f32 -1.442695, %v3332_v22 }
0x14d7   :  { %v3551_v39 = vpop.f32.mrb[38].mxu0 }
0x14d8   :  { %v5902_v59 = vpop.f32.mrb[39].mxu0 }
0x14db   :  { %v6514_v5 = vpop.eup %6513 }
0x14dc   :  { %3342 = vrot.lane.b32.xlu1 %v6514_v5, %s6719_s6 }
0x14df   :  { %v3736_v20 = vpop.f32.mrb[40].mxu0 }
0x14e0   :  { %v3740_v46 = vadd.f32 %v3736_v20, %v7075_v54  ;;  %v5924_v13 = vpop.f32.mrb[41].mxu0 }
0x14e2   :  { %6515 = vtanh.f32 %v3740_v46  ;;  %v5218_v34 = vmul.f32 -1.442695, %v3740_v46 }
0x14e3   :  { %6517 = vpow2.f32 %v5210_v45 }
0x14ec   :  { %v6516_v56 = vpop.eup %6515 }
0x14ed   :  { %3750 = vrot.lane.b32.xlu0 %v6516_v56, %s6719_s6  ;;  %v6518_v61 = vpop.eup %6517 }
0x14ee   :  { %v3336_v57 = vadd.f32 1.0, %v6518_v61  ;;  %v7950_v61 = vsel %vm2867_vm4, %v7810_v40, %v7803_v0 }
0x14f0   :  { %6519 = vrcp.f32 %v3336_v57 }
0x14f1   :  { %6521 = vpow2.f32 %v5218_v34 }
0x14fa   :  { %v6520_v51 = vpop.eup %6519 }
0x14fb   :  { %v6522_v54 = vpop.eup %6521  ;;  %v3340_v22 = vmul.f32 %v6520_v51, %v7927_v19 }
0x14fc   :  { %v3744_v26 = vadd.f32 1.0, %v6522_v54 }
0x1548   :  { %v3626_v10 = vpop.f32.mrb[46].mxu1 }
0x1549   :  { %v3627_v42 = vadd.f32 %v3626_v10, %v3551_v39  ;;  %v5913_v8 = vpop.f32.mrb[47].mxu1 }
0x154b   :  { %v3637_v29 = vadd.f32 %v7774_v55, %v3627_v42 }
0x154d   :  { %6523 = vtanh.f32 %v3637_v29  ;;  %v5216_v47 = vmul.f32 -1.442695, %v3637_v29 }
0x154e   :  { %v3343_v11 = vpop.permute.xlu1 %3342  ;;  %6525 = vrcp.f32 %v3744_v26 }
0x154f   :  { %v3345_v62 = vmul.f32 %v6520_v51, %v3343_v11  ;;  %6527 = vpow2.f32 %v5216_v47 }
0x1551   :  { %3347 = vrot.lane.b32.xlu0 %v3345_v62, %s6720_s16 }
0x1557   :  { %v6524_v17 = vpop.eup %6523 }
0x1558   :  { %3647 = vrot.lane.b32.xlu1 %v6524_v17, %s6719_s6  ;;  %v6526_v9 = vpop.eup %6525 }
0x1559   :  { %v6528_v23 = vpop.eup %6527  ;;  %v3748_v21 = vmul.f32 %v6526_v9, %v7939_v4 }
0x155a   :  { %v3641_v28 = vadd.f32 1.0, %v6528_v23 }
0x155c   :  { %6529 = vrcp.f32 %v3641_v28 }
0x155f   :  { %v3751_v50 = vpop.permute.xlu0 %3750 }
0x1560   :  { %v3753_v18 = vmul.f32 %v6526_v9, %v3751_v50 }
0x1562   :  { %3755 = vrot.lane.b32.xlu1 %v3753_v18, %s6720_s16 }
0x1566   :  { %3767 = vperm.xlu1 %6367, %v3765_v32   ;;  %v6530_v5 = vpop.eup %6529 }
0x1567   :  { %v3645_v57 = vmul.f32 %v6530_v5, %v7950_v61 }
0x15c3   :  { %v3348_v39 = vpop.permute.xlu0 %3347 }
0x15c4   :  { %v7930_v59 = vadd.f32 %v3348_v39, %v3340_v22 }
0x15c6   :  { %6531 = vtanh.f32 %v7930_v59 }
0x15ca   :  { %v3648_v20 = vpop.permute.xlu1 %3647 }
0x15cb   :  { %v3650_v46 = vmul.f32 %v6530_v5, %v3648_v20 }
0x15cd   :  { %3652 = vrot.lane.b32.xlu0 %v3650_v46, %s6720_s16 }
0x15d0   :  { %v6532_v13 = vpop.eup %6531 }
0x15d1   :  { %3353 = vrot.lane.b32.xlu0 %v6532_v13, %s6719_s6 }
0x15d4   :  { %v3756_v12 = vpop.permute.xlu1 %3755 }
0x15d5   :  { %v7942_v56 = vadd.f32 %v3756_v12, %v3748_v21 }
0x15d7   :  { %6533 = vtanh.f32 %v7942_v56 }
0x15e1   :  { %v6534_v45 = vpop.eup %6533 }
0x15e2   :  { %3761 = vrot.lane.b32.xlu1 %v6534_v45, %s6719_s6 }
0x15e5   :  { %v7964_v0 = vpop.permute.xlu1 %3767 }
0x15e6   :  { %vm3769_vm10 = vcmp.eq.s32.totalorder %v7964_v0, 1  ;;  %v4880_v0 = vld [vmem:[%s8341_s20] sm:$0xff] }
0x15e7   :  { %v8076_v6 = vsel %vm3769_vm10, %v7942_v56, %v7939_v4 }
0x163f   :  { %v3653_v31 = vpop.permute.xlu0 %3652 }
0x1640   :  { %v7953_v49 = vadd.f32 %v3653_v31, %v3645_v57 }
0x1642   :  { %6535 = vtanh.f32 %v7953_v49 }
0x1643   :  { %v3354_v34 = vpop.permute.xlu0 %3353 }
0x1644   :  { %v3356_v10 = vmul.f32 %v6520_v51, %v3354_v34 }
0x1646   :  { %v7959_v42 = vsel %vm3167_vm7, %v3356_v10, %v7742_v44 }
0x1647   :  { %3360 = vrot.lane.b32.xlu1 %v7959_v42, %s6720_s16 }
0x164c   :  { %v6536_v24 = vpop.eup %6535 }
0x164d   :  { %3658 = vrot.lane.b32.xlu0 %v6536_v24, %s6719_s6 }
0x1654   :  { %v3762_v40 = vpop.permute.xlu1 %3761 }
0x1655   :  { %v3764_v8 = vmul.f32 %v6526_v9, %v3762_v40  ;;  %v3966_v40 = vld [vmem:[%s8372_s30 + $0x28] sm:$0xff] }
0x1656   :  { %vm3967_vm11 = vcmp.gt.f32.partialorder %v3966_v40, 0.0 }
0x1657   :  { %v7970_v29 = vsel %vm3769_vm10, %v3764_v8, %v7852_v52 }
0x1658   :  { %3853 = vrot.lane.b32.xlu0 %v7970_v29, %s6720_s16 }
0x16b9   :  { %v3361_v44 = vpop.permute.xlu1 %3360 }
0x16ba   :  { %3363 = vst.msk [vmem:[#allocation2 + $0x20] sm:$0xff] %vm269_vm2, %v3361_v44  ;;  %5934 = vmatmul.mubr.msk.f32.vlgmr.msra.gmra.mrb[48].mxu1 %vm269_vm2, %v3361_v44 }
0x16bb   :  { %6290 = vmatpush3.bf16.msra.mxu1 %v7592_v43  ;;  %5955 = vmatprep.mubr.msk.f32.mxu1 %vm6716_vm1, %v6717_v35 }
0x16bc   :  { %6291 = vmatprep.subr.bf16.mxu1 %v6715_v25 }
0x16bf   :  { %6293 = vmatpush3.bf16.msra.mxu1 %v7605_v30  ;;  %v3659_v51 = vpop.permute.xlu0 %3658  ;;  %v4266_v30 = vld [vmem:[%s8368_s11] sm:$0xff] }
0x16c0   :  { %v3661_v52 = vmul.f32 %v6530_v5, %v3659_v51  ;;  %6300 = vmatprep.subr.bf16.mxu1 %v6715_v25 }
0x16c2   :  { %5956 = vmatmul.mubr.msk.f32.vlgmr.msra.gmra.mrb[50].mxu1 %vm269_vm2, %v7895_v48  ;;  %v7987_v54 = vsel %vm3469_vm8, %v3661_v52, %v7860_v1  ;;  %v4067_v52 = vsel %vm3967_vm11, 1, %v6718_v41 }
0x16c3   :  { %4082 = vrot.lane.b32.xlu1 %v7987_v54, %s6720_s16  ;;  %6302 = vmatpush3.bf16.msra.mxu1 %v7697_v53  ;;  %v4267_v53 = vld [vmem:[%s8368_s11 + $0x8] sm:$0xff] }
0x16c4   :  { %6303 = vmatprep.subr.bf16.mxu1 %v6715_v25  ;;  %5977 = vmatprep.mubr.msk.f32.mxu1 %vm6716_vm1, %v6717_v35 }
0x16c7   :  { %6305 = vmatpush3.bf16.msra.mxu1 %v7706_v2  ;;  %v8010_v2 = vpack.c.bf16 %v4267_v53, %v4266_v30 }
0x16c8   :  { %6312 = vmatprep.subr.bf16.mxu1 %v6715_v25 }
0x16ca   :  { %v3854_v43 = vpop.permute.xlu0 %3853 }
0x16cb   :  { %5945 = vmatmul.mubr.msk.f32.vlgmr.msra.gmra.mrb[42].mxu0 %vm269_vm2, %v3854_v43 }
0x16cc   :  { %6296 = vmatpush3.bf16.msra.mxu0 %v7669_v16  ;;  %5966 = vmatprep.mubr.msk.f32.mxu0 %vm6716_vm1, %v6717_v35  ;;  %v4268_v16 = vld [vmem:[%s8368_s11 + $0x10] sm:$0xff] }
0x16cd   :  { %6297 = vmatprep.subr.bf16.mxu0 %v6715_v25 }
0x16d0   :  { %6299 = vmatpush3.bf16.msra.mxu0 %v7675_v27  ;;  %v4269_v27 = vld [vmem:[%s8368_s11 + $0x18] sm:$0xff] }
0x16d1   :  { %6306 = vmatprep.subr.bf16.mxu0 %v6715_v25  ;;  %v8020_v48 = vpack.c.bf16 %v4269_v27, %v4268_v16  ;;  %v3471_v27 = vsel %vm3469_vm8, %v7843_v63, %v7840_v33 }
0x1735   :  { %v4083_v1 = vpop.permute.xlu1 %4082 }
0x1736   :  { %5967 = vmatmul.mubr.msk.f32.vlgmr.msra.gmra.mrb[44].mxu0 %vm269_vm2, %v4083_v1 }
0x1737   :  { %6308 = vmatpush3.bf16.msra.mxu0 %v8010_v2  ;;  %5988 = vmatprep.mubr.msk.f32.mxu0 %vm6716_vm1, %v6717_v35 }
0x1738   :  { %6309 = vmatprep.subr.bf16.mxu0 %v6715_v25 }
0x173b   :  { %6311 = vmatpush3.bf16.msra.mxu0 %v8020_v48 }
0x173c   :  { %6318 = vmatprep.subr.bf16.mxu0 %v6715_v25 }
0x173e   :  { %5989 = vmatmul.mubr.msk.f32.vlgmr.msra.gmra.mrb[46].mxu0 %vm269_vm2, %v3854_v43 }
0x173f   :  { %6320 = vmatpush3.bf16.msra.mxu0 %v7824_v3  ;;  %6010 = vmatprep.mubr.msk.f32.mxu0 %vm6716_vm1, %v6717_v35 }
0x1740   :  { %6321 = vmatprep.subr.bf16.mxu0 %v6715_v25 }
0x1743   :  { %6323 = vmatpush3.bf16.msra.mxu0 %v7830_v38 }
0x1744   :  { %6330 = vmatprep.subr.bf16.mxu0 %v6715_v25 }
0x178d   :  { %v3848_v11 = vpop.f32.mrb[48].mxu1 }
0x178e   :  { %v5935_v62 = vpop.f32.mrb[49].mxu1 }
0x1795   :  { %v4038_v26 = vpop.f32.mrb[50].mxu1 }
0x1796   :  { %v4042_v17 = vadd.f32 %v4038_v26, %v7093_v7  ;;  %v5957_v9 = vpop.f32.mrb[51].mxu1 }
0x1798   :  { %6537 = vtanh.f32 %v4042_v17  ;;  %v5224_v22 = vmul.f32 -1.442695, %v4042_v17 }
0x179e   :  { %v3923_v50 = vpop.f32.mrb[42].mxu0 }
0x179f   :  { %v3924_v18 = vadd.f32 %v3923_v50, %v3848_v11  ;;  %v5946_v32 = vpop.f32.mrb[43].mxu0  ;;  %v8063_v50 = vsel %vm3167_vm7, %v7930_v59, %v7927_v19 }
0x17a1   :  { %v3934_v47 = vadd.f32 %v7905_v14, %v3924_v18 }
0x17a2   :  { %v6538_v23 = vpop.eup %6537 }
0x17a3   :  { %6539 = vtanh.f32 %v3934_v47  ;;  %4052 = vrot.lane.b32.xlu0 %v6538_v23, %s6719_s6  ;;  %v5222_v39 = vmul.f32 -1.442695, %v3934_v47 }
0x17a4   :  { %6541 = vpow2.f32 %v5224_v22 }
0x17a5   :  { %6543 = vpow2.f32 %v5222_v39 }
0x17ad   :  { %v6540_v28 = vpop.eup %6539 }
0x17ae   :  { %3944 = vrot.lane.b32.xlu1 %v6540_v28, %s6719_s6  ;;  %v6542_v5 = vpop.eup %6541 }
0x17af   :  { %v4046_v7 = vadd.f32 1.0, %v6542_v5  ;;  %v6544_v13 = vpop.eup %6543 }
0x17b0   :  { %v3938_v12 = vadd.f32 1.0, %v6544_v13  ;;  %v4376_v13 = vld [vmem:[%s8331_s10] sm:$0xff] }
0x17b1   :  { %6545 = vrcp.f32 %v4046_v7 }
0x17bb   :  { %v6546_v31 = vpop.eup %6545 }
0x17bc   :  { %v4050_v1 = vmul.f32 %v6546_v31, %v3471_v27 }
0x1809   :  { %v8038_v20 = vpop.f32.mrb[44].mxu0 }
0x180a   :  { %v5968_v46 = vpop.f32.mrb[45].mxu0 }
0x1811   :  { %v4336_v21 = vpop.f32.mrb[46].mxu0 }
0x1812   :  { %v4340_v45 = vadd.f32 %v4336_v21, %v7081_v60  ;;  %v5990_v57 = vpop.f32.mrb[47].mxu0  ;;  %v8049_v60 = vld [vmem:[%s8370_s7 + $0x30] sm:$0xff] }
0x1813   :  { %vm4265_vm12 = vcmp.gt.f32.partialorder %v8049_v60, 0.0 }
0x1814   :  { %6547 = vtanh.f32 %v4340_v45  ;;  %v4365_v43 = vsel %vm4265_vm12, 1, %v6718_v41  ;;  %v5230_v30 = vmul.f32 -1.442695, %v4340_v45 }
0x1815   :  { %v4053_v34 = vpop.permute.xlu0 %4052  ;;  %6549 = vrcp.f32 %v3938_v12  ;;  %v4378_v12 = vld [vmem:[%s8331_s10 + $0x10] sm:$0xff] }
0x1816   :  { %v4055_v10 = vmul.f32 %v6546_v31, %v4053_v34  ;;  %6551 = vpow2.f32 %v5230_v30 }
0x1818   :  { %4057 = vrot.lane.b32.xlu1 %v4055_v10, %s6720_s16 }
0x181e   :  { %v6548_v24 = vpop.eup %6547 }
0x181f   :  { %4350 = vrot.lane.b32.xlu0 %v6548_v24, %s6719_s6  ;;  %v6550_v8 = vpop.eup %6549 }
0x1820   :  { %v3945_v44 = vpop.permute.xlu1 %3944  ;;  %v6552_v53 = vpop.eup %6551  ;;  %v3942_v18 = vmul.f32 %v6550_v8, %v8063_v50 }
0x1821   :  { %v3947_v51 = vmul.f32 %v6550_v8, %v3945_v44  ;;  %v4344_v16 = vadd.f32 1.0, %v6552_v53 }
0x1823   :  { %3949 = vrot.lane.b32.xlu0 %v3947_v51, %s6720_s16  ;;  %6553 = vrcp.f32 %v4344_v16 }
0x1827   :  { %4069 = vperm.xlu0 %6368, %v4067_v52  }
0x182b   :  { %4367 = vperm.xlu0 %6368, %v4365_v43  }
0x182d   :  { %v6554_v26 = vpop.eup %6553 }
0x182e   :  { %v4348_v19 = vmul.f32 %v6554_v26, %v8076_v6 }
0x188a   :  { %v4058_v11 = vpop.permute.xlu1 %4057 }
0x188b   :  { %v4060_v62 = vadd.f32 %v4058_v11, %v4050_v1 }
0x188d   :  { %6555 = vtanh.f32 %v4060_v62 }
0x1891   :  { %v4351_v17 = vpop.permute.xlu0 %4350 }
0x1892   :  { %v4353_v9 = vmul.f32 %v6554_v26, %v4351_v17 }
0x1894   :  { %4355 = vrot.lane.b32.xlu1 %v4353_v9, %s6720_s16  ;;  %v8152_v9 = vld [vmem:[%s8370_s7 + $0x38] sm:$0xff] }
0x1895   :  { %v3950_v32 = vpop.permute.xlu0 %3949 }
0x1896   :  { %v8067_v47 = vadd.f32 %v3950_v32, %v3942_v18 }
0x1897   :  { %v6556_v33 = vpop.eup %6555 }
0x1898   :  { %6557 = vtanh.f32 %v8067_v47  ;;  %4063 = vrot.lane.b32.xlu1 %v6556_v33, %s6719_s6 }
0x18a2   :  { %v6558_v63 = vpop.eup %6557 }
0x18a3   :  { %3955 = vrot.lane.b32.xlu1 %v6558_v63, %s6719_s6 }
0x18a6   :  { %v8081_v28 = vpop.permute.xlu0 %4069 }
0x18a7   :  { %vm4071_vm13 = vcmp.eq.s32.totalorder %v8081_v28, 1 }
0x18aa   :  { %v8110_v57 = vpop.permute.xlu0 %4367 }
0x18ab   :  { %vm4369_vm14 = vcmp.eq.s32.totalorder %v8110_v57, 1 }
0x1906   :  { %v4356_v59 = vpop.permute.xlu1 %4355 }
0x1907   :  { %v8079_v23 = vadd.f32 %v4356_v59, %v4348_v19 }
0x1909   :  { %6559 = vtanh.f32 %v8079_v23  ;;  %v4371_v59 = vsel %vm4369_vm14, %v8079_v23, %v8076_v6 }
0x190a   :  { %v4064_v22 = vpop.permute.xlu1 %4063 }
0x190b   :  { %v4066_v39 = vmul.f32 %v6546_v31, %v4064_v22 }
0x190d   :  { %v4072_v5 = vsel %vm4071_vm13, %v4066_v39, %v7877_v15  ;;  %v4377_v15 = vld [vmem:[%s8331_s10 + $0x8] sm:$0xff] }
0x190e   :  { %4157 = vrot.lane.b32.xlu1 %v4072_v5, %s6720_s16  ;;  %v6313_v21 = vpack.c.bf16 %v4377_v15, %v4376_v13  ;;  %v8166_v5 = vsel %vm3769_vm10, %v8067_v47, %v8063_v50  ;;  %v4881_v50 = vld [vmem:[%s8341_s20 + $0x8] sm:$0xff] }
0x190f   :  { %v6342_v47 = vpack.c.bf16 %v4881_v50, %v4880_v0  ;;  %v5020_v50 = vld [vmem:[%s8370_s7] sm:$0xff] }
0x1913   :  { %v6560_v4 = vpop.eup %6559 }
0x1914   :  { %4361 = vrot.lane.b32.xlu0 %v6560_v4, %s6719_s6 }
0x1915   :  { %v3956_v56 = vpop.permute.xlu1 %3955 }
0x1916   :  { %v3958_v7 = vmul.f32 %v6550_v8, %v3956_v56 }
0x1918   :  { %v8093_v46 = vsel %vm3769_vm10, %v3958_v7, %v7959_v42  ;;  %v4379_v42 = vld [vmem:[%s8331_s10 + $0x18] sm:$0xff] }
0x1919   :  { %3962 = vrot.lane.b32.xlu0 %v8093_v46, %s6720_s16  ;;  %v6316_v31 = vpack.c.bf16 %v4379_v42, %v4378_v12 }
0x1980   :  { %v4158_v45 = vpop.permute.xlu1 %4157 }
0x1981   :  { %5978 = vmatmul.mubr.msk.f32.vlgmr.msra.gmra.mrb[52].mxu1 %vm269_vm2, %v4158_v45 }
0x1982   :  { %6314 = vmatpush3.bf16.msra.mxu1 %v6313_v21  ;;  %5999 = vmatprep.mubr.msk.f32.mxu1 %vm6716_vm1, %v6717_v35 }
0x1983   :  { %6315 = vmatprep.subr.bf16.mxu1 %v6715_v25 }
0x1986   :  { %v4362_v34 = vpop.permute.xlu0 %4361  ;;  %6317 = vmatpush3.bf16.msra.mxu1 %v6316_v31 }
0x1987   :  { %v4364_v10 = vmul.f32 %v6554_v26, %v4362_v34  ;;  %6324 = vmatprep.subr.bf16.mxu1 %v6715_v25  ;;  %v4882_v34 = vld [vmem:[%s8341_s20 + $0x10] sm:$0xff] }
0x1989   :  { %v8120_v24 = vsel %vm4369_vm14, %v4364_v10, %v7970_v29  ;;  %v4883_v10 = vld [vmem:[%s8341_s20 + $0x18] sm:$0xff] }
0x198a   :  { %4453 = vrot.lane.b32.xlu1 %v8120_v24, %s6720_s16 }
0x198b   :  { %v3963_v40 = vpop.permute.xlu0 %3962 }
0x198c   :  { %3965 = vst.msk [vmem:[#allocation2 + $0x28] sm:$0xff] %vm269_vm2, %v3963_v40  ;;  %6000 = vmatmul.mubr.msk.f32.vlgmr.msra.gmra.mrb[54].mxu1 %vm269_vm2, %v3963_v40 }
0x198d   :  { %6326 = vmatpush3.bf16.msra.mxu1 %v8010_v2  ;;  %6021 = vmatprep.mubr.msk.f32.mxu1 %vm6716_vm1, %v6717_v35 }
0x198e   :  { %6327 = vmatprep.subr.bf16.mxu1 %v6715_v25 }
0x1991   :  { %6329 = vmatpush3.bf16.msra.mxu1 %v8020_v48 }
0x1992   :  { %6336 = vmatprep.subr.bf16.mxu1 %v6715_v25 }
0x19fc   :  { %v4454_v29 = vpop.permute.xlu1 %4453 }
0x19fd   :  { %6011 = vmatmul.mubr.msk.f32.vlgmr.msra.gmra.mrb[48].mxu0 %vm269_vm2, %v4454_v29  ;;  %6022 = vmatmul.mubr.msk.f32.vlgmr.msra.gmra.mrb[56].mxu1 %vm269_vm2, %v4454_v29 }
0x19fe   :  { %6338 = vmatpush3.bf16.msra.mxu1 %v7824_v3  ;;  %6332 = vmatpush3.bf16.msra.mxu0 %v6313_v21 }
0x19ff   :  { %6339 = vmatprep.subr.bf16.mxu1 %v6715_v25  ;;  %6333 = vmatprep.subr.bf16.mxu0 %v6715_v25 }
0x1a00   :  { %6043 = vmatprep.mubr.msk.f32.mxu1 %vm6716_vm1, %v6717_v35  ;;  %6032 = vmatprep.mubr.msk.f32.mxu0 %vm6716_vm1, %v6717_v35  ;;  %vm4567_vm1 = vcmp.gt.f32.partialorder %v8152_v9, 0.0 }
0x1a01   :  { %v4667_v19 = vsel %vm4567_vm1, 1, %v6718_v41 }
0x1a02   :  { %6341 = vmatpush3.bf16.msra.mxu1 %v7830_v38  ;;  %6335 = vmatpush3.bf16.msra.mxu0 %v6316_v31 }
0x1a03   :  { %6343 = vmatprep.subr.bf16.mxu0 %v6342_v47 }
0x1a54   :  { %v4227_v2 = vpop.f32.mrb[52].mxu1 }
0x1a55   :  { %v8143_v48 = vadd.f32 %v4227_v2, %v8038_v20  ;;  %v5979_v8 = vpop.f32.mrb[53].mxu1  ;;  %v4873_v2 = vld [vmem:[#allocation2 + $0x8] sm:$0xff] }
0x1a56   :  { %v4874_v8 = vld [vmem:[#allocation2 + $0x10] sm:$0xff] }
0x1a5f   :  { %v4448_v3 = vpop.f32.mrb[54].mxu1 }
0x1a60   :  { %v6001_v44 = vpop.f32.mrb[55].mxu1 }
0x1a61   :  { %v4876_v44 = vld [vmem:[#allocation2 + $0x20] sm:$0xff] }
0x1ad0   :  { %v4523_v51 = vpop.f32.mrb[48].mxu0  ;;  %v4638_v52 = vpop.f32.mrb[56].mxu1 }
0x1ad1   :  { %v4524_v43 = vadd.f32 %v4523_v51, %v4448_v3  ;;  %v4642_v25 = vadd.f32 %v4638_v52, %v7079_v58  ;;  %v6012_v30 = vpop.f32.mrb[49].mxu0  ;;  %v6023_v53 = vpop.f32.mrb[57].mxu1  ;;  %v4875_v3 = vld [vmem:[#allocation2 + $0x18] sm:$0xff]  ;;  %v4877_v51 = vld [vmem:[#allocation2 + $0x28] sm:$0xff] }
0x1ad3   :  { %v4534_v16 = vadd.f32 %v7905_v14, %v4524_v43  ;;  %6561 = vtanh.f32 %v4642_v25  ;;  %v5236_v20 = vmul.f32 -1.442695, %v4642_v25 }
0x1ad5   :  { %6563 = vtanh.f32 %v4534_v16  ;;  %v5234_v27 = vmul.f32 -1.442695, %v4534_v16 }
0x1ad6   :  { %6565 = vpow2.f32 %v5236_v20 }
0x1ad7   :  { %6567 = vpow2.f32 %v5234_v27 }
0x1add   :  { %v6562_v35 = vpop.eup %6561 }
0x1ade   :  { %4652 = vrot.lane.b32.xlu1 %v6562_v35, %s6719_s6 }
0x1adf   :  { %v6564_v38 = vpop.eup %6563 }
0x1ae0   :  { %4544 = vrot.lane.b32.xlu0 %v6564_v38, %s6719_s6  ;;  %v6566_v1 = vpop.eup %6565 }
0x1ae1   :  { %v6568_v11 = vpop.eup %6567  ;;  %v4646_v62 = vadd.f32 1.0, %v6566_v1 }
0x1ae2   :  { %v4538_v58 = vadd.f32 1.0, %v6568_v11 }
0x1ae3   :  { %6569 = vrcp.f32 %v4646_v62 }
0x1ae4   :  { %6571 = vrcp.f32 %v4538_v58 }
0x1aed   :  { %v6570_v26 = vpop.eup %6569 }
0x1aee   :  { %v6572_v32 = vpop.eup %6571  ;;  %v4650_v22 = vmul.f32 %v6570_v26, %v4371_v59 }
0x1aef   :  { %v4542_v56 = vmul.f32 %v6572_v32, %v8166_v5 }
0x1b50   :  { %v4653_v17 = vpop.permute.xlu1 %4652 }
0x1b51   :  { %v4655_v18 = vmul.f32 %v6570_v26, %v4653_v17 }
0x1b52   :  { %v4545_v33 = vpop.permute.xlu0 %4544 }
0x1b53   :  { %v4547_v63 = vmul.f32 %v6572_v32, %v4545_v33  ;;  %4657 = vrot.lane.b32.xlu1 %v4655_v18, %s6720_s16 }
0x1b55   :  { %4549 = vrot.lane.b32.xlu0 %v4547_v63, %s6720_s16 }
0x1b59   :  { %4669 = vperm.xlu0 %6368, %v4667_v19  }
0x1bc5   :  { %v4658_v39 = vpop.permute.xlu1 %4657 }
0x1bc6   :  { %v4660_v4 = vadd.f32 %v4658_v39, %v4650_v22  ;;  %v4238_v39 = vadd.f32 %v7774_v55, %v8143_v48 }
0x1bc7   :  { %v4550_v7 = vpop.permute.xlu0 %4549 }
0x1bc8   :  { %6573 = vtanh.f32 %v4660_v4  ;;  %v8169_v41 = vadd.f32 %v4550_v7, %v4542_v56  ;;  %v5228_v7 = vmul.f32 -1.442695, %v4238_v39 }
0x1bca   :  { %6575 = vtanh.f32 %v8169_v41  ;;  %v4560_v63 = vsel %vm4369_vm14, %v8169_v41, %v8166_v5 }
0x1bd2   :  { %v6574_v13 = vpop.eup %6573 }
0x1bd3   :  { %4663 = vrot.lane.b32.xlu0 %v6574_v13, %s6719_s6 }
0x1bd4   :  { %v6576_v6 = vpop.eup %6575 }
0x1bd5   :  { %4555 = vrot.lane.b32.xlu1 %v6576_v6, %s6719_s6 }
0x1bd8   :  { %v8180_v23 = vpop.permute.xlu0 %4669 }
0x1bd9   :  { %vm4671_vm15 = vcmp.eq.s32.totalorder %v8180_v23, 1  ;;  %v5024_v23 = vld [vmem:[%s8370_s7 + $0x20] sm:$0xff] }
0x1c45   :  { %v4664_v15 = vpop.permute.xlu0 %4663 }
0x1c46   :  { %v4666_v21 = vmul.f32 %v6570_v26, %v4664_v15 }
0x1c47   :  { %v4556_v12 = vpop.permute.xlu1 %4555 }
0x1c48   :  { %v4558_v42 = vmul.f32 %v6572_v32, %v4556_v12  ;;  %v4672_v45 = vsel %vm4671_vm15, %v4666_v21, %v8120_v24  ;;  %v6346_v24 = vpack.c.bf16 %v4883_v10, %v4882_v34  ;;  %v3663_v21 = vsel %vm3469_vm8, %v7953_v49, %v7950_v61  ;;  %v5021_v10 = vld [vmem:[%s8370_s7 + $0x8] sm:$0xff] }
0x1c49   :  { %4754 = vrot.lane.b32.xlu0 %v4672_v45, %s6720_s16 }
0x1c4a   :  { %v8190_v31 = vsel %vm4369_vm14, %v4558_v42, %v8093_v46  ;;  %v4872_v46 = vld [vmem:[#allocation2] sm:$0xff] }
0x1c4b   :  { %4562 = vrot.lane.b32.xlu1 %v8190_v31, %s6720_s16 }
0x1cbb   :  { %v4755_v40 = vpop.permute.xlu0 %4754 }
0x1cbc   :  { %6044 = vmatmul.mubr.msk.f32.vlgmr.msra.gmra.mrb[58].mxu1 %vm269_vm2, %v4755_v40  ;;  %v5023_v40 = vld [vmem:[%s8370_s7 + $0x18] sm:$0xff] }
0x1cbd   :  { %v4563_v29 = vpop.permute.xlu1 %4562 }
0x1cbe   :  { %4565 = vst.msk [vmem:[#allocation2 + $0x30] sm:$0xff] %vm269_vm2, %v4563_v29  ;;  %6033 = vmatmul.mubr.msk.f32.vlgmr.msra.gmra.mrb[50].mxu0 %vm269_vm2, %v4563_v29 }
0x1cbf   :  { %6345 = vmatpush3.bf16.msra.mxu0 %v6342_v47  ;;  %6054 = vmatprep.mubr.msk.f32.mxu0 %vm269_vm2, %v4872_v46  ;;  %v5022_v47 = vld [vmem:[%s8370_s7 + $0x10] sm:$0xff] }
0x1cc0   :  { %6347 = vmatprep.subr.bf16.mxu0 %v6346_v24 }
0x1cc3   :  { %6349 = vmatpush3.bf16.msra.mxu0 %v6346_v24 }
0x1cc5   :  { %v4878_v52 = vld [vmem:[#allocation2 + $0x30] sm:$0xff] }
0x1cc6   :  { %6055 = vmatmul.mubr.msk.f32.vlgmr.msra.gmra.mrb[52].mxu0 %vm269_vm2, %v4873_v2 }
0x1cc7   :  { %6057 = vmatprep.mubr.msk.f32.mxu0 %vm269_vm2, %v4874_v8 }
0x1cca   :  { %6058 = vmatmul.mubr.msk.f32.gmra.mrb[54].mxu0 %vm269_vm2, %v4875_v3 }
0x1ccb   :  { %6060 = vmatprep.mubr.msk.f32.mxu0 %vm269_vm2, %v4876_v44 }
0x1cce   :  { %6061 = vmatmul.mubr.msk.f32.gmra.mrb[56].mxu0 %vm269_vm2, %v4877_v51 }
0x1ccf   :  { %6063 = vmatprep.mubr.msk.f32.mxu0 %vm269_vm2, %v4878_v52 }
0x1d8f   :  { %v4824_v43 = vpop.f32.mrb[58].mxu1 }
0x1d90   :  { %v6045_v25 = vpop.f32.mrb[59].mxu1 }
0x1d91   :  { %v4749_v30 = vpop.f32.mrb[50].mxu0 }
0x1d92   :  { %v4825_v53 = vadd.f32 %v4824_v43, %v4749_v30  ;;  %v6034_v16 = vpop.f32.mrb[51].mxu0 }
0x1d94   :  { %v4835_v35 = vadd.f32 %v7905_v14, %v4825_v53 }
0x1d96   :  { %6577 = vtanh.f32 %v4835_v35  ;;  %v5240_v26 = vmul.f32 -1.442695, %v4835_v35 }
0x1d98   :  { %6579 = vpow2.f32 %v5240_v26 }
0x1d99   :  { %v8211_v38 = vpop.f32.mrb[52].mxu0 }
0x1d9a   :  { %v4981_v20 = vpop.f32.mrb[53].mxu0 }
0x1d9d   :  { %v8213_v27 = vpop.f32.mrb[54].mxu0 }
0x1d9e   :  { %v8215_v1 = vpop.f32.mrb[55].mxu0 }
0x1da0   :  { %v6578_v11 = vpop.eup %6577 }
0x1da1   :  { %v8217_v62 = vpop.f32.mrb[56].mxu0  ;;  %4845 = vrot.lane.b32.xlu1 %v6578_v11, %s6719_s6 }
0x1da2   :  { %v8220_v58 = vpop.f32.mrb[57].mxu0  ;;  %v6580_v17 = vpop.eup %6579 }
0x1da3   :  { %v4839_v18 = vadd.f32 1.0, %v6580_v17 }
0x1da5   :  { %6581 = vrcp.f32 %v4839_v18 }
0x1daf   :  { %v6582_v14 = vpop.eup %6581 }
0x1db0   :  { %v4843_v19 = vmul.f32 %v6582_v14, %v4560_v63 }
0x1e13   :  { %v4846_v32 = vpop.permute.xlu1 %4845 }
0x1e14   :  { %v4848_v33 = vmul.f32 %v6582_v14, %v4846_v32 }
0x1e16   :  { %4850 = vrot.lane.b32.xlu0 %v4848_v33, %s6720_s16 }
0x1e88   :  { %v4851_v59 = vpop.permute.xlu0 %4850 }
0x1e89   :  { %v4853_v22 = vadd.f32 %v4851_v59, %v4843_v19 }
0x1e8b   :  { %6583 = vtanh.f32 %v4853_v22 }
0x1e8c   :  { %6585 = vtanh.f32 %v4238_v39 }
0x1e8d   :  { %6587 = vpow2.f32 %v5228_v7 }
0x1e95   :  { %v6584_v4 = vpop.eup %6583 }
0x1e96   :  { %4856 = vrot.lane.b32.xlu1 %v6584_v4, %s6719_s6  ;;  %v6586_v56 = vpop.eup %6585 }
0x1e97   :  { %v6588_v13 = vpop.eup %6587 }
0x1e98   :  { %v4242_v6 = vadd.f32 1.0, %v6588_v13 }
0x1e9a   :  { %4248 = vrot.lane.b32.xlu1 %v6586_v56, %s6719_s6  ;;  %6589 = vrcp.f32 %v4242_v6 }
0x1ea4   :  { %v6590_v55 = vpop.eup %6589 }
0x1ea5   :  { %v4246_v12 = vmul.f32 %v6590_v55, %v3663_v21 }
0x1f08   :  { %v4857_v57 = vpop.permute.xlu1 %4856 }
0x1f09   :  { %v4859_v5 = vmul.f32 %v6582_v14, %v4857_v57 }
0x1f0b   :  { %v4860_v41 = vsel %vm4671_vm15, %v4859_v5, %v8190_v31 }
0x1f0c   :  { %4862 = vrot.lane.b32.xlu0 %v4860_v41, %s6720_s16  ;;  %v4249_v48 = vpop.permute.xlu1 %4248 }
0x1f0d   :  { %v4251_v0 = vmul.f32 %v6590_v55, %v4249_v48 }
0x1f10   :  { %4253 = vrot.lane.b32.xlu0 %v4251_v0, %s6720_s16 }
0x1f14   :  { %5030 = vperm.xlu0 %6368, %v5020_v50  }
0x1f18   :  { %5040 = vperm.xlu0 %6368, %v5022_v47  }
0x1f1c   :  { %5050 = vperm.xlu0 %6368, %v5024_v23  }
0x1f20   :  { %5060 = vperm.xlu0 %6368, %v8049_v60   ;;  %v5241_v60 = vld [vmem:[%s8342_s21] ss:$0 sm:$0xff]  ;;  %s6721_s21 = smov [#allocation8]  }
0x1f21   :  { %v4982_v37 = vadd.f32 %v5241_v60, %v4981_v20  ;;  %v4992_v24 = vadd.f32 %v5241_v60, %v8215_v1  ;;  %v5002_v2 = vadd.f32 %v5241_v60, %v8220_v58 }
0x1f7e   :  { %v4863_v15 = vpop.permute.xlu0 %4862 }
0x1f7f   :  { %4865 = vst.msk [vmem:[#allocation2 + $0x38] sm:$0xff] %vm269_vm2, %v4863_v15  ;;  %4866 = vst.msk [vmem:[#allocation8] sm:$0xff] %vm269_vm2, %v4863_v15 }
0x1f82   :  { %v4254_v42 = vpop.permute.xlu0 %4253 }
0x1f83   :  { %v4256_v45 = vadd.f32 %v4254_v42, %v4246_v12 }
0x1f85   :  { %6591 = vtanh.f32 %v4256_v45 }
0x1f86   :  { %v4879_v31 = vld [vmem:[#allocation2 + $0x38] sm:$0xff] }
0x1f87   :  { %6064 = vmatmul.mubr.msk.f32.gmra.mrb[58].mxu0 %vm269_vm2, %v4879_v31 }
0x1f8f   :  { %v6592_v34 = vpop.eup %6591 }
0x1f90   :  { %4259 = vrot.lane.b32.xlu1 %v6592_v34, %s6719_s6  ;;  %s5090_s6 = sshll.u32 %s6721_s21, 4  ;;  %s5091_s6 = int_to_ptr.vmem [resolvable:$true] %s5090_s6 }
0x1f91   :  { %s6637_s7 = scalar_lea.vmem %s5091_s6, 128  ;;  %p6642_p3 = scmp.lt.s32.totalorder %s5091_s6, %s5091_s6 }
0x1f92   :  { %p6638_p2 = scmp.ne.s32.totalorder %s5091_s6, %s6637_s7  ;;  %p6643_p4 = scmp.lt.s32.totalorder %s6637_s7, %s6637_s7 }
0x1f93   :  { %v5031_v61 = vpop.permute.xlu0 %5030 }
0x1f94   :  { %v5068_v49 = vmul.f32 %v5031_v61, %v4982_v37  ;;  %5035 = vperm.xlu1 %6367, %v5021_v10   ;;  %p6644_p5 = por %p6643_p4, %p6642_p3 }
0x1f96   :  { %5076 = vst [vmem:[#allocation11] sm:$0xff] %v5068_v49  ;;  %p6645_p6 = pnand %p6644_p5, %p6638_p2 }
0x1f97   :  { %v5041_v29 = vpop.permute.xlu0 %5040 }
0x1f98   :  { %v5070_v46 = vmul.f32 %v5041_v29, %v4992_v24  ;;  %5045 = vperm.xlu1 %6367, %v5023_v40  }
0x1f9a   :  { %5078 = vst [vmem:[#allocation11 + $0x10] sm:$0xff] %v5070_v46 }
0x1f9b   :  { %v5051_v8 = vpop.permute.xlu0 %5050 }
0x1f9c   :  { %v5072_v3 = vmul.f32 %v5051_v8, %v5002_v2  ;;  %5055 = vperm.xlu1 %6367, %v7918_v36  }
0x1f9e   :  { %5080 = vst [vmem:[#allocation11 + $0x20] sm:$0xff] %v5072_v3 }
0x1fa0   :  { %5065 = vperm.xlu1 %6367, %v8152_v9  }
0x1fa1   :  { %6648 = shalt.err (!%p6645_p6)
}
0x1fa2   :  { %s6649_s27 = scalar_lea.hbm %s8343_s22, 128 }
0x1fa3   :  { %p6650_p7 = scmp.ne.s32.totalorder %s8343_s22, %s6649_s27  ;;  %p6653_p8 = scmp.lt.u32.totalorder %s6649_s27, %s8343_s22 }
0x1fa5   :  { %p6655_p9 = pnand %p6653_p8, %p6650_p7 }
0x1fa7   :  { %6658 = shalt.err (!%p6655_p9)
}
0x1fa8   :  { %5093 = dma.vmem_to_hbm [thread:$0]  %s5091_s6, 128, %s8343_s22, [#allocation5]   ;;  %v4987_v51 = vadd.f32 %v8211_v38, %v5241_v60  ;;  %v4997_v25 = vadd.f32 %v8213_v27, %v5241_v60  ;;  %v5007_v16 = vadd.f32 %v8217_v62, %v5241_v60  ;;  %v5061_v26 = vpop.permute.xlu0 %5060 }
0x1fa9   :  { %s6722_s22 = smov [#allocation9]   ;;  %s6723_s0 = smov [#allocation11]  }
0x1faa   :  { %s5109_s13 = sshll.u32 %s6723_s0, 4  ;;  %s8286_s13 = int_to_ptr.vmem [resolvable:$true] %s5109_s13 }
0x2002   :  { %v4260_v36 = vpop.permute.xlu1 %4259 }
0x2003   :  { %v4262_v9 = vmul.f32 %v6590_v55, %v4260_v36 }
0x2005   :  { %v4263_v44 = vsel %vm4071_vm13, %v4262_v9, %v7987_v54 }
0x2006   :  { %4868 = vrot.lane.b32.xlu0 %v4263_v44, %s6720_s16  ;;  %s5100_s16 = sshll.u32 %s6722_s22, 4  ;;  %s5101_s16 = int_to_ptr.vmem [resolvable:$true] %s5100_s16 }
0x2007   :  { %s6659_s20 = scalar_lea.vmem %s5101_s16, 128  ;;  %p6664_p11 = scmp.lt.s32.totalorder %s5101_s16, %s5101_s16 }
0x2008   :  { %p6660_p10 = scmp.ne.s32.totalorder %s5101_s16, %s6659_s20  ;;  %p6665_p12 = scmp.lt.s32.totalorder %s6659_s20, %s6659_s20 }
0x200a   :  { %p6666_p13 = por %p6665_p12, %p6664_p11 }
0x200c   :  { %p6667_p0 = pnand %p6666_p13, %p6660_p10 }
0x2013   :  { %v5036_v52 = vpop.permute.xlu1 %5035 }
0x2014   :  { %v5069_v43 = vmul.f32 %v5036_v52, %v4987_v51 }
0x2016   :  { %5077 = vst [vmem:[#allocation11 + $0x8] sm:$0xff] %v5069_v43 }
0x2017   :  { %v5046_v30 = vpop.permute.xlu1 %5045 }
0x2018   :  { %v5071_v53 = vmul.f32 %v5046_v30, %v4997_v25 }
0x201a   :  { %5079 = vst [vmem:[#allocation11 + $0x18] sm:$0xff] %v5071_v53 }
0x201b   :  { %v5056_v35 = vpop.permute.xlu1 %5055 }
0x201c   :  { %v5073_v20 = vmul.f32 %v5056_v35, %v5007_v16 }
0x201e   :  { %5081 = vst [vmem:[#allocation11 + $0x28] sm:$0xff] %v5073_v20 }
0x201f   :  { %v5066_v11 = vpop.permute.xlu1 %5065 }
0x205a   :  { %v6065_v1 = vpop.f32.mrb[58].mxu0 }
0x205b   :  { %v5017_v28 = vadd.f32 %v6065_v1, %v5241_v60  ;;  %v5011_v54 = vpop.f32.mrb[59].mxu0 }
0x205c   :  { %v5012_v58 = vadd.f32 %v5241_v60, %v5011_v54 }
0x205d   :  { %v5075_v38 = vmul.f32 %v5066_v11, %v5017_v28 }
0x205e   :  { %v5074_v17 = vmul.f32 %v5061_v26, %v5012_v58 }
0x205f   :  { %5083 = vst [vmem:[#allocation11 + $0x38] sm:$0xff] %v5075_v38 }
0x2060   :  { %5082 = vst [vmem:[#allocation11 + $0x30] sm:$0xff] %v5074_v17 }
0x2078   :  { %v4869_v27 = vpop.permute.xlu0 %4868 }
0x2079   :  { %4871 = vst.msk [vmem:[#allocation9] sm:$0xff] %vm269_vm2, %v4869_v27 }
0x207a   :  { %6670 = shalt.err (!%p6667_p0)
}
0x207b   :  { %s6671_s1 = scalar_lea.hbm %s8344_s23, 128 }
0x207c   :  { %p6672_p1 = scmp.ne.s32.totalorder %s8344_s23, %s6671_s1  ;;  %p6675_p2 = scmp.lt.u32.totalorder %s6671_s1, %s8344_s23 }
0x207e   :  { %p6677_p3 = pnand %p6675_p2, %p6672_p1 }
0x2080   :  { %6680 = shalt.err (!%p6677_p3)
}
0x2081   :  { %5103 = dma.vmem_to_hbm [thread:$0]  %s5101_s16, 128, %s8344_s23, [#allocation10]  }
0x2082   :  { %s6681_s2 = scalar_lea.vmem %s8286_s13, 1024  ;;  %p6686_p5 = scmp.lt.s32.totalorder %s8286_s13, %s8286_s13 }
0x2083   :  { %p6682_p4 = scmp.ne.s32.totalorder %s8286_s13, %s6681_s2  ;;  %p6687_p6 = scmp.lt.s32.totalorder %s6681_s2, %s6681_s2 }
0x2085   :  { %p6688_p7 = por %p6687_p6, %p6686_p5 }
0x2087   :  { %p6689_p8 = pnand %p6688_p7, %p6682_p4 }
0x2089   :  { %6692 = shalt.err (!%p6689_p8)
}
0x208a   :  { %s8373_s6 = sld [smem:[#allocation25_spill]] }
0x2090   :  { %s6693_s7 = scalar_lea.hbm %s8373_s6, 1024 }
0x2091   :  { %p6694_p9 = scmp.ne.s32.totalorder %s8373_s6, %s6693_s7  ;;  %p6697_p10 = scmp.lt.u32.totalorder %s6693_s7, %s8373_s6 }
0x2093   :  { %p6699_p11 = pnand %p6697_p10, %p6694_p9 }
0x2095   :  { %6702 = shalt.err (!%p6699_p11)
}
0x2096   :  { %5115 = dma.vmem_to_hbm [thread:$0]  %s8286_s13, 1024, %s8373_s6, [#allocation10], %s6712_s25, %s6712_s25, %s6713_s8  }
0x2097   :  { %6707 = dma.done.wait [#allocation5], 128  }
0x2098   :  { %6708 = vsyncadd [#allocation5], 4294967168 }
0x2099   :  { %6709 = dma.done.wait [#allocation10], 1152  }
0x209a   :  { %6710 = vsyncadd [#allocation10], 4294966144 }
0x209b   :  { %5125 = vsyncpa [#allocation4], 1 }
0x209c   :  { %5126 = vsyncpa [#allocation7], 1 }
0x209d   :  { %5127 = vsyncpa [#allocation5], 1 }
0x209e   :  { %5128 = vsyncpa [#allocation10], 1 }

</bundles_post_ra>
